<compile_context>
chip_gen: v6e
topology: v6e:2x2x1
jax: 0.10.0
libtpu: 0.0.40
codegen_flags: <defaults>
</compile_context>

<pallas_src>
import math
import numpy as np
import jax
import jax.numpy as jnp
from jax.experimental import pallas as pl
from jax.experimental.pallas import tpu as pltpu

SCORE_THRESH = 0.05
WX, WY, WW, WH = 10.0, 10.0, 5.0, 5.0
BBOX_XFORM_CLIP = math.log(1000.0 / 16.0)
TO_REMOVE = 1.0


def _lane_const_rows(num_classes: int) -> np.ndarray:
    """(8, 4C) f32 constant rows (one vreg-tile) encoding the per-lane pattern.

    row 0: 1/weight  (1/10, 1/10, 1/5, 1/5) repeated per class
    row 1: ctr mask  (1 at dx/dy lanes, 0 at dw/dh lanes)
    row 2: x mask    (1 at x-axis lanes, 0 at y-axis lanes)
    row 3: half      (-0.5 at ctr lanes, +0.5 at size lanes)
    row 4: corner    (0 at ctr lanes, -TO_REMOVE at size lanes)
    rows 5-7: zero padding (sublane alignment)
    """
    L = 4 * num_classes
    k = np.arange(L) % 4
    rows = np.zeros((8, L), np.float32)
    rows[0] = np.where(k == 0, 1.0 / WX,
               np.where(k == 1, 1.0 / WY,
               np.where(k == 2, 1.0 / WW, 1.0 / WH)))
    rows[1] = (k < 2).astype(np.float32)
    rows[2] = (k % 2 == 0).astype(np.float32)
    rows[3] = np.where(k < 2, -0.5, 0.5)
    rows[4] = np.where(k < 2, 0.0, -TO_REMOVE)
    return rows


def _postprocess_kernel(imsz_ref, logits_ref, deltas_ref, props_ref, rows_ref,
                        probs_ref, boxes_ref):
    b = pl.program_id(0)                         # image index (SMEM lookup only)

    # ---- class_prob = softmax(class_logits, -1) -----------------------------
    logits = logits_ref[...].astype(jnp.float32)                 # (TP, C)
    mx = jnp.max(logits, axis=-1, keepdims=True)
    e = jnp.exp(logits - mx)
    denom = jnp.sum(e, axis=-1, keepdims=True)
    probs = e * pl.reciprocal(denom, approx=True)                # EUP slot (free)
    probs_ref[...] = probs.astype(probs_ref.dtype)
    # NOTE: `probs > SCORE_THRESH` keep-mask left to the consumer (free compare,
    # and it must drop the background column 0 anyway).

    # ---- BoxCoder.decode + clip_to_image, lane-interleaved ------------------
    # Per-lane constants as (1, 4C) rows — no per-element iota / % / compares.
    rows = rows_ref[...]                                         # (8, 4C)
    inv_w  = rows[0:1, :]
    m_ctr  = rows[1:2, :]
    m_x    = rows[2:3, :]
    half   = rows[3:4, :]
    corner = rows[4:5, :]

    d = deltas_ref[...].astype(jnp.float32)                      # (TP, 4C)
    p = props_ref[...].astype(jnp.float32)                       # (TP, 4)
    px1, py1, px2, py2 = p[:, 0:1], p[:, 1:2], p[:, 2:3], p[:, 3:4]
    widths  = px2 - px1 + TO_REMOVE                              # (TP, 1)
    heights = py2 - py1 + TO_REMOVE
    ctr_x = px1 + 0.5 * widths
    ctr_y = py1 + 0.5 * heights
    # x/y lane select as FMAs on the broadcast (1,4C) mask row
    size_l = heights + (widths - heights) * m_x                  # (TP, 4C)
    ctr_l  = ctr_y  + (ctr_x  - ctr_y)  * m_x

    t = d * inv_w                                                # weights: const multiplies
    ex = jnp.exp(jnp.minimum(t, BBOX_XFORM_CLIP))                # EUP
    f = ex + (t - ex) * m_ctr                                    # t @ ctr lanes, exp @ size lanes
    pred = f * size_l + ctr_l * m_ctr        # cx,cy @ ctr lanes ; w,h @ size lanes

    # (cx,cy,w,h) -> (x1,y1,x2,y2): two XLU lane-rolls instead of an MXU matmul.
    Lns = pred.shape[-1]
    roll_p2 = pltpu.roll(pred, 2, axis=1)          # lane l <- pred[l-2]  (centers at size lanes)
    roll_m2 = pltpu.roll(pred, Lns - 2, axis=1)    # lane l <- pred[l+2]  (sizes   at ctr  lanes)
    base   = roll_p2 + (pred - roll_p2) * m_ctr    # per-lane center coordinate
    size_v = pred    + (roll_m2 - pred) * m_ctr    # per-lane box size
    boxes  = base + half * size_v + corner         # x1,y1 = c-0.5s ; x2,y2 = c+0.5s-1

    # clip_to_image(remove_empty=False): x in [0, W-1], y in [0, H-1]
    # image_sizes order = BoxList.size = (width, height).
    im_w = imsz_ref[b, 0].astype(jnp.float32)
    im_h = imsz_ref[b, 1].astype(jnp.float32)
    bound = (im_h - TO_REMOVE) + (im_w - im_h) * m_x             # (1, 4C)
    boxes = jnp.minimum(jnp.maximum(boxes, 0.0), bound)
    boxes_ref[...] = boxes.astype(boxes_ref.dtype)               # one slab store


def post_processor_forward(class_logits, box_regression, concat_boxes,
                           image_sizes, num_images, props_per_image,
                           *, tile_p=None,
                           probs_dtype=jnp.bfloat16, boxes_dtype=jnp.float32):
    """Fused softmax + BoxCoder.decode + clip_to_image.

    Args (native dtype & layout, no wrapper-side casts/reshapes):
      class_logits   : (N, C)
      box_regression : (N, 4C)  lane l = 4*c + {dx,dy,dw,dh}
      concat_boxes   : (N, 4)   xyxy proposals
      image_sizes    : (num_images, 2) as (width, height) — BoxList.size order.

    Returns:
      class_prob : (N, C)   in probs_dtype
      boxes      : (N, 4C)  xyxy, decoded + clipped, class-interleaved exactly
                   like BoxCoder.decode.
    """
    N, C = class_logits.shape
    L = 4 * C
    P = props_per_image
    assert N == num_images * P
    assert box_regression.shape == (N, L)
    assert concat_boxes.shape == (N, 4)

    def lane_pad(n):
        return -(-n // 128) * 128

    def tile_bytes(tp):      # double-buffered in/out streams for one grid step
        per_row = (lane_pad(C) * np.dtype(class_logits.dtype).itemsize
                   + lane_pad(L) * np.dtype(box_regression.dtype).itemsize
                   + lane_pad(4) * np.dtype(concat_boxes.dtype).itemsize
                   + lane_pad(L) * np.dtype(boxes_dtype).itemsize
                   + lane_pad(C) * np.dtype(probs_dtype).itemsize)
        return 2 * tp * per_row

    VMEM_BUDGET = 12 * 1024 * 1024   # headroom for intermediates; v7x has 64 MiB VMEM
    if tile_p is None:
        for cand in (2048, 1024, 512, 256, 128, 64, 32, 16):
            if P % cand == 0 and tile_bytes(cand) <= VMEM_BUDGET:
                tile_p = cand
                break
        else:
            raise ValueError("props_per_image must be a multiple of 16")
    assert P % tile_p == 0 and tile_p % 16 == 0

    num_tiles = P // tile_p
    # v7x megacore: keep >= 2 grid steps so ("parallel","parallel") can split
    # the work across the two TensorCores.
    if num_images * num_tiles < 2 and tile_p % 32 == 0:
        tile_p //= 2
        num_tiles = P // tile_p

    imsz = jnp.asarray(image_sizes, dtype=jnp.int32).reshape(num_images, 2)
    lane_rows = jnp.asarray(_lane_const_rows(C))                 # (8, 4C) f32

    est = tile_bytes(tile_p)
    vmem_limit = None
    if est > 8 * 1024 * 1024:
        vmem_limit = int(min(64 * 1024 * 1024, 4 * est))

    def blk(b, t, imsz_ref):                     # proposal-tile block index
        return (b * num_tiles + t, 0)

    grid_spec = pltpu.PrefetchScalarGridSpec(
        num_scalar_prefetch=1,                   # image sizes -> SMEM
        grid=(num_images, num_tiles),
        in_specs=[
            pl.BlockSpec((tile_p, C), blk),      # class logits   (native dtype/layout)
            pl.BlockSpec((tile_p, L), blk),      # box regression (native dtype/layout)
            pl.BlockSpec((tile_p, 4), blk),      # proposal boxes
            pl.BlockSpec((8, L), lambda b, t, imsz_ref: (0, 0)),  # per-lane constants
        ],
        out_specs=[
            pl.BlockSpec((tile_p, C), blk),      # class_prob
            pl.BlockSpec((tile_p, L), blk),      # decoded + clipped boxes
        ],
    )

    return pl.pallas_call(
        _postprocess_kernel,
        out_shape=(jax.ShapeDtypeStruct((N, C), probs_dtype),
                   jax.ShapeDtypeStruct((N, L), boxes_dtype)),
        grid_spec=grid_spec,
        compiler_params=pltpu.CompilerParams(
            dimension_semantics=("parallel", "parallel"),
            vmem_limit_bytes=vmem_limit),
    )(imsz, class_logits, box_regression, concat_boxes, lane_rows)


def _reference(class_logits, box_regression, concat_boxes, image_sizes,
               num_images, props_per_image):
    """Plain-JAX reference of the same fused math (module-faithful)."""
    N, C = class_logits.shape
    probs = jax.nn.softmax(class_logits.astype(jnp.float32), axis=-1)
    d = box_regression.astype(jnp.float32).reshape(N, C, 4)
    cb = concat_boxes.astype(jnp.float32)
    x1, y1, x2, y2 = [cb[:, i:i + 1] for i in range(4)]
    w = x2 - x1 + TO_REMOVE
    h = y2 - y1 + TO_REMOVE
    cx = x1 + 0.5 * w
    cy = y1 + 0.5 * h
    dx, dy = d[..., 0] / WX, d[..., 1] / WY
    dw = jnp.minimum(d[..., 2] / WW, BBOX_XFORM_CLIP)
    dh = jnp.minimum(d[..., 3] / WH, BBOX_XFORM_CLIP)
    pcx, pcy = dx * w + cx, dy * h + cy
    pw, ph = jnp.exp(dw) * w, jnp.exp(dh) * h
    im = jnp.repeat(jnp.asarray(image_sizes, jnp.float32), props_per_image, axis=0)
    iw, ih = im[:, 0:1], im[:, 1:2]
    bx1 = jnp.clip(pcx - 0.5 * pw, 0.0, iw - TO_REMOVE)
    by1 = jnp.clip(pcy - 0.5 * ph, 0.0, ih - TO_REMOVE)
    bx2 = jnp.clip(pcx + 0.5 * pw - TO_REMOVE, 0.0, iw - TO_REMOVE)
    by2 = jnp.clip(pcy + 0.5 * ph - TO_REMOVE, 0.0, ih - TO_REMOVE)
    boxes = jnp.stack([bx1, by1, bx2, by2], axis=-1).reshape(N, 4 * C)
    return probs, boxes


if __name__ == "__main__":
    # 2 images, 256 proposals each, 32 classes (4C = 128 lanes, one full vreg row)
    B, P, C = 2, 256, 32
    N = B * P
    key = jax.random.PRNGKey(0)
    k1, k2, k3 = jax.random.split(key, 3)

    class_logits = jax.random.normal(k1, (N, C), dtype=jnp.float32)
    box_regression = 0.5 * jax.random.normal(k2, (N, 4 * C), dtype=jnp.float32)

    # deterministic proposal boxes (xyxy) inside each image
    xy = jax.random.uniform(k3, (N, 4), dtype=jnp.float32) * 40.0
    px1 = jnp.minimum(xy[:, 0], xy[:, 2])
    px2 = jnp.maximum(xy[:, 0], xy[:, 2]) + 1.0
    py1 = jnp.minimum(xy[:, 1], xy[:, 3])
    py2 = jnp.maximum(xy[:, 1], xy[:, 3]) + 1.0
    concat_boxes = jnp.stack([px1, py1, px2, py2], axis=1)

    image_sizes = [(64, 48), (80, 56)]   # (width, height) per image, BoxList.size order

    probs, dec_boxes = post_processor_forward(
        class_logits, box_regression, concat_boxes, image_sizes, B, P)
    jax.block_until_ready((probs, dec_boxes))

    r_probs, r_boxes = _reference(
        class_logits, box_regression, concat_boxes, image_sizes, B, P)

    assert probs.shape == (N, C) and dec_boxes.shape == (N, 4 * C)
    assert jnp.allclose(probs.astype(jnp.float32), r_probs, atol=2e-2, rtol=0.0)
    assert jnp.allclose(dec_boxes, r_boxes, atol=2e-2, rtol=1e-3)

    print("KERNEL_OK")
</pallas_src>

<mosaic_0001>
module attributes {stable_mosaic.version = 11 : i64} {
  func.func @_postprocess_kernel(%arg0: i32, %arg1: i32, %arg2: memref<2x2xi32, #tpu.memory_space<smem>>, %arg3: memref<256x32xf32, #tpu.memory_space<vmem>>, %arg4: memref<256x128xf32, #tpu.memory_space<vmem>>, %arg5: memref<256x4xf32, #tpu.memory_space<vmem>>, %arg6: memref<8x128xf32, #tpu.memory_space<vmem>>, %arg7: memref<256x32xbf16, #tpu.memory_space<vmem>>, %arg8: memref<256x128xf32, #tpu.memory_space<vmem>>) attributes {dimension_semantics = [#tpu.dimension_semantics<parallel>, #tpu.dimension_semantics<parallel>], iteration_bounds = array<i64: 2, 1>, scalar_prefetch = 1 : i64, scratch_operands = 0 : i64, tpu.core_type = #tpu.core_type<tc>, window_params = [{transform_indices = @transform_0, window_bounds = array<i64: 256, 32>}, {transform_indices = @transform_1, window_bounds = array<i64: 256, 128>}, {transform_indices = @transform_2, window_bounds = array<i64: 256, 4>}, {pipeline_mode = #tpu.pipeline_mode<synchronous>, transform_indices = @transform_3, window_bounds = array<i64: 8, 128>}, {transform_indices = @transform_4, window_bounds = array<i64: 256, 32>}, {transform_indices = @transform_5, window_bounds = array<i64: 256, 128>}]} {
    %c0 = arith.constant 0 : index
    %c0_0 = arith.constant 0 : index
    %0 = vector.load %arg3[%c0, %c0_0] : memref<256x32xf32, #tpu.memory_space<vmem>>, vector<256x32xf32>
    %cst = arith.constant dense<0xFF800000> : vector<256xf32>
    %1 = vector.multi_reduction <maximumf>, %0, %cst [1] : vector<256x32xf32> to vector<256xf32>
    %2 = vector.shape_cast %1 : vector<256xf32> to vector<256x1xf32>
    %3 = vector.broadcast %2 : vector<256x1xf32> to vector<256x32xf32>
    %4 = arith.subf %0, %3 : vector<256x32xf32>
    %5 = math.exp %4 : vector<256x32xf32>
    %cst_1 = arith.constant dense<0.000000e+00> : vector<256xf32>
    %6 = vector.multi_reduction <add>, %5, %cst_1 [1] : vector<256x32xf32> to vector<256xf32>
    %7 = vector.shape_cast %6 : vector<256xf32> to vector<256x1xf32>
    %8 = tpu.reciprocal %7 {approx = true} : vector<256x1xf32> -> vector<256x1xf32>
    %9 = vector.broadcast %8 : vector<256x1xf32> to vector<256x32xf32>
    %10 = arith.mulf %5, %9 : vector<256x32xf32>
    %11 = arith.truncf %10 : vector<256x32xf32> to vector<256x32xbf16>
    %c0_2 = arith.constant 0 : index
    %c0_3 = arith.constant 0 : index
    %12 = vector.load %arg7[%c0_2, %c0_3] : memref<256x32xbf16, #tpu.memory_space<vmem>>, vector<256x32xbf16>
    tpu.vector_store %arg7[%c0_2, %c0_3], %11 {strides = array<i32>} : memref<256x32xbf16, #tpu.memory_space<vmem>>, vector<256x32xbf16>,
    %c0_4 = arith.constant 0 : index
    %c0_5 = arith.constant 0 : index
    %13 = vector.load %arg6[%c0_4, %c0_5] : memref<8x128xf32, #tpu.memory_space<vmem>>, vector<8x128xf32>
    %14 = vector.extract_strided_slice %13 {offsets = [0, 0], sizes = [1, 128], strides = [1, 1]} : vector<8x128xf32> to vector<1x128xf32>
    %15 = vector.extract_strided_slice %13 {offsets = [1, 0], sizes = [1, 128], strides = [1, 1]} : vector<8x128xf32> to vector<1x128xf32>
    %16 = vector.extract_strided_slice %13 {offsets = [2, 0], sizes = [1, 128], strides = [1, 1]} : vector<8x128xf32> to vector<1x128xf32>
    %17 = vector.extract_strided_slice %13 {offsets = [3, 0], sizes = [1, 128], strides = [1, 1]} : vector<8x128xf32> to vector<1x128xf32>
    %18 = vector.extract_strided_slice %13 {offsets = [4, 0], sizes = [1, 128], strides = [1, 1]} : vector<8x128xf32> to vector<1x128xf32>
    %c0_6 = arith.constant 0 : index
    %c0_7 = arith.constant 0 : index
    %19 = vector.load %arg4[%c0_6, %c0_7] : memref<256x128xf32, #tpu.memory_space<vmem>>, vector<256x128xf32>
    %c0_8 = arith.constant 0 : index
    %c0_9 = arith.constant 0 : index
    %20 = vector.load %arg5[%c0_8, %c0_9] : memref<256x4xf32, #tpu.memory_space<vmem>>, vector<256x4xf32>
    %21 = vector.extract_strided_slice %20 {offsets = [0, 0], sizes = [256, 1], strides = [1, 1]} : vector<256x4xf32> to vector<256x1xf32>
    %22 = vector.extract_strided_slice %20 {offsets = [0, 1], sizes = [256, 1], strides = [1, 1]} : vector<256x4xf32> to vector<256x1xf32>
    %23 = vector.extract_strided_slice %20 {offsets = [0, 2], sizes = [256, 1], strides = [1, 1]} : vector<256x4xf32> to vector<256x1xf32>
    %24 = vector.extract_strided_slice %20 {offsets = [0, 3], sizes = [256, 1], strides = [1, 1]} : vector<256x4xf32> to vector<256x1xf32>
    %25 = arith.subf %23, %21 : vector<256x1xf32>
    %cst_10 = arith.constant 1.000000e+00 : f32
    %26 = vector.broadcast %cst_10 : f32 to vector<256x1xf32>
    %27 = arith.addf %25, %26 : vector<256x1xf32>
    %28 = arith.subf %24, %22 : vector<256x1xf32>
    %cst_11 = arith.constant 1.000000e+00 : f32
    %29 = vector.broadcast %cst_11 : f32 to vector<256x1xf32>
    %30 = arith.addf %28, %29 : vector<256x1xf32>
    %cst_12 = arith.constant 5.000000e-01 : f32
    %31 = vector.broadcast %cst_12 : f32 to vector<256x1xf32>
    %32 = arith.mulf %31, %27 : vector<256x1xf32>
    %33 = arith.addf %21, %32 : vector<256x1xf32>
    %cst_13 = arith.constant 5.000000e-01 : f32
    %34 = vector.broadcast %cst_13 : f32 to vector<256x1xf32>
    %35 = arith.mulf %34, %30 : vector<256x1xf32>
    %36 = arith.addf %22, %35 : vector<256x1xf32>
    %37 = arith.subf %27, %30 : vector<256x1xf32>
    %38 = vector.broadcast %37 : vector<256x1xf32> to vector<256x128xf32>
    %39 = vector.broadcast %16 : vector<1x128xf32> to vector<256x128xf32>
    %40 = arith.mulf %38, %39 : vector<256x128xf32>
    %41 = vector.broadcast %30 : vector<256x1xf32> to vector<256x128xf32>
    %42 = arith.addf %41, %40 : vector<256x128xf32>
    %43 = arith.subf %33, %36 : vector<256x1xf32>
    %44 = vector.broadcast %43 : vector<256x1xf32> to vector<256x128xf32>
    %45 = vector.broadcast %16 : vector<1x128xf32> to vector<256x128xf32>
    %46 = arith.mulf %44, %45 : vector<256x128xf32>
    %47 = vector.broadcast %36 : vector<256x1xf32> to vector<256x128xf32>
    %48 = arith.addf %47, %46 : vector<256x128xf32>
    %49 = vector.broadcast %14 : vector<1x128xf32> to vector<256x128xf32>
    %50 = arith.mulf %19, %49 : vector<256x128xf32>
    %cst_14 = arith.constant 4.13516665 : f32
    %51 = vector.broadcast %cst_14 : f32 to vector<256x128xf32>
    %52 = arith.minimumf %50, %51 : vector<256x128xf32>
    %53 = math.exp %52 : vector<256x128xf32>
    %54 = arith.subf %50, %53 : vector<256x128xf32>
    %55 = vector.broadcast %15 : vector<1x128xf32> to vector<256x128xf32>
    %56 = arith.mulf %54, %55 : vector<256x128xf32>
    %57 = arith.addf %53, %56 : vector<256x128xf32>
    %58 = arith.mulf %57, %42 : vector<256x128xf32>
    %59 = vector.broadcast %15 : vector<1x128xf32> to vector<256x128xf32>
    %60 = arith.mulf %48, %59 : vector<256x128xf32>
    %61 = arith.addf %58, %60 : vector<256x128xf32>
    %c2_i32 = arith.constant 2 : i32
    %62 = tpu.dynamic_rotate %61 by %c2_i32 dim 1 : vector<256x128xf32>, i32 -> vector<256x128xf32>
    %c126_i32 = arith.constant 126 : i32
    %63 = tpu.dynamic_rotate %61 by %c126_i32 dim 1 : vector<256x128xf32>, i32 -> vector<256x128xf32>
    %64 = arith.subf %61, %62 : vector<256x128xf32>
    %65 = vector.broadcast %15 : vector<1x128xf32> to vector<256x128xf32>
    %66 = arith.mulf %64, %65 : vector<256x128xf32>
    %67 = arith.addf %62, %66 : vector<256x128xf32>
    %68 = arith.subf %63, %61 : vector<256x128xf32>
    %69 = vector.broadcast %15 : vector<1x128xf32> to vector<256x128xf32>
    %70 = arith.mulf %68, %69 : vector<256x128xf32>
    %71 = arith.addf %61, %70 : vector<256x128xf32>
    %72 = vector.broadcast %17 : vector<1x128xf32> to vector<256x128xf32>
    %73 = arith.mulf %72, %71 : vector<256x128xf32>
    %74 = arith.addf %67, %73 : vector<256x128xf32>
    %75 = vector.broadcast %18 : vector<1x128xf32> to vector<256x128xf32>
    %76 = arith.addf %74, %75 : vector<256x128xf32>
    %77 = arith.index_cast %arg0 : i32 to index
    %c0_15 = arith.constant 0 : index
    %78 = memref.load %arg2[%77, %c0_15] : memref<2x2xi32, #tpu.memory_space<smem>>
    %79 = arith.sitofp %78 : i32 to f32
    %80 = arith.index_cast %arg0 : i32 to index
    %c1 = arith.constant 1 : index
    %81 = memref.load %arg2[%80, %c1] : memref<2x2xi32, #tpu.memory_space<smem>>
    %82 = arith.sitofp %81 : i32 to f32
    %cst_16 = arith.constant 1.000000e+00 : f32
    %83 = arith.subf %82, %cst_16 : f32
    %84 = arith.subf %79, %82 : f32
    %85 = vector.broadcast %84 : f32 to vector<1x128xf32>
    %86 = arith.mulf %85, %16 : vector<1x128xf32>
    %87 = vector.broadcast %83 : f32 to vector<1x128xf32>
    %88 = arith.addf %87, %86 : vector<1x128xf32>
    %cst_17 = arith.constant 0.000000e+00 : f32
    %89 = vector.broadcast %cst_17 : f32 to vector<256x128xf32>
    %90 = arith.maximumf %76, %89 : vector<256x128xf32>
    %91 = vector.broadcast %88 : vector<1x128xf32> to vector<256x128xf32>
    %92 = arith.minimumf %90, %91 : vector<256x128xf32>
    %c0_18 = arith.constant 0 : index
    %c0_19 = arith.constant 0 : index
    %93 = vector.load %arg8[%c0_18, %c0_19] : memref<256x128xf32, #tpu.memory_space<vmem>>, vector<256x128xf32>
    tpu.vector_store %arg8[%c0_18, %c0_19], %92 {strides = array<i32>} : memref<256x128xf32, #tpu.memory_space<vmem>>, vector<256x128xf32>,
    return
  }
  func.func @transform_0(%arg0: i32, %arg1: i32, %arg2: memref<2x2xi32, #tpu.memory_space<smem>>) -> (i32, i32) {
    %c1_i32 = arith.constant 1 : i32
    %0 = arith.muli %arg0, %c1_i32 : i32
    %1 = arith.addi %0, %arg1 : i32
    %c0_i32 = arith.constant 0 : i32
    %c0_i32_0 = arith.constant 0 : i32
    return %1, %c0_i32 : i32, i32
  }
  func.func @transform_1(%arg0: i32, %arg1: i32, %arg2: memref<2x2xi32, #tpu.memory_space<smem>>) -> (i32, i32) {
    %c1_i32 = arith.constant 1 : i32
    %0 = arith.muli %arg0, %c1_i32 : i32
    %1 = arith.addi %0, %arg1 : i32
    %c0_i32 = arith.constant 0 : i32
    %c0_i32_0 = arith.constant 0 : i32
    return %1, %c0_i32 : i32, i32
  }
  func.func @transform_2(%arg0: i32, %arg1: i32, %arg2: memref<2x2xi32, #tpu.memory_space<smem>>) -> (i32, i32) {
    %c1_i32 = arith.constant 1 : i32
    %0 = arith.muli %arg0, %c1_i32 : i32
    %1 = arith.addi %0, %arg1 : i32
    %c0_i32 = arith.constant 0 : i32
    %c0_i32_0 = arith.constant 0 : i32
    return %1, %c0_i32 : i32, i32
  }
  func.func @transform_3(%arg0: i32, %arg1: i32, %arg2: memref<2x2xi32, #tpu.memory_space<smem>>) -> (i32, i32) {
    %c0_i32 = arith.constant 0 : i32
    %c0_i32_0 = arith.constant 0 : i32
    %c0_i32_1 = arith.constant 0 : i32
    return %c0_i32, %c0_i32_0 : i32, i32
  }
  func.func @transform_4(%arg0: i32, %arg1: i32, %arg2: memref<2x2xi32, #tpu.memory_space<smem>>) -> (i32, i32) {
    %c1_i32 = arith.constant 1 : i32
    %0 = arith.muli %arg0, %c1_i32 : i32
    %1 = arith.addi %0, %arg1 : i32
    %c0_i32 = arith.constant 0 : i32
    %c0_i32_0 = arith.constant 0 : i32
    return %1, %c0_i32 : i32, i32
  }
  func.func @transform_5(%arg0: i32, %arg1: i32, %arg2: memref<2x2xi32, #tpu.memory_space<smem>>) -> (i32, i32) {
    %c1_i32 = arith.constant 1 : i32
    %0 = arith.muli %arg0, %c1_i32 : i32
    %1 = arith.addi %0, %arg1 : i32
    %c0_i32 = arith.constant 0 : i32
    %c0_i32_0 = arith.constant 0 : i32
    return %1, %c0_i32 : i32, i32
  }
}

</mosaic_0001>

<bundles_post_ra>
// kernel: tpu_custom_call.1
= control target key start
LH: loop header
LB: loop body
LE: loop exit
PB: predicated region body
PF: predicated region fallthrough
CT: control target
= control target key end

     0   :  { %s6681_s0 = inlined_call_operand.vmem [shape: s32[2,2], index: 0, kind: input, shape index: {}]   ;;  %s6682_s1 = inlined_call_operand.vmem [shape: f32[512,32], index: 1, kind: input, shape index: {}]   ;;  %s6683_s2 = inlined_call_operand.vmem [shape: f32[512,128], index: 2, kind: input, shape index: {}]   ;;  %s6684_s3 = inlined_call_operand.vmem [shape: f32[512,4], index: 3, kind: input, shape index: {}]   ;;  %s6685_s4 = inlined_call_operand.vmem [shape: f32[8,128], index: 4, kind: input, shape index: {}]   ;;  %s6686_s5 = inlined_call_operand.vmem [shape: bf16[512,32], index: 5, kind: output, shape index: {0}]   ;;  %s6687_s6 = inlined_call_operand.hbm [shape: f32[512,128], index: 6, kind: output, shape index: {1}]  }
   0x1   :  { %s12_s23 = sshll.u32 %s6681_s0, 4  ;;  %s13_s23 = int_to_ptr.vmem [resolvable:$true] %s12_s23 }
   0x2   :  { %s3750_s24 = scalar_lea.vmem %s13_s23, 32  ;;  %p3755_p1 = scmp.lt.s32.totalorder %s13_s23, %s13_s23 }
   0x3   :  { %p3751_p0 = scmp.ne.s32.totalorder %s13_s23, %s3750_s24  ;;  %p3756_p2 = scmp.lt.s32.totalorder %s3750_s24, %s3750_s24 }
   0x5   :  { %p3757_p3 = por %p3756_p2, %p3755_p1 }
   0x7   :  { %p3758_p4 = pnand %p3757_p3, %p3751_p0 }
   0x9   :  { %3761 = shalt.err (!%p3758_p4)  }
   0xa   :  { %s3842_s25 = smov [#allocation3]  }
   0xb   :  { %15 = dma.vmem_to_smem %s13_s23, 32, %s3842_s25, [#allocation2] }
   0xc   :  { %3812 = dma.done.wait [#allocation2], 32 }
   0xd   :  { %3813 = vsyncadd [#allocation2], 4294967264 }
   0xe   :  { %17 = sfence }
   0xf   :  { %18 = vsyncpa [#allocation5], 0 }
  0x10   :  { %20 = vsyncpa [#allocation5 + $0x1], 0  ;;  %s3891_s26 = smov 0   ;;  %s3893_s27 = smov 0  }
  0x11   :  { %s3895_s0 = smov 0   ;;  %s3897_s28 = smov 0  }
  0x12   :  { %s3899_s29 = smov 0   ;;  %s3901_s30 = smov 0  }
  0x13 LB: > { %s3366_s7 = sadd.s32 4294967295, %s3840_s30   ;;  %s3367_s8 = sadd.s32 4294967294, %s3840_s30   ;;  %s3840_s30 = sphi %s3901_s30, %s26_s30   ;;  %s3836_s29 = sphi %s3899_s29, %s7040_s29   ;;  %s3832_s28 = sphi %s3897_s28, %s7039_s28   ;;  %s3828_s0 = sphi %s3895_s0, %s7038_s0   ;;  %s3824_s27 = sphi %s3893_s27, %s7037_s27   ;;  %s3820_s26 = sphi %s3891_s26, %s7036_s26  }
  0x14   : > { %s38_s9 = sadd.s32 1, %s3836_s29  ;;  %s180_s10 = sadd.s32 1, %s3828_s0 }
  0x15   : > { %p40_p5 = scmp.ge.s32.totalorder %s38_s9, 2  ;;  %p190_p6 = scmp.ne.s32.totalorder %s3828_s0, %s3824_s27 }
  0x16   : > { %p191_p7 = scmp.eq.s32.totalorder %s3366_s7, 1  ;;  %p196_p8 = scmp.ne.s32.totalorder %s3824_s27, %s3820_s26 }
  0x17   : > { %s7042_s9 = smov (%p40_p5, %s38_s9), 0  ;;  %p197_p10 = scmp.eq.s32.totalorder %s3367_s8, 1 }
  0x18   : > { %p3931_p9 = por %p191_p7, %p190_p6  ;;  %s177_s12 = ssub.s32 %s3836_s29, %s7042_s9 }
  0x19   : > { %p3370_p11 = scmp.ge.s32.totalorder %s3840_s30, 1  ;;  %p178_p12 = scmp.eq.s32.totalorder %s177_s12, 0 }
  0x1a   : > { %p3938_p13 = por %p197_p10, %p196_p8  ;;  %p251_p0 = scmp.lt.s32.totalorder %s3840_s30, 3 }
  0x1b   : > { %s3944_s14 = scalar_select %p178_p12, %s3828_s0, %s180_s10  }
  0x1c   : > { %p252_p1 = pnand %p3370_p11, %p251_p0 }
  0x1e   : > { %255 = sbr.rel (%p252_p1) target bundleno = 1295 (0x50f), region = 36 }
  0x23   : > { %s3372_s15 = sshll.u32 %s3832_s28, 5  ;;  %vm364_vm0 = vcmask 261120   ;;  %s3843_s23 = smov 2   ;;  %vm845_vm1 = vcmask 257024  }
  0x24   : > { %p300_p2 = scmp.lt.s32.totalorder %s3372_s15, 63  ;;  %s3844_s24 = smov 126  }
  0x25   : > { %s3846_s12 = smov 127  }
  0x26   : > { %s7044_s15 = smov (!%p300_p2, %s3372_s15), 63 }
  0x27   : > { %s3950_s16 = sshll.u32 %s7044_s15, 3  ;;  %s3379_s25 = sshll.u32 %s7044_s15, 2 }
  0x28   : > { %s3956_s19 = scalar_lea.vmem %s6682_s1, %s3950_s16  ;;  %s4122_s22 = scalar_lea.vmem %s6684_s3, %s3950_s16 }
  0x29   : > { %v3959_v0 = vld [vmem:[%s3956_s19] sm:$0xff]  ;;  %v3962_v1 = vld [vmem:[%s3956_s19 + $0x10] sm:$0xff]  ;;  %v3965_v2 = vld [vmem:[%s3956_s19 + $0x8] sm:$0xff]  ;;  %s4514_s10 = scalar_lea.vmem %s6686_s5, %s3379_s25  ;;  %s4885_s18 = scalar_lea.vmem %s6683_s2, %s3950_s16 }
  0x2a   : > { %v365_v3 = vsel %vm364_vm0, %v3959_v0, -inf  ;;  %v371_v4 = vsel %vm364_vm0, %v3962_v1, -inf  ;;  %v3972_v5 = vld [vmem:[%s3956_s19 + $0x18] sm:$0xff]  ;;  %v368_v6 = vsel %vm364_vm0, %v3965_v2, -inf  ;;  %v3979_v8 = vld [vmem:[%s3956_s19 + $0x20] sm:$0xff]  ;;  %v3982_v9 = vld [vmem:[%s3956_s19 + $0x28] sm:$0xff] }
  0x2b   : > { %366 = vmax.xlane.f32.xlu0 %v365_v3  ;;  %372 = vmax.xlane.f32.xlu1 %v371_v4  ;;  %v374_v7 = vsel %vm364_vm0, %v3972_v5, -inf  ;;  %v377_v10 = vsel %vm364_vm0, %v3979_v8, -inf  ;;  %v380_v11 = vsel %vm364_vm0, %v3982_v9, -inf  ;;  %v3989_v12 = vld [vmem:[%s3956_s19 + $0x30] sm:$0xff]  ;;  %v3992_v13 = vld [vmem:[%s3956_s19 + $0x38] sm:$0xff]  ;;  %v3999_v16 = vld [vmem:[%s3956_s19 + $0x40] sm:$0xff] }
  0x2c   : > { %v383_v14 = vsel %vm364_vm0, %v3989_v12, -inf  ;;  %v386_v15 = vsel %vm364_vm0, %v3992_v13, -inf  ;;  %v4002_v17 = vld [vmem:[%s3956_s19 + $0x48] sm:$0xff]  ;;  %v389_v18 = vsel %vm364_vm0, %v3999_v16, -inf  ;;  %v4009_v20 = vld [vmem:[%s3956_s19 + $0x50] sm:$0xff]  ;;  %v4012_v21 = vld [vmem:[%s3956_s19 + $0x58] sm:$0xff] }
  0x2d   : > { %v392_v19 = vsel %vm364_vm0, %v4002_v17, -inf  ;;  %v395_v22 = vsel %vm364_vm0, %v4009_v20, -inf  ;;  %v398_v23 = vsel %vm364_vm0, %v4012_v21, -inf  ;;  %v4019_v24 = vld [vmem:[%s3956_s19 + $0x60] sm:$0xff]  ;;  %v4022_v25 = vld [vmem:[%s3956_s19 + $0x68] sm:$0xff]  ;;  %v4029_v28 = vld [vmem:[%s3956_s19 + $0x70] sm:$0xff] }
  0x2e   : > { %v401_v26 = vsel %vm364_vm0, %v4019_v24, -inf  ;;  %v404_v27 = vsel %vm364_vm0, %v4022_v25, -inf  ;;  %v4032_v29 = vld [vmem:[%s3956_s19 + $0x78] sm:$0xff]  ;;  %v407_v30 = vsel %vm364_vm0, %v4029_v28, -inf  ;;  %v4039_v32 = vld [vmem:[%s3956_s19 + $0x80] sm:$0xff]  ;;  %v4042_v33 = vld [vmem:[%s3956_s19 + $0x88] sm:$0xff] }
  0x2f   : > { %369 = vmax.xlane.f32.xlu0 %v368_v6  ;;  %375 = vmax.xlane.f32.xlu1 %v374_v7  ;;  %v410_v31 = vsel %vm364_vm0, %v4032_v29, -inf  ;;  %v413_v34 = vsel %vm364_vm0, %v4039_v32, -inf  ;;  %v416_v35 = vsel %vm364_vm0, %v4042_v33, -inf  ;;  %v4049_v36 = vld [vmem:[%s3956_s19 + $0x90] sm:$0xff]  ;;  %v4052_v37 = vld [vmem:[%s3956_s19 + $0x98] sm:$0xff]  ;;  %v4059_v40 = vld [vmem:[%s3956_s19 + $0xa0] sm:$0xff] }
  0x30   : > { %v419_v38 = vsel %vm364_vm0, %v4049_v36, -inf  ;;  %v422_v39 = vsel %vm364_vm0, %v4052_v37, -inf  ;;  %v4062_v41 = vld [vmem:[%s3956_s19 + $0xa8] sm:$0xff]  ;;  %v425_v42 = vsel %vm364_vm0, %v4059_v40, -inf  ;;  %v4069_v44 = vld [vmem:[%s3956_s19 + $0xb0] sm:$0xff]  ;;  %v4072_v45 = vld [vmem:[%s3956_s19 + $0xb8] sm:$0xff] }
  0x31   : > { %v428_v43 = vsel %vm364_vm0, %v4062_v41, -inf  ;;  %v431_v46 = vsel %vm364_vm0, %v4069_v44, -inf  ;;  %v434_v47 = vsel %vm364_vm0, %v4072_v45, -inf  ;;  %v4079_v48 = vld [vmem:[%s3956_s19 + $0xc0] sm:$0xff]  ;;  %v4082_v49 = vld [vmem:[%s3956_s19 + $0xc8] sm:$0xff]  ;;  %v4089_v52 = vld [vmem:[%s3956_s19 + $0xd0] sm:$0xff] }
  0x32   : > { %v437_v50 = vsel %vm364_vm0, %v4079_v48, -inf  ;;  %v440_v51 = vsel %vm364_vm0, %v4082_v49, -inf  ;;  %v4092_v53 = vld [vmem:[%s3956_s19 + $0xd8] sm:$0xff]  ;;  %v443_v54 = vsel %vm364_vm0, %v4089_v52, -inf  ;;  %v4099_v56 = vld [vmem:[%s3956_s19 + $0xe0] sm:$0xff]  ;;  %v4102_v57 = vld [vmem:[%s3956_s19 + $0xe8] sm:$0xff] }
  0x33   : > { %378 = vmax.xlane.f32.xlu0 %v377_v10  ;;  %381 = vmax.xlane.f32.xlu1 %v380_v11  ;;  %v446_v55 = vsel %vm364_vm0, %v4092_v53, -inf  ;;  %v449_v58 = vsel %vm364_vm0, %v4099_v56, -inf  ;;  %v452_v59 = vsel %vm364_vm0, %v4102_v57, -inf  ;;  %v4109_v60 = vld [vmem:[%s3956_s19 + $0xf0] sm:$0xff]  ;;  %v4112_v61 = vld [vmem:[%s3956_s19 + $0xf8] sm:$0xff]  ;;  %v4125_v3 = vld [vmem:[%s4122_s22 + $0x8] sm:$0xff] }
  0x34   : > { %v455_v62 = vsel %vm364_vm0, %v4109_v60, -inf  ;;  %v458_v63 = vsel %vm364_vm0, %v4112_v61, -inf  ;;  %v4130_v4 = vld [vmem:[%s4122_s22 + $0x10] sm:$0xff]  ;;  %v4133_v6 = vld [vmem:[%s4122_s22] sm:$0xff]  ;;  %v4140_v7 = vld [vmem:[%s4122_s22 + $0x18] sm:$0xff]  ;;  %s3412_s16 = sshll.u32 %s3832_s28, 7 }
  0x35   : > { %v4143_v10 = vld [vmem:[%s4122_s22 + $0x20] sm:$0xff]  ;;  %v4150_v11 = vld [vmem:[%s4122_s22 + $0x28] sm:$0xff]  ;;  %s3110_s21 = sadd.s32 1, %s3412_s16  ;;  %s295_s15 = sand.u32 1, %s3824_s27  }
  0x36   : > { %s3371_s17 = sshll.u32 %s295_s15, 8  ;;  %s3451_s19 = sshll.u32 %s3832_s28, 12 }
  0x37   : > { %384 = vmax.xlane.f32.xlu0 %v383_v14  ;;  %387 = vmax.xlane.f32.xlu1 %v386_v15  ;;  %v4153_v14 = vld [vmem:[%s4122_s22 + $0x30] sm:$0xff]  ;;  %v4160_v15 = vld [vmem:[%s4122_s22 + $0x38] sm:$0xff] }
  0x3b   : > { %390 = vmax.xlane.f32.xlu0 %v389_v18  ;;  %393 = vmax.xlane.f32.xlu1 %v392_v19  ;;  %v4163_v18 = vld [vmem:[%s4122_s22 + $0x40] sm:$0xff]  ;;  %v4170_v19 = vld [vmem:[%s4122_s22 + $0x48] sm:$0xff] }
  0x3f   : > { %396 = vmax.xlane.f32.xlu0 %v395_v22  ;;  %399 = vmax.xlane.f32.xlu1 %v398_v23  ;;  %v4173_v22 = vld [vmem:[%s4122_s22 + $0x50] sm:$0xff]  ;;  %v4180_v23 = vld [vmem:[%s4122_s22 + $0x58] sm:$0xff] }
  0x43   : > { %402 = vmax.xlane.f32.xlu0 %v401_v26  ;;  %405 = vmax.xlane.f32.xlu1 %v404_v27  ;;  %v4183_v26 = vld [vmem:[%s4122_s22 + $0x60] sm:$0xff] }
  0x47   : > { %408 = vmax.xlane.f32.xlu0 %v407_v30  ;;  %411 = vmax.xlane.f32.xlu1 %v410_v31 }
  0x4b   : > { %414 = vmax.xlane.f32.xlu0 %v413_v34  ;;  %417 = vmax.xlane.f32.xlu1 %v416_v35 }
  0x4f   : > { %420 = vmax.xlane.f32.xlu0 %v419_v38  ;;  %423 = vmax.xlane.f32.xlu1 %v422_v39 }
  0x53   : > { %426 = vmax.xlane.f32.xlu0 %v425_v42  ;;  %429 = vmax.xlane.f32.xlu1 %v428_v43 }
  0x57   : > { %432 = vmax.xlane.f32.xlu0 %v431_v46  ;;  %435 = vmax.xlane.f32.xlu1 %v434_v47 }
  0x5b   : > { %438 = vmax.xlane.f32.xlu0 %v437_v50  ;;  %441 = vmax.xlane.f32.xlu1 %v440_v51 }
  0x5f   : > { %444 = vmax.xlane.f32.xlu0 %v443_v54  ;;  %447 = vmax.xlane.f32.xlu1 %v446_v55 }
  0x63   : > { %450 = vmax.xlane.f32.xlu0 %v449_v58  ;;  %453 = vmax.xlane.f32.xlu1 %v452_v59 }
  0x67   : > { %456 = vmax.xlane.f32.xlu0 %v455_v62  ;;  %459 = vmax.xlane.f32.xlu1 %v458_v63 }
  0x78   : > { %977 = vrot.lane.b32.xlu1 %v4125_v3, %s3843_s23 }
  0x7c   : > { %979 = vrot.lane.b32.xlu1 %v4130_v4, %s3843_s23 }
  0x7d   : > { %975 = vrot.lane.b32.xlu0 %v4133_v6, %s3843_s23 }
  0x80   : > { %981 = vrot.lane.b32.xlu1 %v4140_v7, %s3843_s23 }
  0x81   : > { %983 = vrot.lane.b32.xlu0 %v4143_v10, %s3843_s23 }
  0x84   : > { %985 = vrot.lane.b32.xlu1 %v4150_v11, %s3843_s23 }
  0x85   : > { %987 = vrot.lane.b32.xlu0 %v4153_v14, %s3843_s23 }
  0x88   : > { %989 = vrot.lane.b32.xlu1 %v4160_v15, %s3843_s23 }
  0x89   : > { %991 = vrot.lane.b32.xlu0 %v4163_v18, %s3843_s23 }
  0x8c   : > { %993 = vrot.lane.b32.xlu1 %v4170_v19, %s3843_s23 }
  0x8d   : > { %995 = vrot.lane.b32.xlu0 %v4173_v22, %s3843_s23 }
  0x90   : > { %997 = vrot.lane.b32.xlu1 %v4180_v23, %s3843_s23 }
  0x91   : > { %999 = vrot.lane.b32.xlu0 %v4183_v26, %s3843_s23 }
  0xb4   : > { %v367_v27 = vpop.xlane.xlu0 %366  ;;  %v373_v30 = vpop.xlane.xlu1 %372 }
  0xb5   : > { %v461_v31 = vsub.f32 %v3959_v0, %v367_v27  ;;  %v463_v34 = vsub.f32 %v3962_v1, %v373_v30 }
  0xb7   : > { %v493_v35 = vmul.f32 1.442695, %v461_v31  ;;  %v497_v38 = vmul.f32 1.442695, %v463_v34 }
  0xb8   : > { %v370_v39 = vpop.xlane.xlu0 %369  ;;  %v376_v42 = vpop.xlane.xlu1 %375 }
  0xb9   : > { %3525 = vpow2.f32 %v493_v35  ;;  %v462_v43 = vsub.f32 %v3965_v2, %v370_v39  ;;  %v464_v46 = vsub.f32 %v3972_v5, %v376_v42 }
  0xba   : > { %3527 = vpow2.f32 %v497_v38 }
  0xbb   : > { %v495_v47 = vmul.f32 1.442695, %v462_v43  ;;  %v499_v50 = vmul.f32 1.442695, %v464_v46 }
  0xbc   : > { %v379_v51 = vpop.xlane.xlu0 %378  ;;  %v382_v54 = vpop.xlane.xlu1 %381 }
  0xbd   : > { %3529 = vpow2.f32 %v495_v47  ;;  %v465_v55 = vsub.f32 %v3979_v8, %v379_v51  ;;  %v466_v0 = vsub.f32 %v3982_v9, %v382_v54 }
  0xbe   : > { %3531 = vpow2.f32 %v499_v50 }
  0xbf   : > { %v501_v1 = vmul.f32 1.442695, %v465_v55  ;;  %v503_v58 = vmul.f32 1.442695, %v466_v0 }
  0xc0   : > { %v385_v59 = vpop.xlane.xlu0 %384  ;;  %v388_v62 = vpop.xlane.xlu1 %387 }
  0xc1   : > { %3533 = vpow2.f32 %v501_v1  ;;  %v467_v2 = vsub.f32 %v3989_v12, %v385_v59  ;;  %v468_v5 = vsub.f32 %v3992_v13, %v388_v62 }
  0xc2   : > { %3535 = vpow2.f32 %v503_v58 }
  0xc3   : > { %v505_v63 = vmul.f32 1.442695, %v467_v2  ;;  %v507_v27 = vmul.f32 1.442695, %v468_v5 }
  0xc4   : > { %v391_v30 = vpop.xlane.xlu0 %390  ;;  %v394_v31 = vpop.xlane.xlu1 %393 }
  0xc5   : > { %3537 = vpow2.f32 %v505_v63  ;;  %v469_v8 = vsub.f32 %v3999_v16, %v391_v30  ;;  %v470_v9 = vsub.f32 %v4002_v17, %v394_v31 }
  0xc6   : > { %v4199_v34 = vpop.eup %3525  ;;  %3539 = vpow2.f32 %v507_v27 }
  0xc7   : > { %v4201_v35 = vpop.eup %3527  ;;  %v509_v38 = vmul.f32 1.442695, %v469_v8  ;;  %v511_v39 = vmul.f32 1.442695, %v470_v9  ;;  %v557_v12 = vsel %vm364_vm0, %v4199_v34, 0.0 }
  0xc8   : > { %558 = vadd.xlane.f32.xlu0 %v557_v12  ;;  %v397_v13 = vpop.xlane.xlu0 %396  ;;  %v400_v42 = vpop.xlane.xlu1 %399  ;;  %v563_v17 = vsel %vm364_vm0, %v4201_v35, 0.0 }
  0xc9   : > { %3541 = vpow2.f32 %v509_v38  ;;  %v471_v43 = vsub.f32 %v4009_v20, %v397_v13  ;;  %v472_v16 = vsub.f32 %v4012_v21, %v400_v42 }
  0xca   : > { %v4209_v46 = vpop.eup %3529  ;;  %3543 = vpow2.f32 %v511_v39 }
  0xcb   : > { %v4211_v47 = vpop.eup %3531  ;;  %v513_v50 = vmul.f32 1.442695, %v471_v43  ;;  %v515_v51 = vmul.f32 1.442695, %v472_v16  ;;  %v560_v54 = vsel %vm364_vm0, %v4209_v46, 0.0 }
  0xcc   : > { %564 = vadd.xlane.f32.xlu0 %v563_v17  ;;  %561 = vadd.xlane.f32.xlu1 %v560_v54  ;;  %v403_v55 = vpop.xlane.xlu0 %402  ;;  %v406_v0 = vpop.xlane.xlu1 %405  ;;  %v566_v1 = vsel %vm364_vm0, %v4211_v47, 0.0 }
  0xcd   : > { %3545 = vpow2.f32 %v513_v50  ;;  %v473_v20 = vsub.f32 %v4019_v24, %v403_v55  ;;  %v474_v21 = vsub.f32 %v4022_v25, %v406_v0 }
  0xce   : > { %v4219_v58 = vpop.eup %3533  ;;  %3547 = vpow2.f32 %v515_v51 }
  0xcf   : > { %v4221_v59 = vpop.eup %3535  ;;  %v517_v62 = vmul.f32 1.442695, %v473_v20  ;;  %v519_v2 = vmul.f32 1.442695, %v474_v21  ;;  %v569_v5 = vsel %vm364_vm0, %v4219_v58, 0.0 }
  0xd0   : > { %567 = vadd.xlane.f32.xlu1 %v566_v1  ;;  %570 = vadd.xlane.f32.xlu0 %v569_v5  ;;  %v409_v63 = vpop.xlane.xlu0 %408  ;;  %v412_v27 = vpop.xlane.xlu1 %411  ;;  %v572_v30 = vsel %vm364_vm0, %v4221_v59, 0.0 }
  0xd1   : > { %3549 = vpow2.f32 %v517_v62  ;;  %v475_v24 = vsub.f32 %v4029_v28, %v409_v63  ;;  %v476_v25 = vsub.f32 %v4032_v29, %v412_v27 }
  0xd2   : > { %v4229_v31 = vpop.eup %3537  ;;  %3551 = vpow2.f32 %v519_v2 }
  0xd3   : > { %v4231_v8 = vpop.eup %3539  ;;  %v521_v9 = vmul.f32 1.442695, %v475_v24  ;;  %v523_v38 = vmul.f32 1.442695, %v476_v25  ;;  %v575_v39 = vsel %vm364_vm0, %v4229_v31, 0.0 }
  0xd4   : > { %573 = vadd.xlane.f32.xlu1 %v572_v30  ;;  %576 = vadd.xlane.f32.xlu0 %v575_v39  ;;  %v415_v12 = vpop.xlane.xlu0 %414  ;;  %v418_v13 = vpop.xlane.xlu1 %417  ;;  %v578_v42 = vsel %vm364_vm0, %v4231_v8, 0.0 }
  0xd5   : > { %3553 = vpow2.f32 %v521_v9  ;;  %v477_v28 = vsub.f32 %v4039_v32, %v415_v12  ;;  %v478_v29 = vsub.f32 %v4042_v33, %v418_v13 }
  0xd6   : > { %v4239_v43 = vpop.eup %3541  ;;  %3555 = vpow2.f32 %v523_v38 }
  0xd7   : > { %v4241_v16 = vpop.eup %3543  ;;  %v525_v17 = vmul.f32 1.442695, %v477_v28  ;;  %v527_v50 = vmul.f32 1.442695, %v478_v29  ;;  %v581_v51 = vsel %vm364_vm0, %v4239_v43, 0.0 }
  0xd8   : > { %579 = vadd.xlane.f32.xlu1 %v578_v42  ;;  %582 = vadd.xlane.f32.xlu0 %v581_v51  ;;  %v421_v54 = vpop.xlane.xlu0 %420  ;;  %v424_v55 = vpop.xlane.xlu1 %423  ;;  %v584_v0 = vsel %vm364_vm0, %v4241_v16, 0.0 }
  0xd9   : > { %3557 = vpow2.f32 %v525_v17  ;;  %v479_v32 = vsub.f32 %v4049_v36, %v421_v54  ;;  %v480_v33 = vsub.f32 %v4052_v37, %v424_v55 }
  0xda   : > { %v4249_v20 = vpop.eup %3545  ;;  %3559 = vpow2.f32 %v527_v50 }
  0xdb   : > { %v4251_v21 = vpop.eup %3547  ;;  %v529_v1 = vmul.f32 1.442695, %v479_v32  ;;  %v531_v62 = vmul.f32 1.442695, %v480_v33  ;;  %v587_v2 = vsel %vm364_vm0, %v4249_v20, 0.0 }
  0xdc   : > { %585 = vadd.xlane.f32.xlu1 %v584_v0  ;;  %588 = vadd.xlane.f32.xlu0 %v587_v2  ;;  %v427_v5 = vpop.xlane.xlu0 %426  ;;  %v430_v63 = vpop.xlane.xlu1 %429  ;;  %v590_v27 = vsel %vm364_vm0, %v4251_v21, 0.0 }
  0xdd   : > { %3561 = vpow2.f32 %v529_v1  ;;  %v481_v36 = vsub.f32 %v4059_v40, %v427_v5  ;;  %v482_v37 = vsub.f32 %v4062_v41, %v430_v63 }
  0xde   : > { %v4259_v24 = vpop.eup %3549  ;;  %3563 = vpow2.f32 %v531_v62 }
  0xdf   : > { %v4261_v25 = vpop.eup %3551  ;;  %v533_v30 = vmul.f32 1.442695, %v481_v36  ;;  %v535_v9 = vmul.f32 1.442695, %v482_v37  ;;  %v593_v38 = vsel %vm364_vm0, %v4259_v24, 0.0 }
  0xe0   : > { %591 = vadd.xlane.f32.xlu1 %v590_v27  ;;  %594 = vadd.xlane.f32.xlu0 %v593_v38  ;;  %v433_v39 = vpop.xlane.xlu0 %432  ;;  %v436_v12 = vpop.xlane.xlu1 %435  ;;  %v596_v13 = vsel %vm364_vm0, %v4261_v25, 0.0 }
  0xe1   : > { %3565 = vpow2.f32 %v533_v30  ;;  %v483_v40 = vsub.f32 %v4069_v44, %v433_v39  ;;  %v484_v41 = vsub.f32 %v4072_v45, %v436_v12 }
  0xe2   : > { %v4269_v28 = vpop.eup %3553  ;;  %3567 = vpow2.f32 %v535_v9 }
  0xe3   : > { %v4271_v29 = vpop.eup %3555  ;;  %v537_v42 = vmul.f32 1.442695, %v483_v40  ;;  %v539_v17 = vmul.f32 1.442695, %v484_v41  ;;  %v599_v50 = vsel %vm364_vm0, %v4269_v28, 0.0 }
  0xe4   : > { %597 = vadd.xlane.f32.xlu1 %v596_v13  ;;  %600 = vadd.xlane.f32.xlu0 %v599_v50  ;;  %v439_v51 = vpop.xlane.xlu0 %438  ;;  %v442_v54 = vpop.xlane.xlu1 %441  ;;  %v602_v55 = vsel %vm364_vm0, %v4271_v29, 0.0 }
  0xe5   : > { %3569 = vpow2.f32 %v537_v42  ;;  %v485_v44 = vsub.f32 %v4079_v48, %v439_v51  ;;  %v486_v45 = vsub.f32 %v4082_v49, %v442_v54 }
  0xe6   : > { %v4279_v32 = vpop.eup %3557  ;;  %3571 = vpow2.f32 %v539_v17 }
  0xe7   : > { %v4281_v33 = vpop.eup %3559  ;;  %v541_v0 = vmul.f32 1.442695, %v485_v44  ;;  %v543_v1 = vmul.f32 1.442695, %v486_v45  ;;  %v605_v62 = vsel %vm364_vm0, %v4279_v32, 0.0 }
  0xe8   : > { %603 = vadd.xlane.f32.xlu1 %v602_v55  ;;  %606 = vadd.xlane.f32.xlu0 %v605_v62  ;;  %v445_v2 = vpop.xlane.xlu0 %444  ;;  %v448_v5 = vpop.xlane.xlu1 %447  ;;  %v608_v63 = vsel %vm364_vm0, %v4281_v33, 0.0 }
  0xe9   : > { %3573 = vpow2.f32 %v541_v0  ;;  %v487_v48 = vsub.f32 %v4089_v52, %v445_v2  ;;  %v488_v49 = vsub.f32 %v4092_v53, %v448_v5 }
  0xea   : > { %v4289_v36 = vpop.eup %3561  ;;  %3575 = vpow2.f32 %v543_v1 }
  0xeb   : > { %v4291_v37 = vpop.eup %3563  ;;  %v545_v27 = vmul.f32 1.442695, %v487_v48  ;;  %v547_v30 = vmul.f32 1.442695, %v488_v49  ;;  %v611_v9 = vsel %vm364_vm0, %v4289_v36, 0.0 }
  0xec   : > { %609 = vadd.xlane.f32.xlu1 %v608_v63  ;;  %612 = vadd.xlane.f32.xlu0 %v611_v9  ;;  %v451_v38 = vpop.xlane.xlu0 %450  ;;  %v454_v39 = vpop.xlane.xlu1 %453  ;;  %v614_v12 = vsel %vm364_vm0, %v4291_v37, 0.0 }
  0xed   : > { %3577 = vpow2.f32 %v545_v27  ;;  %v489_v52 = vsub.f32 %v4099_v56, %v451_v38  ;;  %v490_v53 = vsub.f32 %v4102_v57, %v454_v39 }
  0xee   : > { %v4299_v40 = vpop.eup %3565  ;;  %3579 = vpow2.f32 %v547_v30 }
  0xef   : > { %v4301_v41 = vpop.eup %3567  ;;  %v549_v13 = vmul.f32 1.442695, %v489_v52  ;;  %v551_v42 = vmul.f32 1.442695, %v490_v53  ;;  %v617_v17 = vsel %vm364_vm0, %v4299_v40, 0.0 }
  0xf0   : > { %615 = vadd.xlane.f32.xlu1 %v614_v12  ;;  %618 = vadd.xlane.f32.xlu0 %v617_v17  ;;  %v457_v50 = vpop.xlane.xlu0 %456  ;;  %v460_v51 = vpop.xlane.xlu1 %459  ;;  %v620_v54 = vsel %vm364_vm0, %v4301_v41, 0.0  ;;  %v4353_v17 = vld [vmem:[%s4122_s22 + $0x70] sm:$0xff] }
  0xf1   : > { %3581 = vpow2.f32 %v549_v13  ;;  %v491_v56 = vsub.f32 %v4109_v60, %v457_v50  ;;  %v492_v57 = vsub.f32 %v4112_v61, %v460_v51  ;;  %v4360_v50 = vld [vmem:[%s4122_s22 + $0x78] sm:$0xff]  ;;  %v4363_v51 = vld [vmem:[%s4122_s22 + $0x80] sm:$0xff] }
  0xf2   : > { %v4309_v44 = vpop.eup %3569  ;;  %3583 = vpow2.f32 %v551_v42  ;;  %v4350_v42 = vld [vmem:[%s4122_s22 + $0x68] sm:$0xff] }
  0xf3   : > { %v4311_v45 = vpop.eup %3571  ;;  %v553_v55 = vmul.f32 1.442695, %v491_v56  ;;  %v555_v0 = vmul.f32 1.442695, %v492_v57  ;;  %v623_v1 = vsel %vm364_vm0, %v4309_v44, 0.0  ;;  %v4370_v56 = vld [vmem:[%s4122_s22 + $0x88] sm:$0xff] }
  0xf4   : > { %621 = vadd.xlane.f32.xlu1 %v620_v54  ;;  %624 = vadd.xlane.f32.xlu0 %v623_v1  ;;  %v626_v60 = vsel %vm364_vm0, %v4311_v45, 0.0  ;;  %6756 = vst [vmem:[#allocation9_spill] sm:$0xff] %v4370_v56  ;;  %v4373_v57 = vld [vmem:[%s4122_s22 + $0x90] sm:$0xff]  ;;  %v4380_v54 = vld [vmem:[%s4122_s22 + $0x98] sm:$0xff]  ;;  %v4390_v1 = vld [vmem:[%s4122_s22 + $0xa8] sm:$0xff] }
  0xf5   : > { %3585 = vpow2.f32 %v553_v55  ;;  %6757 = vst [vmem:[#allocation10_spill] sm:$0xff] %v4380_v54  ;;  %v4383_v55 = vld [vmem:[%s4122_s22 + $0xa0] sm:$0xff]  ;;  %6759 = vst [vmem:[#allocation12_spill] sm:$0xff] %v4390_v1 }
  0xf6   : > { %v4317_v61 = vpop.eup %3573  ;;  %3587 = vpow2.f32 %v555_v0  ;;  %6758 = vst [vmem:[#allocation11_spill] sm:$0xff] %v4383_v55  ;;  %v978_v0 = vpop.permute.xlu1 %977 }
  0xf7   : > { %v4319_v62 = vpop.eup %3575  ;;  %v629_v2 = vsel %vm364_vm0, %v4317_v61, 0.0 }
  0xf8   : > { %627 = vadd.xlane.f32.xlu1 %v626_v60  ;;  %630 = vadd.xlane.f32.xlu0 %v629_v2  ;;  %v632_v5 = vsel %vm364_vm0, %v4319_v62, 0.0  ;;  %v4393_v60 = vld [vmem:[%s4122_s22 + $0xb0] sm:$0xff] }
  0xf9   : > { %6760 = vst [vmem:[#allocation13_spill] sm:$0xff] %v4393_v60 }
  0xfa   : > { %v4325_v48 = vpop.eup %3577  ;;  %v980_v2 = vpop.permute.xlu1 %979 }
  0xfb   : > { %v4327_v49 = vpop.eup %3579  ;;  %v635_v63 = vsel %vm364_vm0, %v4325_v48, 0.0 }
  0xfc   : > { %633 = vadd.xlane.f32.xlu1 %v632_v5  ;;  %636 = vadd.xlane.f32.xlu0 %v635_v63  ;;  %v638_v27 = vsel %vm364_vm0, %v4327_v49, 0.0  ;;  %v4400_v5 = vld [vmem:[%s4122_s22 + $0xb8] sm:$0xff]  ;;  %v976_v63 = vpop.permute.xlu0 %975 }
  0xfd   : > { %6761 = vst [vmem:[#allocation14_spill] sm:$0xff] %v4400_v5 }
  0xfe   : > { %v4333_v30 = vpop.eup %3581 }
  0xff   : > { %v4335_v9 = vpop.eup %3583  ;;  %v641_v38 = vsel %vm364_vm0, %v4333_v30, 0.0 }
 0x100   : > { %639 = vadd.xlane.f32.xlu1 %v638_v27  ;;  %642 = vadd.xlane.f32.xlu0 %v641_v38  ;;  %v644_v39 = vsel %vm364_vm0, %v4335_v9, 0.0  ;;  %v4403_v27 = vld [vmem:[%s4122_s22 + $0xc0] sm:$0xff]  ;;  %v4410_v38 = vld [vmem:[%s4122_s22 + $0xc8] sm:$0xff] }
 0x101   : > { %6762 = vst [vmem:[#allocation15_spill] sm:$0xff] %v4403_v27  ;;  %6763 = vst [vmem:[#allocation16_spill] sm:$0xff] %v4410_v38 }
 0x102   : > { %v4341_v52 = vpop.eup %3585 }
 0x103   : > { %v4343_v53 = vpop.eup %3587  ;;  %v647_v12 = vsel %vm364_vm0, %v4341_v52, 0.0 }
 0x104   : > { %6755 = vst [vmem:[#allocation8_spill] sm:$0xff] %v4343_v53  ;;  %645 = vadd.xlane.f32.xlu1 %v644_v39  ;;  %648 = vadd.xlane.f32.xlu0 %v647_v12  ;;  %v650_v13 = vsel %vm364_vm0, %v4343_v53, 0.0  ;;  %v4413_v39 = vld [vmem:[%s4122_s22 + $0xd0] sm:$0xff]  ;;  %v982_v12 = vpop.permute.xlu1 %981 }
 0x105   : > { %6764 = vst [vmem:[#allocation17_spill] sm:$0xff] %v4413_v39 }
 0x108   : > { %651 = vadd.xlane.f32.xlu1 %v650_v13  ;;  %v984_v13 = vpop.permute.xlu0 %983 }
 0x10c   : > { %v988_v53 = vpop.permute.xlu0 %987 }
 0x119   : > { %1001 = vrot.lane.b32.xlu1 %v4350_v42, %s3843_s23 }
 0x11a   : > { %1003 = vrot.lane.b32.xlu0 %v4353_v17, %s3843_s23 }
 0x11d   : > { %1005 = vrot.lane.b32.xlu1 %v4360_v50, %s3843_s23 }
 0x11e   : > { %1007 = vrot.lane.b32.xlu0 %v4363_v51, %s3843_s23 }
 0x121   : > { %1009 = vrot.lane.b32.xlu1 %v4370_v56, %s3843_s23 }
 0x122   : > { %1011 = vrot.lane.b32.xlu0 %v4373_v57, %s3843_s23 }
 0x125   : > { %1013 = vrot.lane.b32.xlu1 %v4380_v54, %s3843_s23  ;;  %v4431_v54 = vld [vmem:[%s4122_s22 + $0xe8] sm:$0xff] }
 0x126   : > { %1015 = vrot.lane.b32.xlu0 %v4383_v55, %s3843_s23  ;;  %v4435_v55 = vld [vmem:[%s4122_s22 + $0xf0] sm:$0xff] }
 0x129   : > { %1017 = vrot.lane.b32.xlu1 %v4390_v1, %s3843_s23  ;;  %v4420_v1 = vld [vmem:[%s4122_s22 + $0xd8] sm:$0xff] }
 0x12a   : > { %1019 = vrot.lane.b32.xlu0 %v4393_v60, %s3843_s23  ;;  %6765 = vst [vmem:[#allocation18_spill] sm:$0xff] %v4420_v1  ;;  %v986_v60 = vpop.permute.xlu1 %985 }
 0x12d   : > { %1021 = vrot.lane.b32.xlu1 %v4400_v5, %s3843_s23  ;;  %v4423_v5 = vld [vmem:[%s4122_s22 + $0xe0] sm:$0xff] }
 0x12e   : > { %1023 = vrot.lane.b32.xlu0 %v4403_v27, %s3843_s23  ;;  %6766 = vst [vmem:[#allocation19_spill] sm:$0xff] %v4423_v5  ;;  %v1071_v27 = vsub.f32 %v4133_v6, %v976_v63  ;;  %v4445_v6 = vld [vmem:[%s4122_s22 + $0xf8] sm:$0xff] }
 0x130   : > { %v4438_v56 = vadd.f32 1.0, %v1071_v27 }
 0x131   : > { %1025 = vrot.lane.b32.xlu1 %v4410_v38, %s3843_s23  ;;  %v1072_v38 = vsub.f32 %v4125_v3, %v978_v0  ;;  %v990_v0 = vpop.permute.xlu1 %989 }
 0x132   : > { %1027 = vrot.lane.b32.xlu0 %v4413_v39, %s3843_s23  ;;  %v1073_v39 = vsub.f32 %v4130_v4, %v980_v2  ;;  %6767 = vst [vmem:[#allocation20_spill] sm:$0xff] %v4438_v56  ;;  %v1135_v4 = vmul.f32 0.5, %v4438_v56  ;;  %v992_v2 = vpop.permute.xlu0 %991 }
 0x133   : > { %v4447_v63 = vadd.f32 1.0, %v1072_v38  ;;  %v1076_v38 = vsub.f32 %v4150_v11, %v986_v60 }
 0x134   : > { %v4450_v3 = vadd.f32 1.0, %v1073_v39 }
 0x135   : > { %1029 = vrot.lane.b32.xlu1 %v4420_v1, %s3843_s23  ;;  %v1074_v1 = vsub.f32 %v4140_v7, %v982_v12  ;;  %v1136_v7 = vmul.f32 0.5, %v4447_v63  ;;  %v1077_v12 = vsub.f32 %v4153_v14, %v988_v53  ;;  %v4467_v56 = vadd.f32 1.0, %v1076_v38 }
 0x136   : > { %1031 = vrot.lane.b32.xlu0 %v4423_v5, %s3843_s23  ;;  %v1075_v5 = vsub.f32 %v4143_v10, %v984_v13  ;;  %v1137_v10 = vmul.f32 0.5, %v4450_v3  ;;  %v994_v13 = vpop.permute.xlu1 %993 }
 0x137   : > { %v4457_v27 = vadd.f32 1.0, %v1074_v1  ;;  %v1078_v1 = vsub.f32 %v4160_v15, %v990_v0  ;;  %v4471_v60 = vadd.f32 1.0, %v1077_v12  ;;  %v1080_v38 = vsub.f32 %v4170_v19, %v994_v13 }
 0x138   : > { %v4461_v39 = vadd.f32 1.0, %v1075_v5  ;;  %v1079_v5 = vsub.f32 %v4163_v18, %v992_v2 }
 0x139   : > { %1033 = vrot.lane.b32.xlu1 %v4431_v54, %s3843_s23  ;;  %v1138_v11 = vmul.f32 0.5, %v4457_v27  ;;  %v4477_v53 = vadd.f32 1.0, %v1078_v1  ;;  %v4487_v2 = vadd.f32 1.0, %v1080_v38 }
 0x13a   : > { %1035 = vrot.lane.b32.xlu0 %v4435_v55, %s3843_s23  ;;  %v1139_v14 = vmul.f32 0.5, %v4461_v39  ;;  %v998_v15 = vpop.permute.xlu1 %997  ;;  %v4481_v0 = vadd.f32 1.0, %v1079_v5 }
 0x13b   : > { %v1082_v1 = vsub.f32 %v4180_v23, %v998_v15  ;;  %v1142_v19 = vmul.f32 0.5, %v4477_v53 }
 0x13c   : > { %v1143_v5 = vmul.f32 0.5, %v4481_v0 }
 0x13d   : > { %1037 = vrot.lane.b32.xlu1 %v4445_v6, %s3843_s23 }
 0x13e   : > { %1199 = vrot.lane.b32.xlu0 %v1135_v4, %s3844_s24  ;;  %v996_v4 = vpop.permute.xlu0 %995 }
 0x13f   : > { %v1081_v12 = vsub.f32 %v4173_v22, %v996_v4  ;;  %v4497_v22 = vadd.f32 1.0, %v1082_v1  ;;  %v1144_v4 = vmul.f32 0.5, %v4487_v2 }
 0x141   : > { %1201 = vrot.lane.b32.xlu1 %v1136_v7, %s3844_s24  ;;  %v1140_v7 = vmul.f32 0.5, %v4467_v56  ;;  %v4491_v13 = vadd.f32 1.0, %v1081_v12 }
 0x142   : > { %1203 = vrot.lane.b32.xlu0 %v1137_v10, %s3844_s24  ;;  %v1141_v10 = vmul.f32 0.5, %v4471_v60  ;;  %v1000_v18 = vpop.permute.xlu0 %999 }
 0x143   : > { %v1145_v23 = vmul.f32 0.5, %v4491_v13 }
 0x145   : > { %1205 = vrot.lane.b32.xlu1 %v1138_v11, %s3844_s24  ;;  %v1083_v11 = vsub.f32 %v4183_v26, %v1000_v18  ;;  %v1146_v26 = vmul.f32 0.5, %v4497_v22 }
 0x146   : > { %1207 = vrot.lane.b32.xlu0 %v1139_v14, %s3844_s24 }
 0x147   : > { %v4500_v14 = vadd.f32 1.0, %v1083_v11 }
 0x149   : > { %1209 = vrot.lane.b32.xlu1 %v1140_v7, %s3844_s24  ;;  %v1147_v7 = vmul.f32 0.5, %v4500_v14 }
 0x14a   : > { %1211 = vrot.lane.b32.xlu0 %v1141_v10, %s3844_s24 }
 0x14d   : > { %1213 = vrot.lane.b32.xlu1 %v1142_v19, %s3844_s24 }
 0x14e   : > { %1215 = vrot.lane.b32.xlu0 %v1143_v5, %s3844_s24 }
 0x151   : > { %1217 = vrot.lane.b32.xlu1 %v1144_v4, %s3844_s24  ;;  %v559_v38 = vpop.xlane.xlu0 %558 }
 0x152   : > { %3589 = vrcp.f32 %v559_v38  ;;  %1219 = vrot.lane.b32.xlu0 %v1145_v23, %s3844_s24 }
 0x155   : > { %1221 = vrot.lane.b32.xlu1 %v1146_v26, %s3844_s24  ;;  %v562_v15 = vpop.xlane.xlu1 %561  ;;  %v565_v12 = vpop.xlane.xlu0 %564 }
 0x156   : > { %3591 = vrcp.f32 %v562_v15  ;;  %1223 = vrot.lane.b32.xlu0 %v1147_v7, %s3844_s24 }
 0x157   : > { %3593 = vrcp.f32 %v565_v12 }
 0x159   : > { %v568_v10 = vpop.xlane.xlu1 %567  ;;  %v571_v18 = vpop.xlane.xlu0 %570 }
 0x15a   : > { %3595 = vrcp.f32 %v568_v10 }
 0x15b   : > { %3597 = vrcp.f32 %v571_v18 }
 0x15d   : > { %v574_v1 = vpop.xlane.xlu1 %573  ;;  %v577_v19 = vpop.xlane.xlu0 %576 }
 0x15e   : > { %3599 = vrcp.f32 %v574_v1 }
 0x15f   : > { %v3590_v11 = vpop.eup %3589  ;;  %3601 = vrcp.f32 %v577_v19 }
 0x160   : > { %v685_v5 = vmul.f32 %v3590_v11, %v4199_v34 }
 0x161   : > { %v580_v4 = vpop.xlane.xlu1 %579  ;;  %v583_v23 = vpop.xlane.xlu0 %582 }
 0x162   : > { %v3419_v38 = vpack.c.bf16 %v685_v5, %v685_v5  ;;  %3603 = vrcp.f32 %v580_v4 }
 0x163   : > { %v3592_v26 = vpop.eup %3591  ;;  %3605 = vrcp.f32 %v583_v23 }
 0x164   : > { %v3594_v7 = vpop.eup %3593  ;;  %846 = vst.msk [vmem:[%s4514_s10] sm:$0xf] %vm845_vm1, %v3419_v38  ;;  %v686_v34 = vmul.f32 %v3592_v26, %v4209_v46 }
 0x165   : > { %v687_v15 = vmul.f32 %v3594_v7, %v4201_v35  ;;  %v586_v12 = vpop.xlane.xlu1 %585  ;;  %v589_v10 = vpop.xlane.xlu0 %588 }
 0x166   : > { %v3420_v18 = vpack.c.bf16 %v686_v34, %v686_v34  ;;  %3607 = vrcp.f32 %v586_v12 }
 0x167   : > { %v3596_v1 = vpop.eup %3595  ;;  %v3421_v19 = vpack.c.bf16 %v687_v15, %v687_v15  ;;  %3609 = vrcp.f32 %v589_v10 }
 0x168   : > { %v3598_v11 = vpop.eup %3597  ;;  %847 = vst.msk [vmem:[%s4514_s10 + $0x4] sm:$0xf] %vm845_vm1, %v3420_v18  ;;  %v688_v5 = vmul.f32 %v3596_v1, %v4211_v47 }
 0x169   : > { %848 = vst.msk [vmem:[%s4514_s10 + $0x8] sm:$0xf] %vm845_vm1, %v3421_v19  ;;  %v689_v46 = vmul.f32 %v3598_v11, %v4219_v58  ;;  %v592_v4 = vpop.xlane.xlu1 %591  ;;  %v595_v35 = vpop.xlane.xlu0 %594 }
 0x16a   : > { %v3422_v23 = vpack.c.bf16 %v688_v5, %v688_v5  ;;  %3611 = vrcp.f32 %v592_v4 }
 0x16b   : > { %v3600_v38 = vpop.eup %3599  ;;  %v3423_v26 = vpack.c.bf16 %v689_v46, %v689_v46  ;;  %3613 = vrcp.f32 %v595_v35 }
 0x16c   : > { %v3602_v7 = vpop.eup %3601  ;;  %849 = vst.msk [vmem:[%s4514_s10 + $0xc] sm:$0xf] %vm845_vm1, %v3422_v23  ;;  %v690_v34 = vmul.f32 %v3600_v38, %v4221_v59 }
 0x16d   : > { %850 = vst.msk [vmem:[%s4514_s10 + $0x10] sm:$0xf] %vm845_vm1, %v3423_v26  ;;  %v691_v47 = vmul.f32 %v3602_v7, %v4229_v31  ;;  %v598_v15 = vpop.xlane.xlu1 %597  ;;  %v601_v58 = vpop.xlane.xlu0 %600 }
 0x16e   : > { %v3424_v12 = vpack.c.bf16 %v690_v34, %v690_v34  ;;  %3615 = vrcp.f32 %v598_v15 }
 0x16f   : > { %v3604_v10 = vpop.eup %3603  ;;  %v3425_v18 = vpack.c.bf16 %v691_v47, %v691_v47  ;;  %3617 = vrcp.f32 %v601_v58 }
 0x170   : > { %v3606_v1 = vpop.eup %3605  ;;  %851 = vst.msk [vmem:[%s4514_s10 + $0x14] sm:$0xf] %vm845_vm1, %v3424_v12  ;;  %v692_v19 = vmul.f32 %v3604_v10, %v4231_v8 }
 0x171   : > { %852 = vst.msk [vmem:[%s4514_s10 + $0x18] sm:$0xf] %vm845_vm1, %v3425_v18  ;;  %v693_v59 = vmul.f32 %v3606_v1, %v4239_v43  ;;  %v604_v11 = vpop.xlane.xlu1 %603  ;;  %v607_v31 = vpop.xlane.xlu0 %606 }
 0x172   : > { %v3426_v5 = vpack.c.bf16 %v692_v19, %v692_v19  ;;  %3619 = vrcp.f32 %v604_v11 }
 0x173   : > { %v3608_v46 = vpop.eup %3607  ;;  %v3427_v4 = vpack.c.bf16 %v693_v59, %v693_v59  ;;  %3621 = vrcp.f32 %v607_v31 }
 0x174   : > { %v3610_v35 = vpop.eup %3609  ;;  %853 = vst.msk [vmem:[%s4514_s10 + $0x1c] sm:$0xf] %vm845_vm1, %v3426_v5  ;;  %v694_v23 = vmul.f32 %v3608_v46, %v4241_v16 }
 0x175   : > { %854 = vst.msk [vmem:[%s4514_s10 + $0x20] sm:$0xf] %vm845_vm1, %v3427_v4  ;;  %v695_v8 = vmul.f32 %v3610_v35, %v4249_v20  ;;  %v610_v38 = vpop.xlane.xlu1 %609  ;;  %v613_v43 = vpop.xlane.xlu0 %612 }
 0x176   : > { %v3428_v26 = vpack.c.bf16 %v694_v23, %v694_v23  ;;  %3623 = vrcp.f32 %v610_v38 }
 0x177   : > { %v3612_v7 = vpop.eup %3611  ;;  %v3429_v34 = vpack.c.bf16 %v695_v8, %v695_v8  ;;  %3625 = vrcp.f32 %v613_v43 }
 0x178   : > { %v3614_v47 = vpop.eup %3613  ;;  %855 = vst.msk [vmem:[%s4514_s10 + $0x24] sm:$0xf] %vm845_vm1, %v3428_v26  ;;  %v696_v15 = vmul.f32 %v3612_v7, %v4251_v21 }
 0x179   : > { %856 = vst.msk [vmem:[%s4514_s10 + $0x28] sm:$0xf] %vm845_vm1, %v3429_v34  ;;  %v697_v16 = vmul.f32 %v3614_v47, %v4259_v24  ;;  %v616_v58 = vpop.xlane.xlu1 %615  ;;  %v619_v20 = vpop.xlane.xlu0 %618 }
 0x17a   : > { %v3430_v12 = vpack.c.bf16 %v696_v15, %v696_v15  ;;  %3627 = vrcp.f32 %v616_v58 }
 0x17b   : > { %v3616_v10 = vpop.eup %3615  ;;  %v3431_v18 = vpack.c.bf16 %v697_v16, %v697_v16  ;;  %3629 = vrcp.f32 %v619_v20 }
 0x17c   : > { %v3618_v1 = vpop.eup %3617  ;;  %857 = vst.msk [vmem:[%s4514_s10 + $0x2c] sm:$0xf] %vm845_vm1, %v3430_v12  ;;  %v698_v19 = vmul.f32 %v3616_v10, %v4261_v25 }
 0x17d   : > { %858 = vst.msk [vmem:[%s4514_s10 + $0x30] sm:$0xf] %vm845_vm1, %v3431_v18  ;;  %v699_v21 = vmul.f32 %v3618_v1, %v4269_v28  ;;  %v622_v59 = vpop.xlane.xlu1 %621  ;;  %v625_v24 = vpop.xlane.xlu0 %624 }
 0x17e   : > { %v3432_v11 = vpack.c.bf16 %v698_v19, %v698_v19  ;;  %3631 = vrcp.f32 %v622_v59 }
 0x17f   : > { %v3620_v31 = vpop.eup %3619  ;;  %v3433_v5 = vpack.c.bf16 %v699_v21, %v699_v21  ;;  %3633 = vrcp.f32 %v625_v24 }
 0x180   : > { %v3622_v46 = vpop.eup %3621  ;;  %859 = vst.msk [vmem:[%s4514_s10 + $0x34] sm:$0xf] %vm845_vm1, %v3432_v11  ;;  %v700_v4 = vmul.f32 %v3620_v31, %v4271_v29 }
 0x181   : > { %860 = vst.msk [vmem:[%s4514_s10 + $0x38] sm:$0xf] %vm845_vm1, %v3433_v5  ;;  %v701_v25 = vmul.f32 %v3622_v46, %v4279_v32  ;;  %v628_v35 = vpop.xlane.xlu1 %627  ;;  %v631_v28 = vpop.xlane.xlu0 %630 }
 0x182   : > { %v3434_v23 = vpack.c.bf16 %v700_v4, %v700_v4  ;;  %3635 = vrcp.f32 %v628_v35 }
 0x183   : > { %v3624_v8 = vpop.eup %3623  ;;  %v3435_v38 = vpack.c.bf16 %v701_v25, %v701_v25  ;;  %3637 = vrcp.f32 %v631_v28 }
 0x184   : > { %v3626_v43 = vpop.eup %3625  ;;  %861 = vst.msk [vmem:[%s4514_s10 + $0x3c] sm:$0xf] %vm845_vm1, %v3434_v23  ;;  %v702_v26 = vmul.f32 %v3624_v8, %v4281_v33 }
 0x185   : > { %862 = vst.msk [vmem:[%s4514_s10 + $0x40] sm:$0xf] %vm845_vm1, %v3435_v38  ;;  %v703_v29 = vmul.f32 %v3626_v43, %v4289_v36  ;;  %v634_v7 = vpop.xlane.xlu1 %633  ;;  %v637_v32 = vpop.xlane.xlu0 %636 }
 0x186   : > { %v3436_v34 = vpack.c.bf16 %v702_v26, %v702_v26  ;;  %3639 = vrcp.f32 %v634_v7 }
 0x187   : > { %v3628_v47 = vpop.eup %3627  ;;  %v3437_v15 = vpack.c.bf16 %v703_v29, %v703_v29  ;;  %3641 = vrcp.f32 %v637_v32 }
 0x188   : > { %v3630_v16 = vpop.eup %3629  ;;  %863 = vst.msk [vmem:[%s4514_s10 + $0x44] sm:$0xf] %vm845_vm1, %v3436_v34  ;;  %v704_v58 = vmul.f32 %v3628_v47, %v4291_v37 }
 0x189   : > { %864 = vst.msk [vmem:[%s4514_s10 + $0x48] sm:$0xf] %vm845_vm1, %v3437_v15  ;;  %v705_v33 = vmul.f32 %v3630_v16, %v4299_v40  ;;  %v640_v20 = vpop.xlane.xlu1 %639  ;;  %v643_v36 = vpop.xlane.xlu0 %642 }
 0x18a   : > { %v3438_v12 = vpack.c.bf16 %v704_v58, %v704_v58  ;;  %3643 = vrcp.f32 %v640_v20 }
 0x18b   : > { %v3632_v10 = vpop.eup %3631  ;;  %v3439_v18 = vpack.c.bf16 %v705_v33, %v705_v33  ;;  %3645 = vrcp.f32 %v643_v36 }
 0x18c   : > { %v3634_v1 = vpop.eup %3633  ;;  %865 = vst.msk [vmem:[%s4514_s10 + $0x4c] sm:$0xf] %vm845_vm1, %v3438_v12  ;;  %v706_v19 = vmul.f32 %v3632_v10, %v4301_v41 }
 0x18d   : > { %866 = vst.msk [vmem:[%s4514_s10 + $0x50] sm:$0xf] %vm845_vm1, %v3439_v18  ;;  %v707_v37 = vmul.f32 %v3634_v1, %v4309_v44  ;;  %v646_v21 = vpop.xlane.xlu1 %645  ;;  %v649_v40 = vpop.xlane.xlu0 %648 }
 0x18e   : > { %v3440_v59 = vpack.c.bf16 %v706_v19, %v706_v19  ;;  %3647 = vrcp.f32 %v646_v21 }
 0x18f   : > { %v3636_v24 = vpop.eup %3635  ;;  %v3441_v11 = vpack.c.bf16 %v707_v37, %v707_v37  ;;  %3649 = vrcp.f32 %v649_v40  ;;  %v6768_v40 = vld [vmem:[#allocation9_spill] sm:$0xff] }
 0x190   : > { %v3638_v31 = vpop.eup %3637  ;;  %867 = vst.msk [vmem:[%s4514_s10 + $0x54] sm:$0xf] %vm845_vm1, %v3440_v59  ;;  %v708_v5 = vmul.f32 %v3636_v24, %v4311_v45 }
 0x191   : > { %868 = vst.msk [vmem:[%s4514_s10 + $0x58] sm:$0xf] %vm845_vm1, %v3441_v11  ;;  %v709_v41 = vmul.f32 %v3638_v31, %v4317_v61  ;;  %v652_v46 = vpop.xlane.xlu1 %651  ;;  %v1004_v44 = vpop.permute.xlu0 %1003 }
 0x192   : > { %v3442_v4 = vpack.c.bf16 %v708_v5, %v708_v5  ;;  %3651 = vrcp.f32 %v652_v46  ;;  %v1085_v25 = vsub.f32 %v4353_v17, %v1004_v44 }
 0x193   : > { %v3640_v35 = vpop.eup %3639  ;;  %v3443_v28 = vpack.c.bf16 %v709_v41, %v709_v41 }
 0x194   : > { %v3642_v23 = vpop.eup %3641  ;;  %869 = vst.msk [vmem:[%s4514_s10 + $0x5c] sm:$0xf] %vm845_vm1, %v3442_v4  ;;  %v710_v8 = vmul.f32 %v3640_v35, %v4319_v62  ;;  %v4590_v38 = vadd.f32 1.0, %v1085_v25 }
 0x195   : > { %870 = vst.msk [vmem:[%s4514_s10 + $0x60] sm:$0xf] %vm845_vm1, %v3443_v28  ;;  %v711_v45 = vmul.f32 %v3642_v23, %v4325_v48  ;;  %v1002_v61 = vpop.permute.xlu1 %1001  ;;  %v1008_v43 = vpop.permute.xlu0 %1007  ;;  %v6771_v23 = vld [vmem:[#allocation10_spill] sm:$0xff] }
 0x196   : > { %v3444_v26 = vpack.c.bf16 %v710_v8, %v710_v8  ;;  %v1084_v17 = vsub.f32 %v4350_v42, %v1002_v61  ;;  %v1087_v29 = vsub.f32 %v4363_v51, %v1008_v43  ;;  %v1149_v7 = vmul.f32 0.5, %v4590_v38 }
 0x197   : > { %v3644_v32 = vpop.eup %3643  ;;  %v3445_v34 = vpack.c.bf16 %v711_v45, %v711_v45  ;;  %v6772_v45 = vld [vmem:[#allocation13_spill] sm:$0xff] }
 0x198   : > { %v3646_v47 = vpop.eup %3645  ;;  %871 = vst.msk [vmem:[%s4514_s10 + $0x64] sm:$0xf] %vm845_vm1, %v3444_v26  ;;  %v712_v62 = vmul.f32 %v3644_v32, %v4327_v49  ;;  %v4601_v15 = vadd.f32 1.0, %v1084_v17  ;;  %v4603_v48 = vadd.f32 1.0, %v1087_v29  ;;  %1227 = vrot.lane.b32.xlu0 %v1149_v7, %s3844_s24 }
 0x199   : > { %872 = vst.msk [vmem:[%s4514_s10 + $0x68] sm:$0xf] %vm845_vm1, %v3445_v34  ;;  %v713_v42 = vmul.f32 %v3646_v47, %v4333_v30  ;;  %v1006_v51 = vpop.permute.xlu1 %1005  ;;  %v1012_v16 = vpop.permute.xlu0 %1011  ;;  %v6773_v34 = vld [vmem:[#allocation12_spill] sm:$0xff] }
 0x19a   : > { %v3446_v58 = vpack.c.bf16 %v712_v62, %v712_v62  ;;  %v1086_v33 = vsub.f32 %v4360_v50, %v1006_v51  ;;  %v1089_v20 = vsub.f32 %v4373_v57, %v1012_v16  ;;  %v1148_v49 = vmul.f32 0.5, %v4601_v15  ;;  %v6774_v62 = vld [vmem:[#allocation15_spill] sm:$0xff] }
 0x19b   : > { %v3648_v36 = vpop.eup %3647  ;;  %v3447_v12 = vpack.c.bf16 %v713_v42, %v713_v42  ;;  %v1151_v10 = vmul.f32 0.5, %v4603_v48 }
 0x19c   : > { %v3650_v18 = vpop.eup %3649  ;;  %873 = vst.msk [vmem:[%s4514_s10 + $0x6c] sm:$0xf] %vm845_vm1, %v3446_v58  ;;  %v714_v1 = vmul.f32 %v3648_v36, %v4335_v9  ;;  %v4616_v30 = vadd.f32 1.0, %v1086_v33  ;;  %v4618_v19 = vadd.f32 1.0, %v1089_v20  ;;  %1225 = vrot.lane.b32.xlu1 %v1148_v49, %s3844_s24  ;;  %v6769_v9 = vld [vmem:[#allocation11_spill] sm:$0xff]  ;;  %v6775_v36 = vld [vmem:[#allocation14_spill] sm:$0xff] }
 0x19d   : > { %874 = vst.msk [vmem:[%s4514_s10 + $0x70] sm:$0xf] %vm845_vm1, %v3447_v12  ;;  %v715_v50 = vmul.f32 %v3650_v18, %v4341_v52  ;;  %1231 = vrot.lane.b32.xlu0 %v1151_v10, %s3844_s24  ;;  %v1010_v57 = vpop.permute.xlu1 %1009  ;;  %v1016_v37 = vpop.permute.xlu0 %1015  ;;  %v6770_v52 = vld [vmem:[#allocation8_spill] sm:$0xff]  ;;  %v6776_v10 = vld [vmem:[#allocation17_spill] sm:$0xff] }
 0x19e   : > { %v3448_v21 = vpack.c.bf16 %v714_v1, %v714_v1  ;;  %v1088_v59 = vsub.f32 %v6768_v40, %v1010_v57  ;;  %v1091_v24 = vsub.f32 %v6769_v9, %v1016_v37  ;;  %v1150_v11 = vmul.f32 0.5, %v4616_v30 }
 0x19f   : > { %v3652_v31 = vpop.eup %3651  ;;  %v3449_v5 = vpack.c.bf16 %v715_v50, %v715_v50  ;;  %v1153_v41 = vmul.f32 0.5, %v4618_v19 }
 0x1a0   : > { %875 = vst.msk [vmem:[%s4514_s10 + $0x74] sm:$0xf] %vm845_vm1, %v3448_v21  ;;  %v716_v46 = vmul.f32 %v3652_v31, %v6770_v52  ;;  %v4632_v44 = vadd.f32 1.0, %v1088_v59  ;;  %v4634_v4 = vadd.f32 1.0, %v1091_v24  ;;  %1229 = vrot.lane.b32.xlu1 %v1150_v11, %s3844_s24  ;;  %v6777_v59 = vld [vmem:[#allocation16_spill] sm:$0xff]  ;;  %v6778_v24 = vld [vmem:[#allocation19_spill] sm:$0xff] }
 0x1a1   : > { %876 = vst.msk [vmem:[%s4514_s10 + $0x78] sm:$0xf] %vm845_vm1, %v3449_v5  ;;  %1235 = vrot.lane.b32.xlu0 %v1153_v41, %s3844_s24  ;;  %v1014_v25 = vpop.permute.xlu1 %1013  ;;  %v1020_v35 = vpop.permute.xlu0 %1019 }
 0x1a2   : > { %v3450_v28 = vpack.c.bf16 %v716_v46, %v716_v46  ;;  %v1090_v8 = vsub.f32 %v6771_v23, %v1014_v25  ;;  %v1093_v61 = vsub.f32 %v6772_v45, %v1020_v35  ;;  %v1152_v43 = vmul.f32 0.5, %v4632_v44 }
 0x1a3   : > { %v1155_v26 = vmul.f32 0.5, %v4634_v4  ;;  %v3845_v35 = vmov 2  }
 0x1a4   : > { %877 = vst.msk [vmem:[%s4514_s10 + $0x7c] sm:$0xf] %vm845_vm1, %v3450_v28  ;;  %v4646_v17 = vadd.f32 1.0, %v1090_v8  ;;  %v4648_v29 = vadd.f32 1.0, %v1093_v61  ;;  %1233 = vrot.lane.b32.xlu1 %v1152_v43, %s3844_s24  ;;  %v6779_v28 = vld [vmem:[#allocation18_spill] sm:$0xff]  ;;  %3517 = vset.pattern.permute.xlu0 %v3845_v35 }
 0x1a5   : > { %1239 = vrot.lane.b32.xlu0 %v1155_v26, %s3844_s24  ;;  %v1018_v7 = vpop.permute.xlu1 %1017  ;;  %v1024_v32 = vpop.permute.xlu0 %1023  ;;  %3518 = vset.pattern.permute.xlu1 %v3845_v35 }
 0x1a6   : > { %v1092_v47 = vsub.f32 %v6773_v34, %v1018_v7  ;;  %v1095_v42 = vsub.f32 %v6774_v62, %v1024_v32  ;;  %v1154_v51 = vmul.f32 0.5, %v4646_v17  ;;  %v1157_v16 = vmul.f32 0.5, %v4648_v29 }
 0x1a8   : > { %v4656_v58 = vadd.f32 1.0, %v1092_v47  ;;  %v4658_v33 = vadd.f32 1.0, %v1095_v42  ;;  %1237 = vrot.lane.b32.xlu1 %v1154_v51, %s3844_s24 }
 0x1a9   : > { %1243 = vrot.lane.b32.xlu0 %v1157_v16, %s3844_s24  ;;  %v1022_v20 = vpop.permute.xlu1 %1021  ;;  %v1028_v49 = vpop.permute.xlu0 %1027 }
 0x1aa   : > { %v1094_v12 = vsub.f32 %v6775_v36, %v1022_v20  ;;  %v1097_v18 = vsub.f32 %v6776_v10, %v1028_v49  ;;  %v1156_v1 = vmul.f32 0.5, %v4656_v58  ;;  %v1159_v50 = vmul.f32 0.5, %v4658_v33 }
 0x1ac   : > { %v4666_v57 = vadd.f32 1.0, %v1094_v12  ;;  %v4668_v37 = vadd.f32 1.0, %v1097_v18  ;;  %1241 = vrot.lane.b32.xlu1 %v1156_v1, %s3844_s24 }
 0x1ad   : > { %1247 = vrot.lane.b32.xlu0 %v1159_v50, %s3844_s24  ;;  %v1026_v21 = vpop.permute.xlu1 %1025  ;;  %v1032_v40 = vpop.permute.xlu0 %1031 }
 0x1ae   : > { %v1096_v9 = vsub.f32 %v6777_v59, %v1026_v21  ;;  %v1099_v11 = vsub.f32 %v6778_v24, %v1032_v40  ;;  %v1158_v31 = vmul.f32 0.5, %v4666_v57  ;;  %v1161_v5 = vmul.f32 0.5, %v4668_v37 }
 0x1b0   : > { %v4676_v41 = vadd.f32 1.0, %v1096_v9  ;;  %v4678_v52 = vadd.f32 1.0, %v1099_v11  ;;  %1245 = vrot.lane.b32.xlu1 %v1158_v31, %s3844_s24 }
 0x1b1   : > { %1251 = vrot.lane.b32.xlu0 %v1161_v5, %s3844_s24  ;;  %v1030_v46 = vpop.permute.xlu1 %1029  ;;  %v1036_v25 = vpop.permute.xlu0 %1035 }
 0x1b2   : > { %v1098_v23 = vsub.f32 %v6779_v28, %v1030_v46  ;;  %v1101_v8 = vsub.f32 %v4435_v55, %v1036_v25  ;;  %v1160_v45 = vmul.f32 0.5, %v4676_v41  ;;  %v1163_v61 = vmul.f32 0.5, %v4678_v52 }
 0x1b4   : > { %v4686_v43 = vadd.f32 1.0, %v1098_v23  ;;  %v4688_v26 = vadd.f32 1.0, %v1101_v8  ;;  %1249 = vrot.lane.b32.xlu1 %v1160_v45, %s3844_s24 }
 0x1b5   : > { %1255 = vrot.lane.b32.xlu0 %v1163_v61, %s3844_s24  ;;  %v1034_v7 = vpop.permute.xlu1 %1033 }
 0x1b6   : > { %v1100_v32 = vsub.f32 %v4431_v54, %v1034_v7  ;;  %v1162_v34 = vmul.f32 0.5, %v4686_v43  ;;  %v1165_v55 = vmul.f32 0.5, %v4688_v26  ;;  %v6780_v54 = vld [vmem:[#allocation20_spill] sm:$0xff] }
 0x1b8   : > { %v4695_v47 = vadd.f32 1.0, %v1100_v32  ;;  %1253 = vrot.lane.b32.xlu1 %v1162_v34, %s3844_s24 }
 0x1b9   : > { %1259 = vrot.lane.b32.xlu0 %v1165_v55, %s3844_s24  ;;  %v1038_v62 = vpop.permute.xlu1 %1037 }
 0x1ba   : > { %v1102_v42 = vsub.f32 %v4445_v6, %v1038_v62  ;;  %v1164_v51 = vmul.f32 0.5, %v4695_v47  ;;  %v4742_v6 = vpop.permute.xlu0 %1199 }
 0x1bc   : > { %v4701_v16 = vadd.f32 1.0, %v1102_v42  ;;  %1257 = vrot.lane.b32.xlu1 %v1164_v51, %s3844_s24 }
 0x1bd   : > { %1359 = vrot.lane.b32.xlu0 %v6780_v54, %s3846_s12  ;;  %v4754_v36 = vpop.permute.xlu1 %1201 }
 0x1be   : > { %v1166_v20 = vmul.f32 0.5, %v4701_v16  ;;  %v4748_v49 = vpop.permute.xlu0 %1203 }
 0x1c0   : > { %1261 = vrot.lane.b32.xlu1 %v1166_v20, %s3844_s24 }
 0x1c1   : > { %1363 = vrot.lane.b32.xlu0 %v4450_v3, %s3846_s12  ;;  %v4766_v10 = vpop.permute.xlu1 %1205 }
 0x1c2   : > { %v4760_v12 = vpop.permute.xlu0 %1207 }
 0x1c4   : > { %1361 = vrot.lane.b32.xlu1 %v4447_v63, %s3846_s12 }
 0x1c5   : > { %1367 = vrot.lane.b32.xlu0 %v4461_v39, %s3846_s12  ;;  %v4774_v1 = vpop.permute.xlu1 %1209 }
 0x1c6   : > { %v4768_v18 = vpop.permute.xlu0 %1211 }
 0x1c8   : > { %1365 = vrot.lane.b32.xlu1 %v4457_v27, %s3846_s12 }
 0x1c9   : > { %1371 = vrot.lane.b32.xlu0 %v4471_v60, %s3846_s12  ;;  %v4784_v21 = vpop.permute.xlu1 %1213 }
 0x1ca   : > { %v4780_v50 = vpop.permute.xlu0 %1215 }
 0x1cc   : > { %1369 = vrot.lane.b32.xlu1 %v4467_v56, %s3846_s12 }
 0x1cd   : > { %1375 = vrot.lane.b32.xlu0 %v4481_v0, %s3846_s12  ;;  %v4790_v59 = vpop.permute.xlu1 %1217 }
 0x1ce   : > { %v4786_v40 = vpop.permute.xlu0 %1219 }
 0x1d0   : > { %1373 = vrot.lane.b32.xlu1 %v4477_v53, %s3846_s12 }
 0x1d1   : > { %1379 = vrot.lane.b32.xlu0 %v4491_v13, %s3846_s12  ;;  %v4794_v24 = vpop.permute.xlu1 %1221 }
 0x1d2   : > { %v4792_v9 = vpop.permute.xlu0 %1223 }
 0x1d4   : > { %1377 = vrot.lane.b32.xlu1 %v4487_v2, %s3846_s12 }
 0x1d5   : > { %1383 = vrot.lane.b32.xlu0 %v4500_v14, %s3846_s12 }
 0x1d8   : > { %1381 = vrot.lane.b32.xlu1 %v4497_v22, %s3846_s12 }
 0x1d9   : > { %1387 = vrot.lane.b32.xlu0 %v4590_v38, %s3846_s12 }
 0x1dc   : > { %1385 = vrot.lane.b32.xlu1 %v4601_v15, %s3846_s12 }
 0x1dd   : > { %1391 = vrot.lane.b32.xlu0 %v4603_v48, %s3846_s12 }
 0x1e0   : > { %1389 = vrot.lane.b32.xlu1 %v4616_v30, %s3846_s12 }
 0x1e1   : > { %1395 = vrot.lane.b32.xlu0 %v4618_v19, %s3846_s12 }
 0x1e4   : > { %1393 = vrot.lane.b32.xlu1 %v4632_v44, %s3846_s12 }
 0x1e5   : > { %1399 = vrot.lane.b32.xlu0 %v4634_v4, %s3846_s12 }
 0x1e8   : > { %1397 = vrot.lane.b32.xlu1 %v4646_v17, %s3846_s12 }
 0x1e9   : > { %1403 = vrot.lane.b32.xlu0 %v4648_v29, %s3846_s12 }
 0x1ec   : > { %1401 = vrot.lane.b32.xlu1 %v4656_v58, %s3846_s12 }
 0x1ed   : > { %1407 = vrot.lane.b32.xlu0 %v4658_v33, %s3846_s12 }
 0x1f0   : > { %1405 = vrot.lane.b32.xlu1 %v4666_v57, %s3846_s12 }
 0x1f1   : > { %1411 = vrot.lane.b32.xlu0 %v4668_v37, %s3846_s12 }
 0x1f4   : > { %1409 = vrot.lane.b32.xlu1 %v4676_v41, %s3846_s12 }
 0x1f5   : > { %1415 = vrot.lane.b32.xlu0 %v4678_v52, %s3846_s12 }
 0x1f8   : > { %1413 = vrot.lane.b32.xlu1 %v4686_v43, %s3846_s12 }
 0x1f9   : > { %1419 = vrot.lane.b32.xlu0 %v4688_v26, %s3846_s12 }
 0x1fc   : > { %1417 = vrot.lane.b32.xlu1 %v4695_v47, %s3846_s12 }
 0x200   : > { %1421 = vrot.lane.b32.xlu1 %v4701_v16, %s3846_s12 }
 0x20a   : > { %v4796_v11 = vpop.permute.xlu0 %1227 }
 0x20e   : > { %v4798_v31 = vpop.permute.xlu1 %1225 }
 0x20f   : > { %v4800_v5 = vpop.permute.xlu0 %1231 }
 0x212   : > { %v4802_v46 = vpop.permute.xlu1 %1229 }
 0x213   : > { %v4804_v25 = vpop.permute.xlu0 %1235 }
 0x216   : > { %v4806_v35 = vpop.permute.xlu1 %1233 }
 0x217   : > { %6781 = vst [vmem:[#allocation9_spill] sm:$0xff] %v4806_v35  ;;  %v4808_v28 = vpop.permute.xlu0 %1239 }
 0x218   : > { %6782 = vst [vmem:[#allocation11_spill] sm:$0xff] %v4808_v28 }
 0x21a   : > { %v4810_v23 = vpop.permute.xlu1 %1237 }
 0x21b   : > { %6783 = vst [vmem:[#allocation8_spill] sm:$0xff] %v4810_v23  ;;  %v4812_v8 = vpop.permute.xlu0 %1243 }
 0x21c   : > { %6784 = vst [vmem:[#allocation10_spill] sm:$0xff] %v4812_v8 }
 0x21e   : > { %v4814_v45 = vpop.permute.xlu1 %1241 }
 0x21f   : > { %6785 = vst [vmem:[#allocation13_spill] sm:$0xff] %v4814_v45  ;;  %v4816_v61 = vpop.permute.xlu0 %1247 }
 0x220   : > { %6786 = vst [vmem:[#allocation12_spill] sm:$0xff] %v4816_v61 }
 0x222   : > { %v4818_v7 = vpop.permute.xlu1 %1245 }
 0x223   : > { %6787 = vst [vmem:[#allocation15_spill] sm:$0xff] %v4818_v7  ;;  %v4820_v32 = vpop.permute.xlu0 %1251 }
 0x224   : > { %6788 = vst [vmem:[#allocation14_spill] sm:$0xff] %v4820_v32 }
 0x226   : > { %v4822_v34 = vpop.permute.xlu1 %1249 }
 0x227   : > { %6789 = vst [vmem:[#allocation17_spill] sm:$0xff] %v4822_v34  ;;  %v4824_v55 = vpop.permute.xlu0 %1255 }
 0x228   : > { %6790 = vst [vmem:[#allocation16_spill] sm:$0xff] %v4824_v55 }
 0x22a   : > { %v4826_v62 = vpop.permute.xlu1 %1253 }
 0x22b   : > { %6791 = vst [vmem:[#allocation19_spill] sm:$0xff] %v4826_v62  ;;  %v4828_v42 = vpop.permute.xlu0 %1259 }
 0x22c   : > { %6792 = vst [vmem:[#allocation18_spill] sm:$0xff] %v4828_v42 }
 0x22e   : > { %v4830_v51 = vpop.permute.xlu1 %1257 }
 0x22f   : > { %6793 = vst [vmem:[#allocation20_spill] sm:$0xff] %v4830_v51  ;;  %v1360_v20 = vpop.permute.xlu0 %1359 }
 0x230   : > { %v1455_v8 = vsub.f32 %v6780_v54, %v1360_v20 }
 0x232   : > { %1489 = vperm.xlu0 %3517, %v1455_v8   ;;  %v4833_v45 = vpop.permute.xlu1 %1261 }
 0x233   : > { %6794 = vst [vmem:[#allocation21_spill] sm:$0xff] %v4833_v45  ;;  %v1364_v61 = vpop.permute.xlu0 %1363 }
 0x234   : > { %v1457_v55 = vsub.f32 %v4450_v3, %v1364_v61 }
 0x236   : > { %v1362_v7 = vpop.permute.xlu1 %1361 }
 0x237   : > { %v1456_v32 = vsub.f32 %v4447_v63, %v1362_v7  ;;  %v1368_v23 = vpop.permute.xlu0 %1367 }
 0x238   : > { %v1459_v20 = vsub.f32 %v4461_v39, %v1368_v23 }
 0x239   : > { %1494 = vperm.xlu1 %3518, %v1456_v32  }
 0x23a   : > { %v1366_v34 = vpop.permute.xlu1 %1365 }
 0x23b   : > { %v1458_v62 = vsub.f32 %v4457_v27, %v1366_v34  ;;  %v1372_v42 = vpop.permute.xlu0 %1371 }
 0x23c   : > { %v1461_v7 = vsub.f32 %v4471_v60, %v1372_v42 }
 0x23d   : > { %1504 = vperm.xlu0 %3517, %v1458_v62   ;;  %1499 = vperm.xlu1 %3518, %v1457_v55  }
 0x23e   : > { %v1370_v51 = vpop.permute.xlu1 %1369 }
 0x23f   : > { %v1460_v8 = vsub.f32 %v4467_v56, %v1370_v51  ;;  %v1376_v45 = vpop.permute.xlu0 %1375 }
 0x240   : > { %v1463_v34 = vsub.f32 %v4481_v0, %v1376_v45 }
 0x241   : > { %1514 = vperm.xlu0 %3517, %v1460_v8   ;;  %1509 = vperm.xlu1 %3518, %v1459_v20  }
 0x242   : > { %v1374_v28 = vpop.permute.xlu1 %1373 }
 0x243   : > { %v1462_v32 = vsub.f32 %v4477_v53, %v1374_v28  ;;  %v1380_v35 = vpop.permute.xlu0 %1379 }
 0x244   : > { %v1465_v51 = vsub.f32 %v4491_v13, %v1380_v35 }
 0x245   : > { %1524 = vperm.xlu0 %3517, %v1462_v32   ;;  %1519 = vperm.xlu1 %3518, %v1461_v7  }
 0x246   : > { %v1378_v61 = vpop.permute.xlu1 %1377 }
 0x247   : > { %v1464_v55 = vsub.f32 %v4487_v2, %v1378_v61  ;;  %v1384_v62 = vpop.permute.xlu0 %1383 }
 0x248   : > { %v1467_v42 = vsub.f32 %v4500_v14, %v1384_v62 }
 0x249   : > { %1534 = vperm.xlu0 %3517, %v1464_v55   ;;  %1529 = vperm.xlu1 %3518, %v1463_v34  }
 0x24a   : > { %v1382_v23 = vpop.permute.xlu1 %1381 }
 0x24b   : > { %v1466_v20 = vsub.f32 %v4497_v22, %v1382_v23  ;;  %v1388_v8 = vpop.permute.xlu0 %1387 }
 0x24c   : > { %v1469_v61 = vsub.f32 %v4590_v38, %v1388_v8 }
 0x24d   : > { %1544 = vperm.xlu0 %3517, %v1466_v20   ;;  %1539 = vperm.xlu1 %3518, %v1465_v51  }
 0x24e   : > { %v1386_v28 = vpop.permute.xlu1 %1385 }
 0x24f   : > { %v1468_v7 = vsub.f32 %v4601_v15, %v1386_v28  ;;  %v1392_v32 = vpop.permute.xlu0 %1391 }
 0x250   : > { %v1471_v23 = vsub.f32 %v4603_v48, %v1392_v32 }
 0x251   : > { %1554 = vperm.xlu0 %3517, %v1468_v7   ;;  %1549 = vperm.xlu1 %3518, %v1467_v42  }
 0x252   : > { %v1390_v45 = vpop.permute.xlu1 %1389 }
 0x253   : > { %v1470_v34 = vsub.f32 %v4616_v30, %v1390_v45  ;;  %v1396_v55 = vpop.permute.xlu0 %1395 }
 0x254   : > { %v1473_v28 = vsub.f32 %v4618_v19, %v1396_v55 }
 0x255   : > { %1564 = vperm.xlu0 %3517, %v1470_v34   ;;  %1559 = vperm.xlu1 %3518, %v1469_v61  }
 0x256   : > { %v1394_v35 = vpop.permute.xlu1 %1393 }
 0x257   : > { %v1472_v51 = vsub.f32 %v4632_v44, %v1394_v35  ;;  %v1400_v20 = vpop.permute.xlu0 %1399 }
 0x258   : > { %v1475_v45 = vsub.f32 %v4634_v4, %v1400_v20 }
 0x259   : > { %1574 = vperm.xlu0 %3517, %v1472_v51   ;;  %1569 = vperm.xlu1 %3518, %v1471_v23  }
 0x25a   : > { %v1398_v62 = vpop.permute.xlu1 %1397 }
 0x25b   : > { %v1474_v42 = vsub.f32 %v4646_v17, %v1398_v62  ;;  %v1404_v7 = vpop.permute.xlu0 %1403 }
 0x25c   : > { %v1477_v35 = vsub.f32 %v4648_v29, %v1404_v7 }
 0x25d   : > { %1584 = vperm.xlu0 %3517, %v1474_v42   ;;  %1579 = vperm.xlu1 %3518, %v1473_v28  }
 0x25e   : > { %v1402_v8 = vpop.permute.xlu1 %1401 }
 0x25f   : > { %v1476_v61 = vsub.f32 %v4656_v58, %v1402_v8  ;;  %v1408_v34 = vpop.permute.xlu0 %1407 }
 0x260   : > { %v1479_v62 = vsub.f32 %v4658_v33, %v1408_v34 }
 0x261   : > { %1594 = vperm.xlu0 %3517, %v1476_v61   ;;  %1589 = vperm.xlu1 %3518, %v1475_v45  }
 0x262   : > { %v1406_v32 = vpop.permute.xlu1 %1405 }
 0x263   : > { %v1478_v23 = vsub.f32 %v4666_v57, %v1406_v32  ;;  %v1412_v51 = vpop.permute.xlu0 %1411 }
 0x264   : > { %v1481_v8 = vsub.f32 %v4668_v37, %v1412_v51  ;;  %v3847_v51 = vmov 3  }
 0x265   : > { %1604 = vperm.xlu0 %3517, %v1478_v23   ;;  %1599 = vperm.xlu1 %3518, %v1477_v35  }
 0x266   : > { %v1410_v55 = vpop.permute.xlu1 %1409 }
 0x267   : > { %v1480_v28 = vsub.f32 %v4676_v41, %v1410_v55  ;;  %v1416_v20 = vpop.permute.xlu0 %1415 }
 0x268   : > { %v1483_v61 = vsub.f32 %v4678_v52, %v1416_v20 }
 0x269   : > { %1614 = vperm.xlu0 %3517, %v1480_v28   ;;  %1609 = vperm.xlu1 %3518, %v1479_v62   ;;  %v1647_v62 = vlaneseq  ;;  %v3724_v28 = vld [vmem:[%s4122_s22 + $0x40] sm:$0xff] }
 0x26a   : > { %v1414_v42 = vpop.permute.xlu1 %1413 }
 0x26b   : > { %v1482_v45 = vsub.f32 %v4686_v43, %v1414_v42  ;;  %v1420_v35 = vpop.permute.xlu0 %1419 }
 0x26c   : > { %v1485_v23 = vsub.f32 %v4688_v26, %v1420_v35  ;;  %v3728_v35 = vld [vmem:[%s4122_s22 + $0x60] sm:$0xff] }
 0x26d   : > { %1624 = vperm.xlu0 %3517, %v1482_v45   ;;  %1619 = vperm.xlu1 %3518, %v1481_v8   ;;  %v3725_v8 = vld [vmem:[%s4122_s22 + $0x38] sm:$0xff]  ;;  %v3726_v45 = vld [vmem:[%s4122_s22 + $0x50] sm:$0xff] }
 0x26e   : > { %v1418_v7 = vpop.permute.xlu1 %1417 }
 0x26f   : > { %v1484_v32 = vsub.f32 %v4695_v47, %v1418_v7 }
 0x271   : > { %1634 = vperm.xlu0 %3517, %v1484_v32   ;;  %1629 = vperm.xlu1 %3518, %v1483_v61   ;;  %v3727_v32 = vld [vmem:[%s4122_s22 + $0x48] sm:$0xff] }
 0x272   : > { %v1422_v34 = vpop.permute.xlu1 %1421 }
 0x273   : > { %v1486_v55 = vsub.f32 %v4701_v16, %v1422_v34 }
 0x275   : > { %1644 = vperm.xlu0 %3517, %v1486_v55   ;;  %1639 = vperm.xlu1 %3518, %v1485_v23   ;;  %v3729_v55 = vld [vmem:[%s4122_s22 + $0x58] sm:$0xff] }
 0x279   : > { %3520 = vset.pattern.permute.xlu0 %v3847_v51  ;;  %3519 = vset.pattern.permute.xlu1 %v3847_v51  ;;  %v3730_v51 = vld [vmem:[%s4122_s22 + $0x70] sm:$0xff] }
 0x27a   : > { %1688 = vperm.xlu0 %3520, %v4447_v63   ;;  %1684 = vperm.xlu1 %3519, %v6780_v54   ;;  %v4876_v63 = vshrl.u32 %v1647_v62, 7  ;;  %v3722_v54 = vld [vmem:[%s4122_s22 + $0x30] sm:$0xff] }
 0x27c   : > { %6795 = vst [vmem:[#allocation22_spill] sm:$0xff] %v4876_v63 }
 0x27e   : > { %1700 = vperm.xlu0 %3520, %v4461_v39   ;;  %1692 = vperm.xlu1 %3519, %v4450_v3   ;;  %v2357_v3 = vsub.s32 0, %v4876_v63 }
 0x282   : > { %1708 = vperm.xlu0 %3520, %v4471_v60   ;;  %1696 = vperm.xlu1 %3519, %v4457_v27   ;;  %v907_v27 = vld [vmem:[%s4885_s18 + $0xe0] sm:$0xff] }
 0x286   : > { %1716 = vperm.xlu0 %3520, %v4481_v0   ;;  %1704 = vperm.xlu1 %3519, %v4467_v56   ;;  %v4892_v56 = vld [vmem:[%s6685_s4] sm:$0xff]  ;;  %v909_v0 = vld [vmem:[%s4885_s18 + $0xf0] sm:$0xff] }
 0x287   : > { %v4896_v39 = vrot.slane %v4892_v56, %v2357_v3 }
 0x289   : > { %v4899_v60 = vmul.f32 %v4896_v39, %v907_v27  ;;  %v3731_v27 = vld [vmem:[%s4122_s22 + $0x68] sm:$0xff] }
 0x28a   : > { %1724 = vperm.xlu0 %3520, %v4491_v13   ;;  %1712 = vperm.xlu1 %3519, %v4477_v53   ;;  %v906_v53 = vld [vmem:[%s4885_s18 + $0xd8] sm:$0xff]  ;;  %v4909_v13 = vmul.f32 %v4896_v39, %v909_v0 }
 0x28b   : > { %6796 = vst [vmem:[#allocation23_spill] sm:$0xff] %v4899_v60 }
 0x28c   : > { %6798 = vst [vmem:[#allocation25_spill] sm:$0xff] %v4909_v13  ;;  %v6829_v13 = vld [vmem:[#allocation14_spill] sm:$0xff] }
 0x28e   : > { %1732 = vperm.xlu0 %3520, %v4500_v14   ;;  %1720 = vperm.xlu1 %3519, %v4487_v2   ;;  %v4906_v2 = vmul.f32 %v4896_v39, %v906_v53  ;;  %v3732_v53 = vld [vmem:[%s4122_s22 + $0x80] sm:$0xff] }
 0x290   : > { %6797 = vst [vmem:[#allocation24_spill] sm:$0xff] %v4906_v2  ;;  %v3743_v2 = vld [vmem:[%s4122_s22 + $0xc8] sm:$0xff] }
 0x292   : > { %1740 = vperm.xlu0 %3520, %v4590_v38   ;;  %1728 = vperm.xlu1 %3519, %v4497_v22   ;;  %v908_v22 = vld [vmem:[%s4885_s18 + $0xe8] sm:$0xff]  ;;  %v910_v38 = vld [vmem:[%s4885_s18 + $0xf8] sm:$0xff] }
 0x293   : > { %v4915_v14 = vmul.f32 %v4896_v39, %v908_v22 }
 0x295   : > { %6799 = vst [vmem:[#allocation26_spill] sm:$0xff] %v4915_v14 }
 0x296   : > { %1748 = vperm.xlu0 %3520, %v4603_v48   ;;  %1736 = vperm.xlu1 %3519, %v4601_v15   ;;  %v4921_v15 = vmul.f32 %v4896_v39, %v910_v38  ;;  %v3717_v48 = vld [vmem:[%s4122_s22] sm:$0xff]  ;;  %v3733_v38 = vld [vmem:[%s4122_s22 + $0x78] sm:$0xff] }
 0x298   : > { %6800 = vst [vmem:[#allocation27_spill] sm:$0xff] %v4921_v15 }
 0x29a   : > { %1756 = vperm.xlu0 %3520, %v4618_v19   ;;  %1744 = vperm.xlu1 %3519, %v4616_v30   ;;  %v4935_v30 = vadd.f32 %v3717_v48, %v4742_v6  ;;  %v4977_v6 = vadd.f32 %v3722_v54, %v4768_v18  ;;  %v4993_v18 = vadd.f32 %v3724_v28, %v4780_v50  ;;  %v3734_v48 = vld [vmem:[%s4122_s22 + $0x90] sm:$0xff]  ;;  %v6817_v54 = vld [vmem:[#allocation11_spill] sm:$0xff] }
 0x29b   : > { %v5009_v50 = vadd.f32 %v3726_v45, %v4786_v40  ;;  %v5025_v40 = vadd.f32 %v3728_v35, %v4792_v9  ;;  %v5041_v9 = vadd.f32 %v3730_v51, %v4796_v11  ;;  %v5057_v11 = vadd.f32 %v3732_v53, %v4800_v5  ;;  %v6820_v45 = vld [vmem:[#allocation8_spill] sm:$0xff]  ;;  %v3738_v35 = vld [vmem:[%s4122_s22 + $0xb0] sm:$0xff] }
 0x29c   : > { %v5073_v5 = vadd.f32 %v3734_v48, %v4804_v25  ;;  %v6824_v48 = vld [vmem:[#allocation13_spill] sm:$0xff] }
 0x29e   : > { %1764 = vperm.xlu0 %3520, %v4634_v4   ;;  %1752 = vperm.xlu1 %3519, %v4632_v44   ;;  %v3848_v4 = vmov 0  }
 0x2a2   : > { %1772 = vperm.xlu0 %3520, %v4648_v29   ;;  %1760 = vperm.xlu1 %3519, %v4646_v17   ;;  %v3718_v17 = vld [vmem:[%s4122_s22 + $0x10] sm:$0xff] }
 0x2a3   : > { %v4946_v29 = vadd.f32 %v3718_v17, %v4748_v49 }
 0x2a6   : > { %1780 = vperm.xlu0 %3520, %v4658_v33   ;;  %1768 = vperm.xlu1 %3519, %v4656_v58  }
 0x2aa   : > { %1788 = vperm.xlu0 %3520, %v4668_v37   ;;  %1776 = vperm.xlu1 %3519, %v4666_v57   ;;  %v3719_v57 = vld [vmem:[%s4122_s22 + $0x8] sm:$0xff] }
 0x2ab   : > { %v4957_v37 = vadd.f32 %v3719_v57, %v4754_v36  ;;  %v3735_v57 = vld [vmem:[%s4122_s22 + $0x88] sm:$0xff] }
 0x2ad   : > { %v4937_v19 = vpop.permute.xlu0 %1489 }
 0x2ae   : > { %1796 = vperm.xlu0 %3520, %v4678_v52   ;;  %1784 = vperm.xlu1 %3519, %v4676_v41   ;;  %v3720_v41 = vld [vmem:[%s4122_s22 + $0x20] sm:$0xff] }
 0x2af   : > { %v4961_v52 = vadd.f32 %v3720_v41, %v4760_v12  ;;  %v3723_v12 = vld [vmem:[%s4122_s22 + $0x28] sm:$0xff] }
 0x2b0   : > { %v6816_v41 = vld [vmem:[#allocation9_spill] sm:$0xff] }
 0x2b2   : > { %1804 = vperm.xlu0 %3520, %v4688_v26   ;;  %1792 = vperm.xlu1 %3519, %v4686_v43  }
 0x2b4   : > { %v4939_v44 = vpop.permute.xlu1 %1494 }
 0x2b6   : > { %1875 = vrot.lane.b32.xlu0 %v4935_v30, %s3846_s12  ;;  %1800 = vperm.xlu1 %3519, %v4695_v47   ;;  %v3721_v47 = vld [vmem:[%s4122_s22 + $0x18] sm:$0xff] }
 0x2b7   : > { %3521 = vset.pattern.permute.xlu0 %v3848_v4 }
 0x2b8   : > { %v4948_v58 = vpop.permute.xlu1 %1499  ;;  %v4950_v33 = vpop.permute.xlu0 %1504 }
 0x2ba   : > { %1879 = vrot.lane.b32.xlu0 %v4946_v29, %s3846_s12  ;;  %1808 = vperm.xlu1 %3519, %v4701_v16   ;;  %v4973_v16 = vadd.f32 %v3721_v47, %v4766_v10  ;;  %v4989_v10 = vadd.f32 %v3723_v12, %v4774_v1  ;;  %v5005_v1 = vadd.f32 %v3725_v8, %v4784_v21  ;;  %v3736_v47 = vld [vmem:[%s4122_s22 + $0xa0] sm:$0xff]  ;;  %v3737_v8 = vld [vmem:[%s4122_s22 + $0x98] sm:$0xff] }
 0x2bb   : > { %v5021_v21 = vadd.f32 %v3727_v32, %v4790_v59  ;;  %v5037_v59 = vadd.f32 %v3729_v55, %v4794_v24  ;;  %v5053_v24 = vadd.f32 %v3731_v27, %v4798_v31  ;;  %v5069_v31 = vadd.f32 %v3733_v38, %v4802_v46  ;;  %v6821_v55 = vld [vmem:[#allocation10_spill] sm:$0xff]  ;;  %v3739_v38 = vld [vmem:[%s4122_s22 + $0xa8] sm:$0xff] }
 0x2bc   : > { %v4963_v43 = vpop.permute.xlu1 %1509  ;;  %v4965_v26 = vpop.permute.xlu0 %1514  ;;  %v5085_v46 = vadd.f32 %v3735_v57, %v6816_v41  ;;  %v5089_v25 = vadd.f32 %v3736_v47, %v6817_v54  ;;  %v5101_v32 = vadd.f32 %v3737_v8, %v6820_v45  ;;  %v5105_v51 = vadd.f32 %v3738_v35, %v6821_v55  ;;  %v3740_v41 = vld [vmem:[%s4122_s22 + $0xc0] sm:$0xff]  ;;  %v3741_v35 = vld [vmem:[%s4122_s22 + $0xb8] sm:$0xff] }
 0x2bd   : > { %6801 = vst [vmem:[#allocation28_spill] sm:$0xff] %v4965_v26  ;;  %v5117_v57 = vadd.f32 %v3739_v38, %v6824_v48  ;;  %v6825_v47 = vld [vmem:[#allocation12_spill] sm:$0xff]  ;;  %v6828_v55 = vld [vmem:[#allocation15_spill] sm:$0xff]  ;;  %v3742_v48 = vld [vmem:[%s4122_s22 + $0xd0] sm:$0xff] }
 0x2be   : > { %1883 = vrot.lane.b32.xlu0 %v4961_v52, %s3846_s12  ;;  %1877 = vrot.lane.b32.xlu1 %v4957_v37, %s3846_s12  ;;  %v5121_v54 = vadd.f32 %v3740_v41, %v6825_v47  ;;  %v5133_v38 = vadd.f32 %v3741_v35, %v6828_v55  ;;  %v5137_v41 = vadd.f32 %v3742_v48, %v6829_v13  ;;  %v3744_v55 = vld [vmem:[%s4122_s22 + $0xe0] sm:$0xff] }
 0x2bf   : > { %3522 = vset.pattern.permute.xlu1 %v3848_v4 }
 0x2c0   : > { %v4979_v49 = vpop.permute.xlu1 %1519  ;;  %v4981_v36 = vpop.permute.xlu0 %1524 }
 0x2c1   : > { %6802 = vst [vmem:[#allocation29_spill] sm:$0xff] %v4979_v49  ;;  %6803 = vst [vmem:[#allocation30_spill] sm:$0xff] %v4981_v36 }
 0x2c2   : > { %1887 = vrot.lane.b32.xlu0 %v4977_v6, %s3846_s12  ;;  %1881 = vrot.lane.b32.xlu1 %v4973_v16, %s3846_s12 }
 0x2c4   : > { %v4995_v20 = vpop.permute.xlu1 %1529  ;;  %v4997_v42 = vpop.permute.xlu0 %1534 }
 0x2c5   : > { %6804 = vst [vmem:[#allocation31_spill] sm:$0xff] %v4995_v20  ;;  %6805 = vst [vmem:[#allocation32_spill] sm:$0xff] %v4997_v42 }
 0x2c6   : > { %1891 = vrot.lane.b32.xlu0 %v4993_v18, %s3846_s12  ;;  %1885 = vrot.lane.b32.xlu1 %v4989_v10, %s3846_s12 }
 0x2c8   : > { %v5011_v7 = vpop.permute.xlu1 %1539  ;;  %v5013_v61 = vpop.permute.xlu0 %1544 }
 0x2c9   : > { %6806 = vst [vmem:[#allocation33_spill] sm:$0xff] %v5011_v7  ;;  %6807 = vst [vmem:[#allocation34_spill] sm:$0xff] %v5013_v61 }
 0x2ca   : > { %1895 = vrot.lane.b32.xlu0 %v5009_v50, %s3846_s12  ;;  %1889 = vrot.lane.b32.xlu1 %v5005_v1, %s3846_s12 }
 0x2cc   : > { %v5027_v34 = vpop.permute.xlu1 %1549  ;;  %v5029_v23 = vpop.permute.xlu0 %1554 }
 0x2cd   : > { %6808 = vst [vmem:[#allocation35_spill] sm:$0xff] %v5027_v34  ;;  %6809 = vst [vmem:[#allocation36_spill] sm:$0xff] %v5029_v23 }
 0x2ce   : > { %1899 = vrot.lane.b32.xlu0 %v5025_v40, %s3846_s12  ;;  %1893 = vrot.lane.b32.xlu1 %v5021_v21, %s3846_s12 }
 0x2d0   : > { %v5043_v62 = vpop.permute.xlu1 %1559  ;;  %v5045_v3 = vpop.permute.xlu0 %1564 }
 0x2d1   : > { %6810 = vst [vmem:[#allocation37_spill] sm:$0xff] %v5043_v62  ;;  %6811 = vst [vmem:[#allocation38_spill] sm:$0xff] %v5045_v3 }
 0x2d2   : > { %1903 = vrot.lane.b32.xlu0 %v5041_v9, %s3846_s12  ;;  %1897 = vrot.lane.b32.xlu1 %v5037_v59, %s3846_s12 }
 0x2d4   : > { %v5059_v0 = vpop.permute.xlu1 %1569  ;;  %v5061_v22 = vpop.permute.xlu0 %1574 }
 0x2d5   : > { %6812 = vst [vmem:[#allocation39_spill] sm:$0xff] %v5059_v0  ;;  %6813 = vst [vmem:[#allocation40_spill] sm:$0xff] %v5061_v22 }
 0x2d6   : > { %1907 = vrot.lane.b32.xlu0 %v5057_v11, %s3846_s12  ;;  %1901 = vrot.lane.b32.xlu1 %v5053_v24, %s3846_s12 }
 0x2d8   : > { %v5075_v4 = vpop.permute.xlu1 %1579  ;;  %v5077_v17 = vpop.permute.xlu0 %1584 }
 0x2d9   : > { %6814 = vst [vmem:[#allocation41_spill] sm:$0xff] %v5075_v4  ;;  %6815 = vst [vmem:[#allocation42_spill] sm:$0xff] %v5077_v17 }
 0x2da   : > { %1911 = vrot.lane.b32.xlu0 %v5073_v5, %s3846_s12  ;;  %1905 = vrot.lane.b32.xlu1 %v5069_v31, %s3846_s12 }
 0x2dc   : > { %v5091_v12 = vpop.permute.xlu1 %1589  ;;  %v5093_v28 = vpop.permute.xlu0 %1594 }
 0x2dd   : > { %6818 = vst [vmem:[#allocation9_spill] sm:$0xff] %v5091_v12  ;;  %6819 = vst [vmem:[#allocation11_spill] sm:$0xff] %v5093_v28 }
 0x2de   : > { %1915 = vrot.lane.b32.xlu0 %v5089_v25, %s3846_s12  ;;  %1909 = vrot.lane.b32.xlu1 %v5085_v46, %s3846_s12 }
 0x2e0   : > { %v5107_v27 = vpop.permute.xlu1 %1599  ;;  %v5109_v53 = vpop.permute.xlu0 %1604 }
 0x2e1   : > { %6822 = vst [vmem:[#allocation8_spill] sm:$0xff] %v5107_v27  ;;  %6823 = vst [vmem:[#allocation10_spill] sm:$0xff] %v5109_v53 }
 0x2e2   : > { %1919 = vrot.lane.b32.xlu0 %v5105_v51, %s3846_s12  ;;  %1913 = vrot.lane.b32.xlu1 %v5101_v32, %s3846_s12 }
 0x2e4   : > { %v5123_v8 = vpop.permute.xlu1 %1609  ;;  %v5125_v45 = vpop.permute.xlu0 %1614 }
 0x2e5   : > { %6826 = vst [vmem:[#allocation13_spill] sm:$0xff] %v5123_v8  ;;  %6827 = vst [vmem:[#allocation12_spill] sm:$0xff] %v5125_v45  ;;  %v6832_v45 = vld [vmem:[#allocation17_spill] sm:$0xff]  ;;  %v6833_v8 = vld [vmem:[#allocation16_spill] sm:$0xff] }
 0x2e6   : > { %1923 = vrot.lane.b32.xlu0 %v5121_v54, %s3846_s12  ;;  %1917 = vrot.lane.b32.xlu1 %v5117_v57, %s3846_s12  ;;  %v5149_v35 = vadd.f32 %v3743_v2, %v6832_v45  ;;  %v5153_v53 = vadd.f32 %v3744_v55, %v6833_v8  ;;  %v3746_v2 = vld [vmem:[%s4122_s22 + $0xf0] sm:$0xff] }
 0x2e7   : > { %v6837_v45 = vld [vmem:[#allocation18_spill] sm:$0xff] }
 0x2e8   : > { %v5139_v47 = vpop.permute.xlu1 %1619  ;;  %v5141_v60 = vpop.permute.xlu0 %1624  ;;  %v5169_v28 = vadd.f32 %v3746_v2, %v6837_v45  ;;  %v3748_v2 = vld [vmem:[%s4122_s22 + $0xf8] sm:$0xff]  ;;  %v6841_v45 = vld [vmem:[#allocation21_spill] sm:$0xff] }
 0x2e9   : > { %6830 = vst [vmem:[#allocation15_spill] sm:$0xff] %v5139_v47  ;;  %6831 = vst [vmem:[#allocation14_spill] sm:$0xff] %v5141_v60  ;;  %v3745_v60 = vld [vmem:[%s4122_s22 + $0xd8] sm:$0xff] }
 0x2ea   : > { %1927 = vrot.lane.b32.xlu0 %v5137_v41, %s3846_s12  ;;  %1921 = vrot.lane.b32.xlu1 %v5133_v38, %s3846_s12  ;;  %v6836_v47 = vld [vmem:[#allocation19_spill] sm:$0xff] }
 0x2eb   : > { %v5165_v27 = vadd.f32 %v3745_v60, %v6836_v47 }
 0x2ec   : > { %v5155_v13 = vpop.permute.xlu1 %1629  ;;  %v5157_v48 = vpop.permute.xlu0 %1634 }
 0x2ed   : > { %6834 = vst [vmem:[#allocation17_spill] sm:$0xff] %v5155_v13  ;;  %6835 = vst [vmem:[#allocation16_spill] sm:$0xff] %v5157_v48  ;;  %v3747_v13 = vld [vmem:[%s4122_s22 + $0xe8] sm:$0xff]  ;;  %v6840_v48 = vld [vmem:[#allocation20_spill] sm:$0xff]  ;;  %s3108_s22 = sld [smem:[#allocation3 + %s3412_s16]] }
 0x2ee   : > { %1931 = vrot.lane.b32.xlu0 %v5153_v53, %s3846_s12  ;;  %1925 = vrot.lane.b32.xlu1 %v5149_v35, %s3846_s12  ;;  %v5181_v12 = vadd.f32 %v3747_v13, %v6840_v48 }
 0x2f0   : > { %v5171_v8 = vpop.permute.xlu1 %1639  ;;  %v5173_v55 = vpop.permute.xlu0 %1644 }
 0x2f1   : > { %6838 = vst [vmem:[#allocation19_spill] sm:$0xff] %v5171_v8  ;;  %6839 = vst [vmem:[#allocation18_spill] sm:$0xff] %v5173_v55  ;;  %v5191_v8 = vadd.f32 %v3748_v2, %v6841_v45 }
 0x2f2   : > { %1935 = vrot.lane.b32.xlu0 %v5169_v28, %s3846_s12  ;;  %1929 = vrot.lane.b32.xlu1 %v5165_v27, %s3846_s12 }
 0x2f3   : > { %s3109_s25 = scvt.s32.f32 %s3108_s22  ;;  %s6628_s22 = scalar_lea.hbm %s6687_s6, %s3451_s19 }
 0x2f5   : > { %v5183_v60 = vpop.permute.xlu1 %1684  ;;  %v5185_v47 = vpop.permute.xlu0 %1688 }
 0x2f6   : > { %1933 = vrot.lane.b32.xlu1 %v5181_v12, %s3846_s12 }
 0x2f9   : > { %v5193_v55 = vpop.permute.xlu1 %1692  ;;  %v5195_v17 = vpop.permute.xlu0 %1700 }
 0x2fa   : > { %6842 = vst [vmem:[#allocation20_spill] sm:$0xff] %v5195_v17  ;;  %1937 = vrot.lane.b32.xlu1 %v5191_v8, %s3846_s12 }
 0x2fd   : > { %v5199_v13 = vpop.permute.xlu1 %1696  ;;  %v5201_v48 = vpop.permute.xlu0 %1708 }
 0x2fe   : > { %6843 = vst [vmem:[#allocation21_spill] sm:$0xff] %v5199_v13  ;;  %6844 = vst [vmem:[#allocation43_spill] sm:$0xff] %v5201_v48 }
 0x301   : > { %v5203_v4 = vpop.permute.xlu1 %1704  ;;  %v5205_v22 = vpop.permute.xlu0 %1716 }
 0x302   : > { %6845 = vst [vmem:[#allocation44_spill] sm:$0xff] %v5203_v4  ;;  %6846 = vst [vmem:[#allocation45_spill] sm:$0xff] %v5205_v22  ;;  %v903_v4 = vld [vmem:[%s4885_s18 + $0xc0] sm:$0xff] }
 0x305   : > { %v5207_v0 = vpop.permute.xlu1 %1712  ;;  %v5209_v3 = vpop.permute.xlu0 %1724 }
 0x306   : > { %6847 = vst [vmem:[#allocation46_spill] sm:$0xff] %v5207_v0  ;;  %6848 = vst [vmem:[#allocation47_spill] sm:$0xff] %v5209_v3 }
 0x309   : > { %v5211_v2 = vpop.permute.xlu1 %1720  ;;  %v5213_v45 = vpop.permute.xlu0 %1732 }
 0x30a   : > { %6849 = vst [vmem:[#allocation48_spill] sm:$0xff] %v5211_v2  ;;  %6850 = vst [vmem:[#allocation49_spill] sm:$0xff] %v5213_v45 }
 0x30d   : > { %v5215_v62 = vpop.permute.xlu1 %1728  ;;  %v5217_v23 = vpop.permute.xlu0 %1740 }
 0x30e   : > { %6851 = vst [vmem:[#allocation50_spill] sm:$0xff] %v5215_v62  ;;  %6852 = vst [vmem:[#allocation51_spill] sm:$0xff] %v5217_v23 }
 0x311   : > { %v5219_v15 = vpop.permute.xlu1 %1736  ;;  %v5221_v34 = vpop.permute.xlu0 %1748 }
 0x312   : > { %6853 = vst [vmem:[#allocation52_spill] sm:$0xff] %v5219_v15  ;;  %6854 = vst [vmem:[#allocation53_spill] sm:$0xff] %v5221_v34 }
 0x315   : > { %v5223_v61 = vpop.permute.xlu1 %1744  ;;  %v5225_v7 = vpop.permute.xlu0 %1756 }
 0x316   : > { %6855 = vst [vmem:[#allocation54_spill] sm:$0xff] %v5223_v61  ;;  %6856 = vst [vmem:[#allocation55_spill] sm:$0xff] %v5225_v7 }
 0x319   : > { %v5227_v42 = vpop.permute.xlu1 %1752  ;;  %v5229_v14 = vpop.permute.xlu0 %1764 }
 0x31a   : > { %6857 = vst [vmem:[#allocation56_spill] sm:$0xff] %v5227_v42  ;;  %6858 = vst [vmem:[#allocation57_spill] sm:$0xff] %v5229_v14 }
 0x31d   : > { %v5231_v3 = vpop.permute.xlu1 %1760  ;;  %v5233_v2 = vpop.permute.xlu0 %1772 }
 0x31e   : > { %6859 = vst [vmem:[#allocation58_spill] sm:$0xff] %v5231_v3  ;;  %6860 = vst [vmem:[#allocation59_spill] sm:$0xff] %v5233_v2 }
 0x321   : > { %v5235_v45 = vpop.permute.xlu1 %1768  ;;  %v5237_v62 = vpop.permute.xlu0 %1780 }
 0x322   : > { %6861 = vst [vmem:[#allocation60_spill] sm:$0xff] %v5235_v45  ;;  %6862 = vst [vmem:[#allocation61_spill] sm:$0xff] %v5237_v62 }
 0x325   : > { %v5239_v23 = vpop.permute.xlu1 %1776  ;;  %v5241_v15 = vpop.permute.xlu0 %1788 }
 0x326   : > { %6863 = vst [vmem:[#allocation62_spill] sm:$0xff] %v5239_v23  ;;  %6864 = vst [vmem:[#allocation63_spill] sm:$0xff] %v5241_v15 }
 0x329   : > { %v5243_v34 = vpop.permute.xlu1 %1784  ;;  %v5245_v61 = vpop.permute.xlu0 %1796 }
 0x32a   : > { %6865 = vst [vmem:[#allocation64_spill] sm:$0xff] %v5243_v34  ;;  %6866 = vst [vmem:[#allocation65_spill] sm:$0xff] %v5245_v61 }
 0x32d   : > { %v5247_v7 = vpop.permute.xlu1 %1792  ;;  %v5249_v42 = vpop.permute.xlu0 %1804 }
 0x32e   : > { %6867 = vst [vmem:[#allocation66_spill] sm:$0xff] %v5247_v7  ;;  %6868 = vst [vmem:[#allocation67_spill] sm:$0xff] %v5249_v42 }
 0x331   : > { %v5251_v14 = vpop.permute.xlu1 %1800  ;;  %v1876_v3 = vpop.permute.xlu0 %1875 }
 0x332   : > { %6869 = vst [vmem:[#allocation68_spill] sm:$0xff] %v5251_v14  ;;  %v1971_v2 = vsub.f32 %v4935_v30, %v1876_v3 }
 0x334   : > { %2005 = vperm.xlu0 %3521, %v1971_v2  }
 0x335   : > { %v5254_v45 = vpop.permute.xlu1 %1808  ;;  %v1880_v62 = vpop.permute.xlu0 %1879 }
 0x336   : > { %6870 = vst [vmem:[#allocation69_spill] sm:$0xff] %v5254_v45  ;;  %v1973_v7 = vsub.f32 %v4946_v29, %v1880_v62 }
 0x339   : > { %v1878_v23 = vpop.permute.xlu1 %1877  ;;  %v1884_v0 = vpop.permute.xlu0 %1883 }
 0x33a   : > { %v1972_v15 = vsub.f32 %v4957_v37, %v1878_v23  ;;  %v1975_v3 = vsub.f32 %v4961_v52, %v1884_v0 }
 0x33c   : > { %2010 = vperm.xlu1 %3522, %v1972_v15  }
 0x33d   : > { %v1882_v34 = vpop.permute.xlu1 %1881  ;;  %v1888_v61 = vpop.permute.xlu0 %1887 }
 0x33e   : > { %v1974_v42 = vsub.f32 %v4973_v16, %v1882_v34  ;;  %v1977_v15 = vsub.f32 %v4977_v6, %v1888_v61 }
 0x340   : > { %2020 = vperm.xlu0 %3521, %v1974_v42   ;;  %2015 = vperm.xlu1 %3522, %v1973_v7  }
 0x341   : > { %v1886_v14 = vpop.permute.xlu1 %1885  ;;  %v1892_v22 = vpop.permute.xlu0 %1891 }
 0x342   : > { %v1976_v2 = vsub.f32 %v4989_v10, %v1886_v14  ;;  %v1979_v42 = vsub.f32 %v4993_v18, %v1892_v22 }
 0x344   : > { %2030 = vperm.xlu0 %3521, %v1976_v2   ;;  %2025 = vperm.xlu1 %3522, %v1975_v3  }
 0x345   : > { %v1890_v45 = vpop.permute.xlu1 %1889  ;;  %v1896_v20 = vpop.permute.xlu0 %1895 }
 0x346   : > { %v1978_v23 = vsub.f32 %v5005_v1, %v1890_v45  ;;  %v1981_v3 = vsub.f32 %v5009_v50, %v1896_v20 }
 0x348   : > { %2040 = vperm.xlu0 %3521, %v1978_v23   ;;  %2035 = vperm.xlu1 %3522, %v1977_v15  }
 0x349   : > { %v1894_v62 = vpop.permute.xlu1 %1893  ;;  %v1900_v34 = vpop.permute.xlu0 %1899 }
 0x34a   : > { %v1980_v7 = vsub.f32 %v5021_v21, %v1894_v62  ;;  %v1983_v15 = vsub.f32 %v5025_v40, %v1900_v34 }
 0x34c   : > { %2050 = vperm.xlu0 %3521, %v1980_v7   ;;  %2045 = vperm.xlu1 %3522, %v1979_v42  }
 0x34d   : > { %v1898_v0 = vpop.permute.xlu1 %1897  ;;  %v1904_v14 = vpop.permute.xlu0 %1903 }
 0x34e   : > { %v1982_v2 = vsub.f32 %v5037_v59, %v1898_v0  ;;  %v1985_v42 = vsub.f32 %v5041_v9, %v1904_v14 }
 0x350   : > { %2060 = vperm.xlu0 %3521, %v1982_v2   ;;  %2055 = vperm.xlu1 %3522, %v1981_v3  }
 0x351   : > { %v1902_v61 = vpop.permute.xlu1 %1901  ;;  %v1908_v45 = vpop.permute.xlu0 %1907 }
 0x352   : > { %v1984_v23 = vsub.f32 %v5053_v24, %v1902_v61  ;;  %v1987_v3 = vsub.f32 %v5057_v11, %v1908_v45 }
 0x354   : > { %2070 = vperm.xlu0 %3521, %v1984_v23   ;;  %2065 = vperm.xlu1 %3522, %v1983_v15  }
 0x355   : > { %v1906_v22 = vpop.permute.xlu1 %1905  ;;  %v1912_v62 = vpop.permute.xlu0 %1911 }
 0x356   : > { %v1986_v7 = vsub.f32 %v5069_v31, %v1906_v22  ;;  %v1989_v15 = vsub.f32 %v5073_v5, %v1912_v62 }
 0x358   : > { %2080 = vperm.xlu0 %3521, %v1986_v7   ;;  %2075 = vperm.xlu1 %3522, %v1985_v42  }
 0x359   : > { %v1910_v20 = vpop.permute.xlu1 %1909  ;;  %v1916_v0 = vpop.permute.xlu0 %1915 }
 0x35a   : > { %v1988_v2 = vsub.f32 %v5085_v46, %v1910_v20  ;;  %v1991_v42 = vsub.f32 %v5089_v25, %v1916_v0 }
 0x35c   : > { %2090 = vperm.xlu0 %3521, %v1988_v2   ;;  %2085 = vperm.xlu1 %3522, %v1987_v3  }
 0x35d   : > { %v1914_v34 = vpop.permute.xlu1 %1913  ;;  %v1920_v61 = vpop.permute.xlu0 %1919 }
 0x35e   : > { %v1990_v23 = vsub.f32 %v5101_v32, %v1914_v34  ;;  %v1993_v20 = vsub.f32 %v5105_v51, %v1920_v61 }
 0x360   : > { %2100 = vperm.xlu0 %3521, %v1990_v23   ;;  %2095 = vperm.xlu1 %3522, %v1989_v15  }
 0x361   : > { %v1918_v14 = vpop.permute.xlu1 %1917  ;;  %v1924_v22 = vpop.permute.xlu0 %1923 }
 0x362   : > { %v1992_v7 = vsub.f32 %v5117_v57, %v1918_v14  ;;  %v1995_v34 = vsub.f32 %v5121_v54, %v1924_v22 }
 0x364   : > { %2110 = vperm.xlu0 %3521, %v1992_v7   ;;  %2105 = vperm.xlu1 %3522, %v1991_v42  }
 0x365   : > { %v1922_v45 = vpop.permute.xlu1 %1921  ;;  %v1928_v2 = vpop.permute.xlu0 %1927 }
 0x366   : > { %v1994_v3 = vsub.f32 %v5133_v38, %v1922_v45  ;;  %v1997_v14 = vsub.f32 %v5137_v41, %v1928_v2  ;;  %v3849_v2 = vmov 1  }
 0x368   : > { %2120 = vperm.xlu0 %3521, %v1994_v3   ;;  %2115 = vperm.xlu1 %3522, %v1993_v20  }
 0x369   : > { %v1926_v62 = vpop.permute.xlu1 %1925  ;;  %v1932_v0 = vpop.permute.xlu0 %1931 }
 0x36a   : > { %v1996_v15 = vsub.f32 %v5149_v35, %v1926_v62  ;;  %v1999_v7 = vsub.f32 %v5153_v53, %v1932_v0 }
 0x36c   : > { %2130 = vperm.xlu0 %3521, %v1996_v15   ;;  %2125 = vperm.xlu1 %3522, %v1995_v34   ;;  %v888_v34 = vld [vmem:[%s4885_s18 + $0x48] sm:$0xff] }
 0x36d   : > { %v1930_v23 = vpop.permute.xlu1 %1929  ;;  %v1936_v20 = vpop.permute.xlu0 %1935 }
 0x36e   : > { %v1998_v42 = vsub.f32 %v5165_v27, %v1930_v23  ;;  %v2001_v3 = vsub.f32 %v5169_v28, %v1936_v20 }
 0x370   : > { %2140 = vperm.xlu0 %3521, %v1998_v42   ;;  %2135 = vperm.xlu1 %3522, %v1997_v14   ;;  %v891_v14 = vld [vmem:[%s4885_s18 + $0x60] sm:$0xff] }
 0x371   : > { %v1934_v61 = vpop.permute.xlu1 %1933 }
 0x372   : > { %v2000_v45 = vsub.f32 %v5181_v12, %v1934_v61 }
 0x374   : > { %2150 = vperm.xlu0 %3521, %v2000_v45   ;;  %2145 = vperm.xlu1 %3522, %v1999_v7   ;;  %v890_v45 = vld [vmem:[%s4885_s18 + $0x58] sm:$0xff] }
 0x375   : > { %v1938_v22 = vpop.permute.xlu1 %1937 }
 0x376   : > { %v2002_v62 = vsub.f32 %v5191_v8, %v1938_v22 }
 0x378   : > { %2160 = vperm.xlu0 %3521, %v2002_v62   ;;  %2155 = vperm.xlu1 %3522, %v2001_v3  }
 0x37c   : > { %3524 = vset.pattern.permute.xlu0 %v3849_v2  ;;  %3523 = vset.pattern.permute.xlu1 %v3849_v2  ;;  %v5394_v2 = vmul.f32 %v4896_v39, %v888_v34 }
 0x37d   : > { %2200 = vperm.xlu0 %3524, %v4957_v37   ;;  %2196 = vperm.xlu1 %3523, %v4935_v30  }
 0x381   : > { %2212 = vperm.xlu0 %3524, %v4961_v52   ;;  %2204 = vperm.xlu1 %3523, %v4946_v29  }
 0x385   : > { %2220 = vperm.xlu0 %3524, %v4977_v6   ;;  %2208 = vperm.xlu1 %3523, %v4973_v16   ;;  %v879_v16 = vld [vmem:[%s4885_s18] sm:$0xff] }
 0x389   : > { %2228 = vperm.xlu0 %3524, %v4993_v18   ;;  %2216 = vperm.xlu1 %3523, %v4989_v10   ;;  %v880_v18 = vld [vmem:[%s4885_s18 + $0x8] sm:$0xff] }
 0x38d   : > { %2236 = vperm.xlu0 %3524, %v5009_v50   ;;  %2224 = vperm.xlu1 %3523, %v5005_v1   ;;  %v881_v1 = vld [vmem:[%s4885_s18 + $0x10] sm:$0xff]  ;;  %v5335_v50 = vmul.f32 %v4896_v39, %v879_v16 }
 0x38e   : > { %v893_v16 = vld [vmem:[%s4885_s18 + $0x70] sm:$0xff] }
 0x391   : > { %2244 = vperm.xlu0 %3524, %v5025_v40   ;;  %2232 = vperm.xlu1 %3523, %v5021_v21   ;;  %v883_v21 = vld [vmem:[%s4885_s18 + $0x20] sm:$0xff]  ;;  %v5339_v40 = vmul.f32 %v4896_v39, %v880_v18 }
 0x395   : > { %2252 = vperm.xlu0 %3524, %v5041_v9   ;;  %2240 = vperm.xlu1 %3523, %v5037_v59   ;;  %v882_v59 = vld [vmem:[%s4885_s18 + $0x18] sm:$0xff] }
 0x399   : > { %2260 = vperm.xlu0 %3524, %v5057_v11   ;;  %2248 = vperm.xlu1 %3523, %v5053_v24   ;;  %v5347_v11 = vmul.f32 %v4896_v39, %v881_v1 }
 0x39d   : > { %2268 = vperm.xlu0 %3524, %v5073_v5   ;;  %2256 = vperm.xlu1 %3523, %v5069_v31   ;;  %v885_v31 = vld [vmem:[%s4885_s18 + $0x30] sm:$0xff]  ;;  %v5351_v5 = vmul.f32 %v4896_v39, %v883_v21  ;;  %v5399_v21 = vmul.f32 %v4896_v39, %v891_v14 }
 0x3a1   : > { %2276 = vperm.xlu0 %3524, %v5089_v25   ;;  %2264 = vperm.xlu1 %3523, %v5085_v46   ;;  %v884_v46 = vld [vmem:[%s4885_s18 + $0x28] sm:$0xff]  ;;  %v2391_v25 = vmin.f32 %v5335_v50, 4.1351666 }
 0x3a3   : > { %v2423_v15 = vmul.f32 1.442695, %v2391_v25  ;;  %v5404_v25 = vmul.f32 %v4896_v39, %v890_v45  ;;  %v2403_v45 = vmin.f32 %v5399_v21, 4.1351666 }
 0x3a5   : > { %2284 = vperm.xlu0 %3524, %v5105_v51   ;;  %2272 = vperm.xlu1 %3523, %v5101_v32   ;;  %v2392_v32 = vmin.f32 %v5339_v40, 4.1351666  ;;  %v5361_v51 = vmul.f32 %v4896_v39, %v885_v31  ;;  %3653 = vpow2.f32 %v2423_v15 }
 0x3a7   : > { %v2425_v42 = vmul.f32 1.442695, %v2392_v32  ;;  %v2397_v61 = vmin.f32 %v5361_v51, 4.1351666 }
 0x3a9   : > { %2292 = vperm.xlu0 %3524, %v5121_v54   ;;  %2280 = vperm.xlu1 %3523, %v5117_v57   ;;  %v2393_v54 = vmin.f32 %v5347_v11, 4.1351666  ;;  %3655 = vpow2.f32 %v2425_v42  ;;  %v2435_v32 = vmul.f32 1.442695, %v2397_v61  ;;  %v897_v42 = vld [vmem:[%s4885_s18 + $0x90] sm:$0xff] }
 0x3ab   : > { %v2427_v3 = vmul.f32 1.442695, %v2393_v54  ;;  %v5409_v54 = vmul.f32 %v4896_v39, %v893_v16 }
 0x3ad   : > { %2300 = vperm.xlu0 %3524, %v5137_v41   ;;  %2288 = vperm.xlu1 %3523, %v5133_v38   ;;  %v5370_v38 = vmul.f32 %v4896_v39, %v884_v46  ;;  %v889_v41 = vld [vmem:[%s4885_s18 + $0x50] sm:$0xff]  ;;  %3657 = vpow2.f32 %v2427_v3  ;;  %v2402_v3 = vmin.f32 %v5404_v25, 4.1351666 }
 0x3ae   : > { %v5385_v7 = vmul.f32 %v4896_v39, %v889_v41  ;;  %v894_v41 = vld [vmem:[%s4885_s18 + $0x78] sm:$0xff] }
 0x3af   : > { %v5317_v30 = vpop.permute.xlu0 %2005  ;;  %v2396_v62 = vmin.f32 %v5370_v38, 4.1351666 }
 0x3b1   : > { %2308 = vperm.xlu0 %3524, %v5153_v53   ;;  %2296 = vperm.xlu1 %3523, %v5149_v35   ;;  %v2395_v35 = vmin.f32 %v5351_v5, 4.1351666  ;;  %v2433_v15 = vmul.f32 1.442695, %v2396_v62  ;;  %v5428_v62 = vmul.f32 %v4896_v39, %v894_v41 }
 0x3b3   : > { %v2431_v18 = vmul.f32 1.442695, %v2395_v35 }
 0x3b5   : > { %2316 = vperm.xlu0 %3524, %v5169_v28   ;;  %2304 = vperm.xlu1 %3523, %v5165_v27   ;;  %v887_v28 = vld [vmem:[%s4885_s18 + $0x40] sm:$0xff]  ;;  %v886_v27 = vld [vmem:[%s4885_s18 + $0x38] sm:$0xff]  ;;  %3659 = vpow2.f32 %v2431_v18  ;;  %v5433_v18 = vmul.f32 %v4896_v39, %v897_v42 }
 0x3b6   : > { %v5380_v23 = vmul.f32 %v4896_v39, %v886_v27  ;;  %v2401_v27 = vmin.f32 %v5385_v7, 4.1351666 }
 0x3b7   : > { %v5319_v29 = vpop.permute.xlu1 %2010 }
 0x3b8   : > { %v2398_v46 = vmin.f32 %v5380_v23, 4.1351666 }
 0x3b9   : > { %2312 = vperm.xlu1 %3523, %v5181_v12   ;;  %v5356_v12 = vmul.f32 %v4896_v39, %v882_v59  ;;  %v892_v59 = vld [vmem:[%s4885_s18 + $0x68] sm:$0xff] }
 0x3ba   : > { %v5418_v14 = vmul.f32 %v4896_v39, %v892_v59  ;;  %v2443_v59 = vmul.f32 1.442695, %v2401_v27 }
 0x3bb   : > { %v5322_v37 = vpop.permute.xlu1 %2015  ;;  %v5324_v52 = vpop.permute.xlu0 %2020  ;;  %v2394_v0 = vmin.f32 %v5356_v12, 4.1351666 }
 0x3bc   : > { %6871 = vst [vmem:[#allocation70_spill] sm:$0xff] %v5324_v52 }
 0x3bd   : > { %2320 = vperm.xlu1 %3523, %v5191_v8   ;;  %v5375_v8 = vmul.f32 %v4896_v39, %v887_v28  ;;  %v2429_v31 = vmul.f32 1.442695, %v2394_v0  ;;  %v895_v28 = vld [vmem:[%s4885_s18 + $0x80] sm:$0xff]  ;;  %v2400_v0 = vmin.f32 %v5394_v2, 4.1351666 }
 0x3be   : > { %v5423_v16 = vmul.f32 %v4896_v39, %v895_v28 }
 0x3bf   : > { %v5328_v6 = vpop.permute.xlu1 %2025  ;;  %v5330_v10 = vpop.permute.xlu0 %2030  ;;  %v2399_v1 = vmin.f32 %v5375_v8, 4.1351666  ;;  %3661 = vpow2.f32 %v2429_v31  ;;  %v2441_v31 = vmul.f32 1.442695, %v2400_v0 }
 0x3c0   : > { %6872 = vst [vmem:[#allocation71_spill] sm:$0xff] %v5330_v10  ;;  %3663 = vpow2.f32 %v2435_v32  ;;  %v2447_v32 = vmul.f32 1.442695, %v2403_v45  ;;  %v2407_v27 = vmin.f32 %v5423_v16, 4.1351666 }
 0x3c1   : > { %v2439_v61 = vmul.f32 1.442695, %v2399_v1  ;;  %v898_v1 = vld [vmem:[%s4885_s18 + $0x98] sm:$0xff]  ;;  %3665 = vpow2.f32 %v2433_v15  ;;  %v901_v15 = vld [vmem:[%s4885_s18 + $0xb0] sm:$0xff] }
 0x3c3   : > { %v5342_v9 = vpop.permute.xlu1 %2035  ;;  %v5344_v24 = vpop.permute.xlu0 %2040  ;;  %3667 = vpow2.f32 %v2439_v61 }
 0x3c4   : > { %6873 = vst [vmem:[#allocation72_spill] sm:$0xff] %v5342_v9  ;;  %6874 = vst [vmem:[#allocation73_spill] sm:$0xff] %v5344_v24  ;;  %v2445_v24 = vmul.f32 1.442695, %v2402_v3 }
 0x3c7   : > { %v5364_v53 = vpop.permute.xlu1 %2045  ;;  %v5366_v57 = vpop.permute.xlu0 %2050 }
 0x3c8   : > { %6875 = vst [vmem:[#allocation74_spill] sm:$0xff] %v5364_v53  ;;  %6876 = vst [vmem:[#allocation75_spill] sm:$0xff] %v5366_v57  ;;  %v2405_v57 = vmin.f32 %v5409_v54, 4.1351666 }
 0x3ca   : > { %v2451_v0 = vmul.f32 1.442695, %v2405_v57 }
 0x3cb   : > { %v5388_v20 = vpop.permute.xlu1 %2055  ;;  %v5390_v22 = vpop.permute.xlu0 %2060 }
 0x3cc   : > { %6877 = vst [vmem:[#allocation76_spill] sm:$0xff] %v5388_v20  ;;  %6878 = vst [vmem:[#allocation77_spill] sm:$0xff] %v5390_v22  ;;  %v896_v22 = vld [vmem:[%s4885_s18 + $0x88] sm:$0xff] }
 0x3cd   : > { %v5442_v41 = vmul.f32 %v4896_v39, %v896_v22  ;;  %v2409_v22 = vmin.f32 %v5433_v18, 4.1351666 }
 0x3cf   : > { %v5412_v35 = vpop.permute.xlu1 %2065  ;;  %v5414_v34 = vpop.permute.xlu0 %2070 }
 0x3d0   : > { %6879 = vst [vmem:[#allocation78_spill] sm:$0xff] %v5412_v35  ;;  %6880 = vst [vmem:[#allocation79_spill] sm:$0xff] %v5414_v34  ;;  %v2437_v35 = vmul.f32 1.442695, %v2398_v46  ;;  %v899_v34 = vld [vmem:[%s4885_s18 + $0xa0] sm:$0xff] }
 0x3d1   : > { %v2404_v46 = vmin.f32 %v5418_v14, 4.1351666  ;;  %v5446_v42 = vmul.f32 %v4896_v39, %v899_v34  ;;  %v2408_v34 = vmin.f32 %v5442_v41, 4.1351666 }
 0x3d2   : > { %3669 = vpow2.f32 %v2437_v35  ;;  %v2455_v35 = vmul.f32 1.442695, %v2407_v27 }
 0x3d3   : > { %v5436_v28 = vpop.permute.xlu1 %2075  ;;  %v5438_v20 = vpop.permute.xlu0 %2080  ;;  %3671 = vpow2.f32 %v2443_v59  ;;  %v2449_v45 = vmul.f32 1.442695, %v2404_v46  ;;  %v2411_v3 = vmin.f32 %v5446_v42, 4.1351666  ;;  %v2457_v53 = vmul.f32 1.442695, %v2408_v34 }
 0x3d4   : > { %6881 = vst [vmem:[#allocation80_spill] sm:$0xff] %v5436_v28  ;;  %6882 = vst [vmem:[#allocation81_spill] sm:$0xff] %v5438_v20  ;;  %v2406_v28 = vmin.f32 %v5428_v62, 4.1351666  ;;  %v5450_v20 = vmul.f32 %v4896_v39, %v898_v1  ;;  %3673 = vpow2.f32 %v2441_v31  ;;  %v5461_v1 = vmul.f32 %v4896_v39, %v901_v15  ;;  %v900_v15 = vld [vmem:[%s4885_s18 + $0xa8] sm:$0xff] }
 0x3d5   : > { %3675 = vpow2.f32 %v2447_v32  ;;  %v2459_v31 = vmul.f32 1.442695, %v2409_v22 }
 0x3d6   : > { %3677 = vpow2.f32 %v2445_v24  ;;  %v2453_v57 = vmul.f32 1.442695, %v2406_v28  ;;  %v2410_v59 = vmin.f32 %v5450_v20, 4.1351666  ;;  %v2463_v24 = vmul.f32 1.442695, %v2411_v3 }
 0x3d7   : > { %v5454_v36 = vpop.permute.xlu1 %2085  ;;  %v5456_v61 = vpop.permute.xlu0 %2090  ;;  %3679 = vpow2.f32 %v2451_v0  ;;  %v2413_v28 = vmin.f32 %v5461_v1, 4.1351666 }
 0x3d8   : > { %6883 = vst [vmem:[#allocation82_spill] sm:$0xff] %v5454_v36  ;;  %6884 = vst [vmem:[#allocation83_spill] sm:$0xff] %v5456_v61  ;;  %v3654_v36 = vpop.eup %3653  ;;  %v2521_v61 = vsub.s32 1, %v4876_v63  ;;  %3681 = vpow2.f32 %v2449_v45  ;;  %v2461_v49 = vmul.f32 1.442695, %v2410_v59  ;;  %v5479_v45 = vmul.f32 %v4896_v39, %v900_v15 }
 0x3d9   : > { %v5469_v27 = vpop.eup %3655  ;;  %3683 = vpow2.f32 %v2455_v35  ;;  %v2487_v22 = vsub.f32 %v5335_v50, %v3654_v36 }
 0x3da   : > { %v3658_v10 = vpop.eup %3657  ;;  %3685 = vpow2.f32 %v2453_v57  ;;  %6887 = vst [vmem:[#allocation86_spill] sm:$0xff] %v5479_v45  ;;  %v5486_v57 = vmul.f32 %v4896_v39, %v903_v4  ;;  %v2488_v50 = vsub.f32 %v5339_v40, %v5469_v27  ;;  %v2412_v26 = vmin.f32 %v5479_v45, 4.1351666  ;;  %v902_v40 = vld [vmem:[%s4885_s18 + $0xb8] sm:$0xff] }
 0x3db   : > { %v5465_v46 = vpop.permute.xlu1 %2095  ;;  %v5467_v32 = vpop.permute.xlu0 %2100  ;;  %3687 = vpow2.f32 %v2459_v31  ;;  %v2467_v31 = vmul.f32 1.442695, %v2413_v28 }
 0x3dc   : > { %6885 = vst [vmem:[#allocation84_spill] sm:$0xff] %v5465_v46  ;;  %6886 = vst [vmem:[#allocation85_spill] sm:$0xff] %v5467_v32  ;;  %v3660_v48 = vpop.eup %3659  ;;  %v5476_v46 = vrot.slane %v4892_v56, %v2521_v61  ;;  %3689 = vpow2.f32 %v2457_v53  ;;  %v2489_v61 = vsub.f32 %v5347_v11, %v3658_v10  ;;  %v2465_v17 = vmul.f32 1.442695, %v2412_v26 }
 0x3dd   : > { %v3662_v0 = vpop.eup %3661  ;;  %6890 = vst [vmem:[#allocation89_spill] sm:$0xff] %v5486_v57  ;;  %3691 = vpow2.f32 %v2463_v24  ;;  %v2491_v32 = vsub.f32 %v5351_v5, %v3660_v48 }
 0x3de   : > { %v3664_v3 = vpop.eup %3663  ;;  %3693 = vpow2.f32 %v2461_v49  ;;  %v2523_v4 = vmul.f32 %v5476_v46, %v2487_v22  ;;  %v2415_v49 = vmin.f32 %v5486_v57, 4.1351666  ;;  %v2524_v53 = vmul.f32 %v5476_v46, %v2488_v50 }
 0x3df   : > { %v5481_v34 = vpop.permute.xlu1 %2105  ;;  %v5483_v35 = vpop.permute.xlu0 %2110  ;;  %v2493_v5 = vsub.f32 %v5361_v51, %v3664_v3  ;;  %v2525_v22 = vmul.f32 %v5476_v46, %v2489_v61  ;;  %3695 = vpow2.f32 %v2467_v31  ;;  %v6893_v50 = vsub.s32 2, %v4876_v63 }
 0x3e0   : > { %6888 = vst [vmem:[#allocation87_spill] sm:$0xff] %v5481_v34  ;;  %6889 = vst [vmem:[#allocation88_spill] sm:$0xff] %v5483_v35  ;;  %v5488_v59 = vpop.eup %3665  ;;  %v2490_v34 = vsub.f32 %v5356_v12, %v3662_v0  ;;  %v5550_v26 = vadd.f32 %v5469_v27, %v2524_v53  ;;  %3697 = vpow2.f32 %v2465_v17 }
 0x3e1   : > { %v5493_v15 = vpop.eup %3667  ;;  %v2492_v12 = vsub.f32 %v5370_v38, %v5488_v59  ;;  %v5530_v61 = vrot.slane %v4892_v56, %v6893_v50  ;;  %v5532_v38 = vadd.f32 %v3654_v36, %v2523_v4  ;;  %v2471_v50 = vmul.f32 1.442695, %v2415_v49  ;;  %v905_v36 = vld [vmem:[%s4885_s18 + $0xd0] sm:$0xff] }
 0x3e2   : > { %v5496_v35 = vpop.eup %3669  ;;  %v2495_v51 = vsub.f32 %v5375_v8, %v5493_v15  ;;  %v2526_v31 = vmul.f32 %v5476_v46, %v2490_v34  ;;  %v5552_v34 = vadd.f32 %v3658_v10, %v2525_v22 }
 0x3e3   : > { %v5503_v9 = vpop.permute.xlu1 %2115  ;;  %v5505_v11 = vpop.permute.xlu0 %2120  ;;  %v2494_v45 = vsub.f32 %v5380_v23, %v5496_v35  ;;  %v2528_v63 = vmul.f32 %v5476_v46, %v2492_v12  ;;  %3699 = vpow2.f32 %v2471_v50 }
 0x3e4   : > { %6891 = vst [vmem:[#allocation90_spill] sm:$0xff] %v5503_v9  ;;  %6892 = vst [vmem:[#allocation91_spill] sm:$0xff] %v5505_v11  ;;  %v5507_v24 = vpop.eup %3671  ;;  %v2527_v11 = vmul.f32 %v5476_v46, %v2491_v32  ;;  %v5523_v9 = vmul.f32 %v4896_v39, %v902_v40  ;;  %v2529_v40 = vmul.f32 %v5476_v46, %v2493_v5 }
 0x3e5   : > { %v5511_v28 = vpop.eup %3673  ;;  %v2497_v56 = vsub.f32 %v5385_v7, %v5507_v24  ;;  %v2531_v7 = vmul.f32 %v5476_v46, %v2495_v51  ;;  %v5565_v53 = vadd.f32 %v3662_v0, %v2526_v31  ;;  %v5581_v31 = vadd.f32 %v5488_v59, %v2528_v63 }
 0x3e6   : > { %v5517_v52 = vpop.eup %3675  ;;  %v2496_v5 = vsub.f32 %v5394_v2, %v5511_v28  ;;  %v5559_v23 = vadd.f32 %v3660_v48, %v2527_v11  ;;  %v5570_v2 = vmul.f32 %v4896_v39, %v905_v36  ;;  %v5576_v12 = vadd.f32 %v3664_v3, %v2529_v40 }
 0x3e7   : > { %v5525_v13 = vpop.eup %3677  ;;  %v5535_v57 = vpop.permute.xlu1 %2125  ;;  %v2499_v49 = vsub.f32 %v5399_v21, %v5517_v52  ;;  %v2530_v21 = vmul.f32 %v5476_v46, %v2494_v45  ;;  %v2533_v0 = vmul.f32 %v5476_v46, %v2497_v56  ;;  %6898 = vst [vmem:[#allocation96_spill] sm:$0xff] %v5581_v31  ;;  %v5590_v40 = vadd.f32 %v5493_v15, %v2531_v7 }
 0x3e8   : > { %6894 = vst [vmem:[#allocation92_spill] sm:$0xff] %v5535_v57  ;;  %v5537_v32 = vpop.permute.xlu0 %2130  ;;  %v5539_v8 = vpop.eup %3679  ;;  %v2414_v57 = vmin.f32 %v5523_v9, 4.1351666  ;;  %v2498_v10 = vsub.f32 %v5404_v25, %v5525_v13  ;;  %v2532_v17 = vmul.f32 %v5476_v46, %v2496_v5 }
 0x3e9   : > { %6895 = vst [vmem:[#allocation93_spill] sm:$0xff] %v5537_v32  ;;  %v5547_v4 = vpop.eup %3681  ;;  %v2501_v25 = vsub.f32 %v5409_v54, %v5539_v8  ;;  %v2535_v45 = vmul.f32 %v5476_v46, %v2499_v49  ;;  %v5604_v15 = vadd.f32 %v5496_v35, %v2530_v21  ;;  %v5607_v7 = vadd.f32 %v5507_v24, %v2533_v0 }
 0x3ea   : > { %v5557_v32 = vpop.eup %3683  ;;  %v2500_v36 = vsub.f32 %v5418_v14, %v5547_v4  ;;  %v2469_v63 = vmul.f32 1.442695, %v2414_v57  ;;  %v2534_v50 = vmul.f32 %v5476_v46, %v2498_v10  ;;  %v2417_v14 = vmin.f32 %v5570_v2, 4.1351666 }
 0x3eb   : > { %v3686_v27 = vpop.eup %3685  ;;  %v5572_v48 = vpop.permute.xlu1 %2135  ;;  %v2503_v56 = vsub.f32 %v5423_v16, %v5557_v32  ;;  %v5620_v35 = vadd.f32 %v5517_v52, %v2535_v45  ;;  %v1651_v52 = vmul.f32 %v5530_v61, %v4937_v19 }
 0x3ec   : > { %6896 = vst [vmem:[#allocation94_spill] sm:$0xff] %v5572_v48  ;;  %v5574_v11 = vpop.permute.xlu0 %2140  ;;  %v3688_v22 = vpop.eup %3687  ;;  %v2502_v5 = vsub.f32 %v5428_v62, %v3686_v27  ;;  %v5614_v62 = vadd.f32 %v5511_v28, %v2532_v17  ;;  %v2536_v49 = vmul.f32 %v5476_v46, %v2500_v36  ;;  %3701 = vpow2.f32 %v2469_v63 }
 0x3ed   : > { %6897 = vst [vmem:[#allocation95_spill] sm:$0xff] %v5574_v11  ;;  %v3690_v51 = vpop.eup %3689  ;;  %v904_v11 = vld [vmem:[%s4885_s18 + $0xc8] sm:$0xff]  ;;  %v2505_v54 = vsub.f32 %v5433_v18, %v3688_v22  ;;  %v2537_v18 = vmul.f32 %v5476_v46, %v2501_v25  ;;  %v2539_v24 = vmul.f32 %v5476_v46, %v2503_v56  ;;  %v2475_v21 = vmul.f32 1.442695, %v2417_v14  ;;  %s6398_s18 = scalar_lea.vmem [#allocation4], %s3371_s17 }
 0x3ee   : > { %v3692_v3 = vpop.eup %3691  ;;  %v2504_v16 = vsub.f32 %v5442_v41, %v3690_v51  ;;  %v5611_v57 = vmul.f32 %v4896_v39, %v904_v11  ;;  %v5625_v39 = vadd.f32 %v5525_v13, %v2534_v50  ;;  %v2538_v28 = vmul.f32 %v5476_v46, %v2502_v5  ;;  %s3245_s20 = sshll.u32 %s6398_s18, 4  ;;  %s6630_s20 = int_to_ptr.vmem [resolvable:$true] %s3245_s20 }
 0x3ef   : > { %v3694_v59 = vpop.eup %3693  ;;  %v5599_v48 = vpop.permute.xlu1 %2145  ;;  %v2507_v10 = vsub.f32 %v5446_v42, %v3692_v3  ;;  %v2541_v11 = vmul.f32 %v5476_v46, %v2505_v54  ;;  %v1652_v17 = vmul.f32 %v5530_v61, %v4939_v44  ;;  %v5640_v25 = vadd.f32 %v5539_v8, %v2537_v18  ;;  %s3762_s28 = scalar_lea.vmem %s6630_s20, 4096 }
 0x3f0   : > { %6899 = vst [vmem:[#allocation97_spill] sm:$0xff] %v5599_v48  ;;  %v5601_v31 = vpop.permute.xlu0 %2150  ;;  %v3696_v48 = vpop.eup %3695  ;;  %v2506_v41 = vsub.f32 %v5450_v20, %v3694_v59  ;;  %v2540_v20 = vmul.f32 %v5476_v46, %v2504_v16  ;;  %v2416_v13 = vmin.f32 %v5611_v57, 4.1351666  ;;  %v5643_v36 = vadd.f32 %v5547_v4, %v2536_v49  ;;  %p3763_p3 = scmp.ne.s32.totalorder %s6630_s20, %s3762_s28 }
 0x3f1   : > { %v2543_v45 = vmul.f32 %v5476_v46, %v2507_v10  ;;  %v2509_v56 = vsub.f32 %v5461_v1, %v3696_v48  ;;  %v1811_v63 = vadd.f32 %v5183_v60, %v1651_v52  ;;  %v1812_v19 = vadd.f32 %v5185_v47, %v1652_v17  ;;  %v5659_v54 = vpop.eup %3697 }
 0x3f2   : > { %v5650_v44 = vadd.f32 %v5557_v32, %v2539_v24  ;;  %v2542_v50 = vmul.f32 %v5476_v46, %v2506_v41  ;;  %v5653_v5 = vadd.f32 %v3686_v27, %v2538_v28  ;;  %3703 = vpow2.f32 %v2475_v21  ;;  %v5667_v16 = vpop.eup %3699  ;;  %p3764_p4 = pnand %p3763_p3, %p3931_p9 }
 0x3f3   : > { %v5629_v0 = vpop.permute.xlu1 %2155  ;;  %v2163_v8 = vmul.f32 %v5317_v30, %v5530_v61  ;;  %v2164_v4 = vmul.f32 %v5319_v29, %v5530_v61  ;;  %v1653_v60 = vmul.f32 %v5530_v61, %v4948_v58  ;;  %v5663_v47 = vadd.f32 %v3688_v22, %v2541_v11 }
 0x3f4   : > { %v5631_v42 = vpop.permute.xlu0 %2160  ;;  %v5665_v1 = vadd.f32 %v3690_v51, %v2540_v20  ;;  %v2473_v32 = vmul.f32 1.442695, %v2416_v13  ;;  %v5669_v18 = vadd.f32 %v3692_v3, %v2543_v45  ;;  %v2545_v30 = vmul.f32 %v5476_v46, %v2509_v56  ;;  %p3765_p5 = pneg %p3764_p4 }
 0x3f5   : > { %v2587_v10 = vmul.f32 %v5532_v38, %v1811_v63  ;;  %v2588_v24 = vmul.f32 %v5550_v26, %v1812_v19  ;;  %v1813_v58 = vadd.f32 %v5193_v55, %v1653_v60  ;;  %v5675_v22 = vadd.f32 %v3694_v59, %v2542_v50  ;;  %v6900_v55 = vld [vmem:[#allocation86_spill] sm:$0xff]  ;;  %v6901_v59 = vld [vmem:[#allocation89_spill] sm:$0xff]  ;;  %v6905_v60 = vld [vmem:[#allocation72_spill] sm:$0xff] }
 0x3f6   : > { %v2165_v51 = vmul.f32 %v5322_v37, %v5530_v61  ;;  %v2167_v41 = vmul.f32 %v5328_v6, %v5530_v61  ;;  %v1654_v11 = vmul.f32 %v5530_v61, %v4950_v33  ;;  %v1655_v38 = vmul.f32 %v5530_v61, %v4963_v43  ;;  %v6902_v33 = vld [vmem:[#allocation20_spill] sm:$0xff]  ;;  %v6903_v63 = vld [vmem:[#allocation21_spill] sm:$0xff] }
 0x3f7   : > { %v2508_v26 = vsub.f32 %v6900_v55, %v5659_v54  ;;  %v2511_v21 = vsub.f32 %v6901_v59, %v5667_v16  ;;  %v2589_v45 = vmul.f32 %v5552_v34, %v1813_v58  ;;  %v5698_v19 = vadd.f32 %v3696_v48, %v2545_v30  ;;  %v6906_v34 = vld [vmem:[#allocation28_spill] sm:$0xff]  ;;  %v6907_v30 = vld [vmem:[#allocation29_spill] sm:$0xff] }
 0x3f8   : > { %v2197_v14 = vpop.permute.xlu1 %2196  ;;  %v2201_v27 = vpop.permute.xlu0 %2200  ;;  %v1815_v56 = vadd.f32 %v6902_v33, %v1655_v38  ;;  %v1814_v43 = vadd.f32 %v6903_v63, %v1654_v11  ;;  %3705 = vpow2.f32 %v2473_v32  ;;  %v1656_v48 = vmul.f32 %v5530_v61, %v6906_v34  ;;  %v6909_v11 = vld [vmem:[#allocation43_spill] sm:$0xff]  ;;  %v6910_v55 = vld [vmem:[#allocation44_spill] sm:$0xff]  ;;  %v6913_v33 = vld [vmem:[#allocation30_spill] sm:$0xff] }
 0x3f9   : > { %v2323_v49 = vadd.f32 %v2197_v14, %v2163_v8  ;;  %v2324_v29 = vadd.f32 %v2201_v27, %v2164_v4  ;;  %v5700_v50 = vpop.eup %3701  ;;  %v6904_v8 = vld [vmem:[#allocation70_spill] sm:$0xff]  ;;  %v2169_v14 = vmul.f32 %v6905_v60, %v5530_v61  ;;  %v1657_v32 = vmul.f32 %v5530_v61, %v6907_v30  ;;  %v6914_v63 = vld [vmem:[#allocation31_spill] sm:$0xff] }
 0x3fa   : > { %v2166_v4 = vmul.f32 %v6904_v8, %v5530_v61  ;;  %v1816_v59 = vadd.f32 %v6910_v55, %v1656_v48  ;;  %v1659_v8 = vmul.f32 %v5530_v61, %v6914_v63 }
 0x3fb   : > { %v2619_v3 = vmul.f32 %v5476_v46, %v2323_v49  ;;  %v2620_v28 = vmul.f32 %v5476_v46, %v2324_v29  ;;  %v2544_v49 = vmul.f32 %v5476_v46, %v2508_v26  ;;  %v2547_v29 = vmul.f32 %v5476_v46, %v2511_v21  ;;  %v6911_v21 = vld [vmem:[#allocation71_spill] sm:$0xff] }
 0x3fc   : > { %v2205_v37 = vpop.permute.xlu1 %2204  ;;  %v2213_v52 = vpop.permute.xlu0 %2212  ;;  %v1817_v38 = vadd.f32 %v6909_v11, %v1657_v32  ;;  %v2590_v26 = vmul.f32 %v5565_v53, %v1814_v43  ;;  %v6917_v32 = vld [vmem:[#allocation96_spill] sm:$0xff]  ;;  %v6919_v11 = vld [vmem:[#allocation46_spill] sm:$0xff] }
 0x3fd   : > { %v5691_v17 = vadd.f32 %v2619_v3, %v2587_v10  ;;  %v5693_v6 = vadd.f32 %v2620_v28, %v2588_v24  ;;  %v2325_v20 = vadd.f32 %v2205_v37, %v2165_v51  ;;  %v2327_v13 = vadd.f32 %v2213_v52, %v2167_v41 }
 0x3fe   : > { %v2591_v28 = vmul.f32 %v5559_v23, %v1815_v56  ;;  %v2510_v37 = vsub.f32 %v5523_v9, %v5700_v50  ;;  %v2168_v52 = vmul.f32 %v6911_v21, %v5530_v61  ;;  %v1658_v56 = vmul.f32 %v5530_v61, %v6913_v33 }
 0x3ff   : > { %v2621_v27 = vmul.f32 %v5476_v46, %v2325_v20  ;;  %2683 = vrot.lane.b32.xlu0 %v5691_v17, %s3843_s23  ;;  %2685 = vrot.lane.b32.xlu1 %v5693_v6, %s3843_s23  ;;  %v2623_v51 = vmul.f32 %v5476_v46, %v2327_v13  ;;  %v6912_v20 = vld [vmem:[#allocation74_spill] sm:$0xff]  ;;  %v5733_v23 = vpop.eup %3703  ;;  %v5740_v53 = vadd.f32 %v5659_v54, %v2544_v49 }
 0x400   : > { %v2209_v10 = vpop.permute.xlu1 %2208  ;;  %v2221_v24 = vpop.permute.xlu0 %2220  ;;  %v2593_v30 = vmul.f32 %v5576_v12, %v1817_v38  ;;  %v1818_v55 = vadd.f32 %v6919_v11, %v1658_v56  ;;  %v6920_v54 = vld [vmem:[#allocation26_spill] sm:$0xff]  ;;  %v6923_v12 = vld [vmem:[#allocation32_spill] sm:$0xff] }
 0x401   : > { %v5717_v58 = vadd.f32 %v2621_v27, %v2589_v45  ;;  %v2326_v41 = vadd.f32 %v2209_v10, %v2166_v4  ;;  %v2329_v3 = vadd.f32 %v2221_v24, %v2169_v14  ;;  %v2171_v45 = vmul.f32 %v6912_v20, %v5530_v61  ;;  %v6918_v24 = vld [vmem:[#allocation45_spill] sm:$0xff]  ;;  %v6928_v11 = vld [vmem:[#allocation48_spill] sm:$0xff] }
 0x402   : > { %v5743_v14 = vadd.f32 %v2623_v51, %v2591_v28  ;;  %v2592_v10 = vmul.f32 %v6917_v32, %v1816_v59  ;;  %v2420_v49 = vmin.f32 %v6920_v54, 4.1351666  ;;  %v6922_v51 = vld [vmem:[#allocation76_spill] sm:$0xff]  ;;  %v1660_v38 = vmul.f32 %v5530_v61, %v6923_v12  ;;  %v6924_v59 = vld [vmem:[#allocation33_spill] sm:$0xff]  ;;  %v6927_v32 = vld [vmem:[#allocation47_spill] sm:$0xff] }
 0x403   : > { %6908 = vst [vmem:[#allocation86_spill] sm:$0xff] %v5717_v58  ;;  %v2622_v13 = vmul.f32 %v5476_v46, %v2326_v41  ;;  %2687 = vrot.lane.b32.xlu0 %v5717_v58, %s3843_s23  ;;  %v2625_v43 = vmul.f32 %v5476_v46, %v2329_v3  ;;  %v1819_v41 = vadd.f32 %v6918_v24, %v1659_v8  ;;  %v6921_v3 = vld [vmem:[#allocation73_spill] sm:$0xff] }
 0x404   : > { %v2217_v4 = vpop.permute.xlu1 %2216  ;;  %v2229_v60 = vpop.permute.xlu0 %2228  ;;  %6915 = vst [vmem:[#allocation89_spill] sm:$0xff] %v5743_v14  ;;  %v2170_v21 = vmul.f32 %v6921_v3, %v5530_v61  ;;  %v2173_v28 = vmul.f32 %v6922_v51, %v5530_v61  ;;  %v2513_v20 = vsub.f32 %v5570_v2, %v5733_v23  ;;  %v1820_v3 = vadd.f32 %v6928_v11, %v1660_v38  ;;  %v6929_v2 = vld [vmem:[#allocation75_spill] sm:$0xff] }
 0x405   : > { %v5745_v27 = vadd.f32 %v2622_v13, %v2590_v26  ;;  %v2328_v34 = vadd.f32 %v2217_v4, %v2168_v52  ;;  %v2331_v48 = vadd.f32 %v2229_v60, %v2171_v45  ;;  %v1661_v52 = vmul.f32 %v5530_v61, %v6924_v59 }
 0x406   : > { %v5767_v45 = vadd.f32 %v2625_v43, %v2593_v30  ;;  %v2595_v60 = vmul.f32 %v5590_v40, %v1819_v41  ;;  %v2481_v51 = vmul.f32 1.442695, %v2420_v49  ;;  %v2172_v43 = vmul.f32 %v6929_v2, %v5530_v61  ;;  %v6930_v30 = vld [vmem:[#allocation78_spill] sm:$0xff]  ;;  %v5785_v40 = vpop.eup %3705  ;;  %v6932_v41 = vld [vmem:[#allocation35_spill] sm:$0xff] }
 0x407   : > { %6916 = vst [vmem:[#allocation20_spill] sm:$0xff] %v5745_v27  ;;  %v2624_v26 = vmul.f32 %v5476_v46, %v2328_v34  ;;  %2689 = vrot.lane.b32.xlu1 %v5745_v27, %s3843_s23  ;;  %2691 = vrot.lane.b32.xlu0 %v5743_v14, %s3843_s23  ;;  %v2627_v63 = vmul.f32 %v5476_v46, %v2331_v48  ;;  %v6935_v2 = vld [vmem:[#allocation50_spill] sm:$0xff] }
 0x408   : > { %6925 = vst [vmem:[#allocation21_spill] sm:$0xff] %v5767_v45  ;;  %v2225_v13 = vpop.permute.xlu1 %2224  ;;  %v2237_v33 = vpop.permute.xlu0 %2236  ;;  %v2594_v34 = vmul.f32 %v5604_v15, %v1818_v55  ;;  %v1821_v24 = vadd.f32 %v6927_v32, %v1661_v52  ;;  %v6931_v15 = vld [vmem:[#allocation34_spill] sm:$0xff]  ;;  %v1663_v55 = vmul.f32 %v5530_v61, %v6932_v41  ;;  %v5792_v49 = vadd.f32 %v5667_v16, %v2547_v29  ;;  %v6934_v32 = vld [vmem:[#allocation49_spill] sm:$0xff]  ;;  %v6936_v16 = vld [vmem:[#allocation27_spill] sm:$0xff] }
 0x409   : > { %v5769_v56 = vadd.f32 %v2624_v26, %v2592_v10  ;;  %v2330_v8 = vadd.f32 %v2225_v13, %v2170_v21  ;;  %v2333_v4 = vadd.f32 %v2237_v33, %v2173_v28  ;;  %v2175_v10 = vmul.f32 %v6930_v30, %v5530_v61 }
 0x40a   : > { %v1662_v48 = vmul.f32 %v5530_v61, %v6931_v15  ;;  %v5795_v38 = vadd.f32 %v2627_v63, %v2595_v60  ;;  %v2597_v33 = vmul.f32 %v5607_v7, %v1821_v24  ;;  %v1823_v11 = vadd.f32 %v6934_v32, %v1663_v55  ;;  %v6938_v63 = vld [vmem:[#allocation80_spill] sm:$0xff]  ;;  %v6940_v24 = vld [vmem:[#allocation37_spill] sm:$0xff] }
 0x40b   : > { %6926 = vst [vmem:[#allocation70_spill] sm:$0xff] %v5769_v56  ;;  %v2626_v26 = vmul.f32 %v5476_v46, %v2330_v8  ;;  %2693 = vrot.lane.b32.xlu1 %v5769_v56, %s3843_s23  ;;  %2695 = vrot.lane.b32.xlu0 %v5767_v45, %s3843_s23  ;;  %v2629_v21 = vmul.f32 %v5476_v46, %v2333_v4  ;;  %v2422_v29 = vmin.f32 %v6936_v16, 4.1351666  ;;  %v6937_v4 = vld [vmem:[#allocation77_spill] sm:$0xff]  ;;  %v6939_v7 = vld [vmem:[#allocation36_spill] sm:$0xff]  ;;  %3707 = vpow2.f32 %v2481_v51 }
 0x40c   : > { %v2233_v28 = vpop.permute.xlu1 %2232  ;;  %v2245_v12 = vpop.permute.xlu0 %2244  ;;  %v2596_v8 = vmul.f32 %v5614_v62, %v1820_v3  ;;  %v1822_v30 = vadd.f32 %v6935_v2, %v1662_v48  ;;  %v2174_v15 = vmul.f32 %v6937_v4, %v5530_v61  ;;  %v2177_v60 = vmul.f32 %v6938_v63, %v5530_v61  ;;  %v6942_v2 = vld [vmem:[#allocation51_spill] sm:$0xff]  ;;  %v6943_v63 = vld [vmem:[#allocation52_spill] sm:$0xff] }
 0x40d   : > { %v5797_v59 = vadd.f32 %v2626_v26, %v2594_v34  ;;  %v2332_v52 = vadd.f32 %v2233_v28, %v2172_v43  ;;  %v2335_v13 = vadd.f32 %v2245_v12, %v2175_v10  ;;  %v1664_v62 = vmul.f32 %v5530_v61, %v6939_v7 }
 0x40e   : > { %v1665_v3 = vmul.f32 %v5530_v61, %v6940_v24  ;;  %v2546_v43 = vmul.f32 %v5476_v46, %v2510_v37  ;;  %v5821_v10 = vadd.f32 %v2629_v21, %v2597_v33  ;;  %v2598_v32 = vmul.f32 %v5625_v39, %v1822_v30  ;;  %v6944_v37 = vld [vmem:[#allocation79_spill] sm:$0xff]  ;;  %v6945_v33 = vld [vmem:[#allocation82_spill] sm:$0xff] }
 0x40f   : > { %6933 = vst [vmem:[#allocation72_spill] sm:$0xff] %v5797_v59  ;;  %v2628_v34 = vmul.f32 %v5476_v46, %v2332_v52  ;;  %2697 = vrot.lane.b32.xlu1 %v5797_v59, %s3843_s23  ;;  %2699 = vrot.lane.b32.xlu0 %v5795_v38, %s3843_s23  ;;  %v2631_v55 = vmul.f32 %v5476_v46, %v2335_v13  ;;  %v6947_v13 = vld [vmem:[#allocation39_spill] sm:$0xff] }
 0x410   : > { %6941 = vst [vmem:[#allocation28_spill] sm:$0xff] %v5821_v10  ;;  %v2241_v26 = vpop.permute.xlu1 %2240  ;;  %v2253_v48 = vpop.permute.xlu0 %2252  ;;  %v2599_v52 = vmul.f32 %v5620_v35, %v1823_v11  ;;  %v1825_v4 = vadd.f32 %v6942_v2, %v1665_v3  ;;  %v1824_v9 = vadd.f32 %v6943_v63, %v1664_v62  ;;  %v2176_v21 = vmul.f32 %v6944_v37, %v5530_v61  ;;  %v6946_v35 = vld [vmem:[#allocation38_spill] sm:$0xff] }
 0x411   : > { %v5823_v41 = vadd.f32 %v2628_v34, %v2596_v8  ;;  %v2334_v28 = vadd.f32 %v2241_v26, %v2174_v15  ;;  %v2337_v12 = vadd.f32 %v2253_v48, %v2177_v60  ;;  %v2179_v8 = vmul.f32 %v6945_v33, %v5530_v61  ;;  %v6951_v63 = vld [vmem:[#allocation54_spill] sm:$0xff] }
 0x412   : > { %v1666_v39 = vmul.f32 %v5530_v61, %v6946_v35  ;;  %v1667_v51 = vmul.f32 %v5530_v61, %v6947_v13  ;;  %v2549_v11 = vmul.f32 %v5476_v46, %v2513_v20  ;;  %v5845_v7 = vadd.f32 %v2631_v55, %v2599_v52  ;;  %v6952_v20 = vld [vmem:[#allocation81_spill] sm:$0xff]  ;;  %v6953_v35 = vld [vmem:[#allocation84_spill] sm:$0xff] }
 0x413   : > { %v2630_v34 = vmul.f32 %v5476_v46, %v2334_v28  ;;  %2701 = vrot.lane.b32.xlu1 %v5823_v41, %s3843_s23  ;;  %2703 = vrot.lane.b32.xlu0 %v5821_v10, %s3843_s23  ;;  %v2633_v30 = vmul.f32 %v5476_v46, %v2337_v12  ;;  %v2601_v26 = vmul.f32 %v5640_v25, %v1825_v4  ;;  %v6950_v28 = vld [vmem:[#allocation53_spill] sm:$0xff]  ;;  %v2485_v33 = vmul.f32 1.442695, %v2422_v29  ;;  %v6954_v25 = vld [vmem:[#allocation40_spill] sm:$0xff] }
 0x414   : > { %v2249_v15 = vpop.permute.xlu1 %2248  ;;  %v2261_v60 = vpop.permute.xlu0 %2260  ;;  %6948 = vst [vmem:[#allocation29_spill] sm:$0xff] %v5845_v7  ;;  %v2600_v48 = vmul.f32 %v5643_v36, %v1824_v9  ;;  %v1827_v2 = vadd.f32 %v6950_v28, %v1667_v51  ;;  %v1826_v37 = vadd.f32 %v6951_v63, %v1666_v39  ;;  %v2178_v12 = vmul.f32 %v6952_v20, %v5530_v61  ;;  %v6957_v63 = vld [vmem:[#allocation56_spill] sm:$0xff] }
 0x415   : > { %v5847_v62 = vadd.f32 %v2630_v34, %v2598_v32  ;;  %v2336_v24 = vadd.f32 %v2249_v15, %v2176_v21  ;;  %v2339_v3 = vadd.f32 %v2261_v60, %v2179_v8  ;;  %v2181_v55 = vmul.f32 %v6953_v35, %v5530_v61  ;;  %v6955_v32 = vld [vmem:[#allocation41_spill] sm:$0xff] }
 0x416   : > { %v1668_v36 = vmul.f32 %v5530_v61, %v6954_v25  ;;  %v1669_v29 = vmul.f32 %v5530_v61, %v6955_v32  ;;  %v5867_v4 = vadd.f32 %v5700_v50, %v2546_v43  ;;  %v5869_v9 = vadd.f32 %v2633_v30, %v2601_v26  ;;  %v6958_v50 = vld [vmem:[#allocation83_spill] sm:$0xff] }
 0x417   : > { %6949 = vst [vmem:[#allocation43_spill] sm:$0xff] %v5847_v62  ;;  %v2632_v52 = vmul.f32 %v5476_v46, %v2336_v24  ;;  %2705 = vrot.lane.b32.xlu1 %v5847_v62, %s3843_s23  ;;  %2707 = vrot.lane.b32.xlu0 %v5845_v7, %s3843_s23  ;;  %v2635_v39 = vmul.f32 %v5476_v46, %v2339_v3  ;;  %v6956_v24 = vld [vmem:[#allocation55_spill] sm:$0xff]  ;;  %3709 = vpow2.f32 %v2485_v33  ;;  %v6961_v3 = vld [vmem:[#allocation9_spill] sm:$0xff] }
 0x418   : > { %v2257_v21 = vpop.permute.xlu1 %2256  ;;  %v2269_v8 = vpop.permute.xlu0 %2268  ;;  %v2603_v15 = vmul.f32 %v5650_v44, %v1827_v2  ;;  %v2602_v60 = vmul.f32 %v5653_v5, %v1826_v37  ;;  %v1829_v28 = vadd.f32 %v6956_v24, %v1669_v29  ;;  %v1828_v20 = vadd.f32 %v6957_v63, %v1668_v36  ;;  %v6959_v30 = vld [vmem:[#allocation87_spill] sm:$0xff]  ;;  %v6960_v44 = vld [vmem:[#allocation42_spill] sm:$0xff] }
 0x419   : > { %v5871_v34 = vadd.f32 %v2632_v52, %v2600_v48  ;;  %v2338_v13 = vadd.f32 %v2257_v21, %v2178_v12  ;;  %v2341_v51 = vadd.f32 %v2269_v8, %v2181_v55  ;;  %v2180_v43 = vmul.f32 %v6958_v50, %v5530_v61  ;;  %v6962_v21 = vld [vmem:[#allocation57_spill] sm:$0xff] }
 0x41a   : > { %v2183_v26 = vmul.f32 %v6959_v30, %v5530_v61  ;;  %v1670_v5 = vmul.f32 %v5530_v61, %v6960_v44  ;;  %v1671_v2 = vmul.f32 %v5530_v61, %v6961_v3  ;;  %v5892_v37 = vadd.f32 %v5733_v23, %v2549_v11  ;;  %v6964_v23 = vld [vmem:[#allocation85_spill] sm:$0xff] }
 0x41b   : > { %v2634_v48 = vmul.f32 %v5476_v46, %v2338_v13  ;;  %2709 = vrot.lane.b32.xlu1 %v5871_v34, %s3843_s23  ;;  %2711 = vrot.lane.b32.xlu0 %v5869_v9, %s3843_s23  ;;  %v2637_v33 = vmul.f32 %v5476_v46, %v2341_v51  ;;  %v5895_v55 = vadd.f32 %v2635_v39, %v2603_v15  ;;  %v6963_v13 = vld [vmem:[#allocation58_spill] sm:$0xff] }
 0x41c   : > { %v2265_v12 = vpop.permute.xlu1 %2264  ;;  %v2277_v35 = vpop.permute.xlu0 %2276  ;;  %v2605_v32 = vmul.f32 %v5663_v47, %v1829_v28  ;;  %v2604_v29 = vmul.f32 %v5665_v1, %v1828_v20  ;;  %v1831_v8 = vadd.f32 %v6962_v21, %v1671_v2  ;;  %v1830_v24 = vadd.f32 %v6963_v13, %v1670_v5  ;;  %v6965_v51 = vld [vmem:[#allocation90_spill] sm:$0xff]  ;;  %v6966_v1 = vld [vmem:[#allocation11_spill] sm:$0xff] }
 0x41d   : > { %v5897_v52 = vadd.f32 %v2634_v48, %v2602_v60  ;;  %v2340_v25 = vadd.f32 %v2265_v12, %v2180_v43  ;;  %v2343_v36 = vadd.f32 %v2277_v35, %v2183_v26  ;;  %v2182_v11 = vmul.f32 %v6964_v23, %v5530_v61  ;;  %v5912_v47 = vpop.eup %3707  ;;  %v6967_v60 = vld [vmem:[#allocation8_spill] sm:$0xff]  ;;  %v6969_v12 = vld [vmem:[#allocation59_spill] sm:$0xff] }
 0x41e   : > { %v2185_v63 = vmul.f32 %v6965_v51, %v5530_v61  ;;  %v1672_v15 = vmul.f32 %v5530_v61, %v6966_v1  ;;  %v1673_v28 = vmul.f32 %v5530_v61, %v6967_v60  ;;  %v2512_v20 = vsub.f32 %v5611_v57, %v5785_v40  ;;  %v6971_v57 = vld [vmem:[#allocation88_spill] sm:$0xff] }
 0x41f   : > { %v2636_v39 = vmul.f32 %v5476_v46, %v2340_v25  ;;  %2713 = vrot.lane.b32.xlu1 %v5897_v52, %s3843_s23  ;;  %2715 = vrot.lane.b32.xlu0 %v5895_v55, %s3843_s23  ;;  %v5920_v50 = vadd.f32 %v2637_v33, %v2605_v32  ;;  %v2639_v48 = vmul.f32 %v5476_v46, %v2343_v36  ;;  %v6970_v25 = vld [vmem:[#allocation60_spill] sm:$0xff]  ;;  %v6974_v36 = vld [vmem:[#allocation13_spill] sm:$0xff] }
 0x420   : > { %v2273_v43 = vpop.permute.xlu1 %2272  ;;  %v2285_v30 = vpop.permute.xlu0 %2284  ;;  %v2607_v3 = vmul.f32 %v5669_v18, %v1831_v8  ;;  %v2606_v2 = vmul.f32 %v5675_v22, %v1830_v24  ;;  %v1833_v35 = vadd.f32 %v6969_v12, %v1673_v28  ;;  %v1832_v21 = vadd.f32 %v6970_v25, %v1672_v15  ;;  %v6972_v32 = vld [vmem:[#allocation92_spill] sm:$0xff]  ;;  %v6973_v18 = vld [vmem:[#allocation10_spill] sm:$0xff] }
 0x421   : > { %6968 = vst [vmem:[#allocation44_spill] sm:$0xff] %v5920_v50  ;;  %v5922_v26 = vadd.f32 %v2636_v39, %v2604_v29  ;;  %v2342_v44 = vadd.f32 %v2273_v43, %v2182_v11  ;;  %v2345_v5 = vadd.f32 %v2285_v30, %v2185_v63  ;;  %v2184_v33 = vmul.f32 %v6971_v57, %v5530_v61  ;;  %v6975_v43 = vld [vmem:[#allocation61_spill] sm:$0xff] }
 0x422   : > { %v2187_v13 = vmul.f32 %v6972_v32, %v5530_v61  ;;  %v1674_v22 = vmul.f32 %v5530_v61, %v6973_v18  ;;  %v1675_v8 = vmul.f32 %v5530_v61, %v6974_v36  ;;  %v2548_v24 = vmul.f32 %v5476_v46, %v2512_v20  ;;  %v6977_v20 = vld [vmem:[#allocation91_spill] sm:$0xff] }
 0x423   : > { %v2638_v29 = vmul.f32 %v5476_v46, %v2342_v44  ;;  %2717 = vrot.lane.b32.xlu1 %v5922_v26, %s3843_s23  ;;  %2719 = vrot.lane.b32.xlu0 %v5920_v50, %s3843_s23  ;;  %v2641_v23 = vmul.f32 %v5476_v46, %v2345_v5  ;;  %v5944_v63 = vadd.f32 %v2639_v48, %v2607_v3  ;;  %v6976_v44 = vld [vmem:[#allocation62_spill] sm:$0xff] }
 0x424   : > { %v2281_v11 = vpop.permute.xlu1 %2280  ;;  %v2293_v51 = vpop.permute.xlu0 %2292  ;;  %v2609_v60 = vmul.f32 %v5698_v19, %v1833_v35  ;;  %v2608_v28 = vmul.f32 %v5740_v53, %v1832_v21  ;;  %v1835_v30 = vadd.f32 %v6975_v43, %v1675_v8  ;;  %v1834_v12 = vadd.f32 %v6976_v44, %v1674_v22  ;;  %v6978_v5 = vld [vmem:[#allocation94_spill] sm:$0xff]  ;;  %v6979_v53 = vld [vmem:[#allocation12_spill] sm:$0xff] }
 0x425   : > { %v5946_v39 = vadd.f32 %v2638_v29, %v2606_v2  ;;  %v2344_v1 = vadd.f32 %v2281_v11, %v2184_v33  ;;  %v2347_v15 = vadd.f32 %v2293_v51, %v2187_v13  ;;  %v2186_v25 = vmul.f32 %v6977_v20, %v5530_v61  ;;  %v3710_v19 = vpop.eup %3709  ;;  %v6980_v2 = vld [vmem:[#allocation15_spill] sm:$0xff] }
 0x426   : > { %v2189_v57 = vmul.f32 %v6978_v5, %v5530_v61  ;;  %v1676_v3 = vmul.f32 %v5530_v61, %v6979_v53  ;;  %v1677_v35 = vmul.f32 %v5530_v61, %v6980_v2  ;;  %v2580_v21 = vadd.f32 %v5785_v40, %v2548_v24  ;;  %v6983_v51 = vld [vmem:[#allocation63_spill] sm:$0xff]  ;;  %v6984_v40 = vld [vmem:[#allocation64_spill] sm:$0xff] }
 0x427   : > { %v2640_v48 = vmul.f32 %v5476_v46, %v2344_v1  ;;  %2721 = vrot.lane.b32.xlu1 %v5946_v39, %s3843_s23  ;;  %2723 = vrot.lane.b32.xlu0 %v5944_v63, %s3843_s23  ;;  %v5966_v33 = vadd.f32 %v2641_v23, %v2609_v60  ;;  %v2643_v18 = vmul.f32 %v5476_v46, %v2347_v15  ;;  %v6985_v23 = vld [vmem:[#allocation93_spill] sm:$0xff] }
 0x428   : > { %v2289_v32 = vpop.permute.xlu1 %2288  ;;  %v2301_v13 = vpop.permute.xlu0 %2300  ;;  %v2611_v8 = vmul.f32 %v5792_v49, %v1835_v30  ;;  %v2610_v11 = vmul.f32 %v5867_v4, %v1834_v12  ;;  %v1837_v1 = vadd.f32 %v6983_v51, %v1677_v35  ;;  %v2516_v43 = vsub.f32 %v6920_v54, %v5912_v47 }
 0x429   : > { %6981 = vst [vmem:[#allocation71_spill] sm:$0xff] %v5966_v33  ;;  %v5968_v29 = vadd.f32 %v2640_v48, %v2608_v28  ;;  %v2346_v22 = vadd.f32 %v2289_v32, %v2186_v25  ;;  %v2349_v36 = vadd.f32 %v2301_v13, %v2189_v57  ;;  %v1836_v24 = vadd.f32 %v6984_v40, %v1676_v3  ;;  %v6988_v57 = vld [vmem:[#allocation16_spill] sm:$0xff] }
 0x42a   : > { %v2188_v60 = vmul.f32 %v6985_v23, %v5530_v61  ;;  %v5984_v4 = vadd.f32 %v2643_v18, %v2611_v8  ;;  %v2552_v44 = vmul.f32 %v5476_v46, %v2516_v43  ;;  %v2518_v12 = vsub.f32 %v6936_v16, %v3710_v19  ;;  %v6992_v18 = vld [vmem:[#allocation18_spill] sm:$0xff] }
 0x42b   : > { %6982 = vst [vmem:[#allocation74_spill] sm:$0xff] %v5968_v29  ;;  %v2642_v28 = vmul.f32 %v5476_v46, %v2346_v22  ;;  %2725 = vrot.lane.b32.xlu1 %v5968_v29, %s3843_s23  ;;  %2727 = vrot.lane.b32.xlu0 %v5966_v33, %s3843_s23  ;;  %v2645_v54 = vmul.f32 %v5476_v46, %v2349_v36 }
 0x42c   : > { %v2297_v49 = vpop.permute.xlu1 %2296  ;;  %6986 = vst [vmem:[#allocation30_spill] sm:$0xff] %v5984_v4  ;;  %v2613_v20 = vmul.f32 %v5892_v37, %v1837_v1  ;;  %v2612_v25 = vmul.f32 %v2580_v21, %v1836_v24  ;;  %v1680_v48 = vmul.f32 %v5530_v61, %v6988_v57  ;;  %v2584_v16 = vadd.f32 %v5912_v47, %v2552_v44  ;;  %v6991_v37 = vld [vmem:[#allocation68_spill] sm:$0xff] }
 0x42d   : > { %v5986_v15 = vadd.f32 %v2642_v28, %v2610_v11  ;;  %v2348_v30 = vadd.f32 %v2297_v49, %v2188_v60  ;;  %v2554_v21 = vmul.f32 %v5476_v46, %v2518_v12  ;;  %v2192_v32 = vmul.f32 %v5601_v31, %v5530_v61  ;;  %v6993_v11 = vld [vmem:[#allocation69_spill] sm:$0xff]  ;;  %v6996_v60 = vld [vmem:[#allocation24_spill] sm:$0xff]  ;;  %v6997_v49 = vld [vmem:[#allocation23_spill] sm:$0xff] }
 0x42e   : > { %v6001_v3 = vadd.f32 %v2645_v54, %v2613_v20  ;;  %v1840_v35 = vadd.f32 %v6991_v37, %v1680_v48  ;;  %v1682_v22 = vmul.f32 %v5530_v61, %v6992_v18  ;;  %v2194_v1 = vmul.f32 %v5631_v42, %v5530_v61  ;;  %v6998_v12 = vld [vmem:[#allocation25_spill] sm:$0xff]  ;;  %v7000_v18 = vld [vmem:[#allocation14_spill] sm:$0xff] }
 0x42f   : > { %6987 = vst [vmem:[#allocation31_spill] sm:$0xff] %v5986_v15  ;;  %v2644_v5 = vmul.f32 %v5476_v46, %v2348_v30  ;;  %2729 = vrot.lane.b32.xlu1 %v5986_v15, %s3843_s23  ;;  %2731 = vrot.lane.b32.xlu0 %v5984_v4, %s3843_s23  ;;  %v2586_v47 = vadd.f32 %v3710_v19, %v2554_v21  ;;  %v2418_v28 = vmin.f32 %v6996_v60, 4.1351666  ;;  %v2419_v54 = vmin.f32 %v6997_v49, 4.1351666  ;;  %v6999_v21 = vld [vmem:[#allocation95_spill] sm:$0xff] }
 0x430   : > { %v5999_v53 = vpop.permute.xlu1 %2304  ;;  %6989 = vst [vmem:[#allocation96_spill] sm:$0xff] %v6001_v3  ;;  %v2616_v8 = vmul.f32 %v2584_v16, %v1840_v35  ;;  %v1842_v51 = vadd.f32 %v6993_v11, %v1682_v22  ;;  %v2421_v20 = vmin.f32 %v6998_v12, 4.1351666  ;;  %v1678_v22 = vmul.f32 %v5530_v61, %v7000_v18 }
 0x431   : > { %v6003_v2 = vadd.f32 %v2644_v5, %v2612_v25  ;;  %v2477_v30 = vmul.f32 1.442695, %v2418_v28  ;;  %v2479_v44 = vmul.f32 1.442695, %v2419_v54  ;;  %v7004_v54 = vld [vmem:[#allocation65_spill] sm:$0xff] }
 0x432   : > { %v2618_v23 = vmul.f32 %v2586_v47, %v1842_v51  ;;  %v2483_v25 = vmul.f32 1.442695, %v2421_v20  ;;  %v7001_v51 = vld [vmem:[#allocation66_spill] sm:$0xff]  ;;  %v7005_v20 = vld [vmem:[#allocation19_spill] sm:$0xff] }
 0x433   : > { %6990 = vst [vmem:[#allocation45_spill] sm:$0xff] %v6003_v2  ;;  %2733 = vrot.lane.b32.xlu1 %v6003_v2, %s3843_s23  ;;  %2735 = vrot.lane.b32.xlu0 %v6001_v3, %s3843_s23  ;;  %3711 = vpow2.f32 %v2477_v30 }
 0x434   : > { %v2313_v13 = vpop.permute.xlu1 %2312  ;;  %3713 = vpow2.f32 %v2479_v44 }
 0x435   : > { %v2352_v36 = vadd.f32 %v2313_v13, %v2192_v32  ;;  %3715 = vpow2.f32 %v2483_v25  ;;  %v2190_v32 = vmul.f32 %v6999_v21, %v5530_v61  ;;  %v2309_v13 = vpop.permute.xlu0 %2308  ;;  %v1681_v25 = vmul.f32 %v5530_v61, %v7005_v20  ;;  %v7007_v21 = vld [vmem:[#allocation67_spill] sm:$0xff] }
 0x437   : > { %v2648_v31 = vmul.f32 %v5476_v46, %v2352_v36  ;;  %2747 = vrot.lane.b32.xlu1 %v5691_v17, %s3844_s24  ;;  %2749 = vrot.lane.b32.xlu0 %v5693_v6, %s3844_s24  ;;  %v2350_v36 = vadd.f32 %v5999_v53, %v2190_v32  ;;  %v1841_v32 = vadd.f32 %v7007_v21, %v1681_v25 }
 0x438   : > { %v2321_v43 = vpop.permute.xlu1 %2320 }
 0x439   : > { %v6024_v40 = vadd.f32 %v2648_v31, %v2616_v8  ;;  %v2354_v24 = vadd.f32 %v2321_v43, %v2194_v1  ;;  %v1838_v1 = vadd.f32 %v7001_v51, %v1678_v22  ;;  %v7002_v31 = vld [vmem:[#allocation97_spill] sm:$0xff] }
 0x43a   : > { %v2191_v43 = vmul.f32 %v7002_v31, %v5530_v61 }
 0x43b   : > { %6994 = vst [vmem:[#allocation46_spill] sm:$0xff] %v6024_v40  ;;  %v2650_v19 = vmul.f32 %v5476_v46, %v2354_v24  ;;  %2751 = vrot.lane.b32.xlu1 %v5717_v58, %s3844_s24  ;;  %2753 = vrot.lane.b32.xlu0 %v5745_v27, %s3844_s24  ;;  %v7003_v24 = vld [vmem:[#allocation17_spill] sm:$0xff] }
 0x43c   : > { %v2351_v53 = vadd.f32 %v2309_v13, %v2191_v43 }
 0x43d   : > { %v6031_v42 = vadd.f32 %v2650_v19, %v2618_v23  ;;  %v1679_v23 = vmul.f32 %v5530_v61, %v7003_v24  ;;  %v2646_v19 = vmul.f32 %v5476_v46, %v2350_v36 }
 0x43f   : > { %6995 = vst [vmem:[#allocation26_spill] sm:$0xff] %v6031_v42  ;;  %2755 = vrot.lane.b32.xlu1 %v5743_v14, %s3844_s24  ;;  %2757 = vrot.lane.b32.xlu0 %v5769_v56, %s3844_s24  ;;  %v1839_v30 = vadd.f32 %v7004_v54, %v1679_v23 }
 0x440   : > { %v3712_v5 = vpop.eup %3711 }
 0x441   : > { %v3714_v57 = vpop.eup %3713  ;;  %v2514_v48 = vsub.f32 %v6996_v60, %v3712_v5 }
 0x442   : > { %v2515_v16 = vsub.f32 %v6997_v49, %v3714_v57  ;;  %v3716_v37 = vpop.eup %3715  ;;  %v2317_v49 = vpop.permute.xlu0 %2316 }
 0x443   : > { %2759 = vrot.lane.b32.xlu1 %v5767_v45, %s3844_s24  ;;  %2761 = vrot.lane.b32.xlu0 %v5797_v59, %s3844_s24  ;;  %v2550_v35 = vmul.f32 %v5476_v46, %v2514_v48  ;;  %v2517_v47 = vsub.f32 %v6998_v12, %v3716_v37  ;;  %v2193_v12 = vmul.f32 %v5629_v0, %v5530_v61 }
 0x444   : > { %v2551_v8 = vmul.f32 %v5476_v46, %v2515_v16 }
 0x445   : > { %v2582_v11 = vadd.f32 %v3712_v5, %v2550_v35  ;;  %v2553_v28 = vmul.f32 %v5476_v46, %v2517_v47  ;;  %v2647_v5 = vmul.f32 %v5476_v46, %v2351_v53  ;;  %v2353_v48 = vadd.f32 %v2317_v49, %v2193_v12  ;;  %v3749_v12 = vld [vmem:[%s6685_s4] sm:$0xff] }
 0x446   : > { %v2583_v60 = vadd.f32 %v3714_v57, %v2551_v8 }
 0x447   : > { %2763 = vrot.lane.b32.xlu1 %v5795_v38, %s3844_s24  ;;  %2765 = vrot.lane.b32.xlu0 %v5823_v41, %s3844_s24  ;;  %v2614_v44 = vmul.f32 %v2582_v11, %v1838_v1  ;;  %v2585_v35 = vadd.f32 %v3716_v37, %v2553_v28  ;;  %v2649_v13 = vmul.f32 %v5476_v46, %v2353_v48 }
 0x448   : > { %v2615_v16 = vmul.f32 %v2583_v60, %v1839_v30 }
 0x449   : > { %v6103_v57 = vadd.f32 %v2646_v19, %v2614_v44  ;;  %v2617_v61 = vmul.f32 %v2585_v35, %v1841_v32  ;;  %v7010_v32 = vld [vmem:[#allocation22_spill] sm:$0xff] }
 0x44a   : > { %v6110_v0 = vadd.f32 %v2647_v5, %v2615_v16 }
 0x44b   : > { %2767 = vrot.lane.b32.xlu1 %v5821_v10, %s3844_s24  ;;  %2769 = vrot.lane.b32.xlu0 %v5847_v62, %s3844_s24  ;;  %7006 = vst [vmem:[#allocation73_spill] sm:$0xff] %v6103_v57  ;;  %v6117_v37 = vadd.f32 %v2649_v13, %v2617_v61  ;;  %v3005_v13 = vsub.s32 3, %v7010_v32  ;;  %v3073_v61 = vsub.s32 4, %v7010_v32 }
 0x44c   : > { %7008 = vst [vmem:[#allocation76_spill] sm:$0xff] %v6110_v0 }
 0x44d   : > { %7009 = vst [vmem:[#allocation32_spill] sm:$0xff] %v6117_v37 }
 0x44f   : > { %2771 = vrot.lane.b32.xlu1 %v5845_v7, %s3844_s24  ;;  %2773 = vrot.lane.b32.xlu0 %v5871_v34, %s3844_s24 }
 0x453   : > { %2775 = vrot.lane.b32.xlu1 %v5869_v9, %s3844_s24  ;;  %2777 = vrot.lane.b32.xlu0 %v5897_v52, %s3844_s24 }
 0x457   : > { %2779 = vrot.lane.b32.xlu1 %v5895_v55, %s3844_s24  ;;  %2781 = vrot.lane.b32.xlu0 %v5922_v26, %s3844_s24 }
 0x45b   : > { %2783 = vrot.lane.b32.xlu1 %v5920_v50, %s3844_s24  ;;  %2785 = vrot.lane.b32.xlu0 %v5946_v39, %s3844_s24 }
 0x45f   : > { %2787 = vrot.lane.b32.xlu1 %v5944_v63, %s3844_s24  ;;  %2789 = vrot.lane.b32.xlu0 %v5968_v29, %s3844_s24 }
 0x463   : > { %2791 = vrot.lane.b32.xlu1 %v5966_v33, %s3844_s24  ;;  %2793 = vrot.lane.b32.xlu0 %v5986_v15, %s3844_s24 }
 0x467   : > { %2795 = vrot.lane.b32.xlu1 %v5984_v4, %s3844_s24  ;;  %2797 = vrot.lane.b32.xlu0 %v6003_v2, %s3844_s24 }
 0x46b   : > { %2799 = vrot.lane.b32.xlu1 %v6001_v3, %s3844_s24  ;;  %2801 = vrot.lane.b32.xlu0 %v6103_v57, %s3844_s24 }
 0x46f   : > { %2805 = vrot.lane.b32.xlu0 %v6024_v40, %s3844_s24  ;;  %2803 = vrot.lane.b32.xlu1 %v6110_v0, %s3844_s24 }
 0x471   : > { %v6119_v18 = vpop.permute.xlu0 %2683  ;;  %v2686_v22 = vpop.permute.xlu1 %2685 }
 0x472   : > { %v2812_v25 = vsub.f32 %v5693_v6, %v2686_v22  ;;  %v2811_v48 = vsub.f32 %v5691_v17, %v6119_v18 }
 0x473   : > { %2809 = vrot.lane.b32.xlu0 %v6031_v42, %s3844_s24  ;;  %2807 = vrot.lane.b32.xlu1 %v6117_v37, %s3844_s24  ;;  %s3111_s24 = sld [smem:[#allocation3 + %s3110_s21]] }
 0x475   : > { %v6125_v36 = vpop.permute.xlu0 %2687 }
 0x476   : > { %v2813_v16 = vsub.f32 %v5717_v58, %v6125_v36 }
 0x477   : > { %2739 = vrot.lane.b32.xlu0 %v6110_v0, %s3843_s23  ;;  %2737 = vrot.lane.b32.xlu1 %v6103_v57, %s3843_s23  ;;  %v2843_v0 = vmul.f32 %v2811_v48, %v5476_v46 }
 0x478   : > { %v2845_v57 = vmul.f32 %v2813_v16, %v5476_v46 }
 0x479   : > { %v6131_v8 = vpop.permute.xlu1 %2689  ;;  %v6133_v47 = vpop.permute.xlu0 %2691  ;;  %s3112_s7 = scvt.s32.f32 %s3111_s24  ;;  %s6636_s24 = scalar_lea.sflag [#allocation5], %s295_s15 }
 0x47b   : > { %2743 = vrot.lane.b32.xlu0 %v6117_v37, %s3843_s23  ;;  %2741 = vrot.lane.b32.xlu1 %v6024_v40, %s3843_s23  ;;  %s3413_s8 = sadd.f32 -1.0, %s3112_s7  ;;  %v2844_v40 = vmul.f32 %v2812_v25, %v5476_v46  ;;  %v6203_v25 = vrot.slane %v3749_v12, %v3005_v13 }
 0x47d   : > { %v6139_v11 = vpop.permute.xlu1 %2693  ;;  %v6141_v51 = vpop.permute.xlu0 %2695  ;;  %v3117_v5 = vstv %s3413_s8 }
 0x47e   : > { %v2816_v3 = vsub.f32 %v5769_v56, %v6139_v11  ;;  %v2817_v2 = vsub.f32 %v5767_v45, %v6141_v51 }
 0x47f   : > { %2745 = vrot.lane.b32.xlu1 %v6031_v42, %s3843_s23  ;;  %s3114_s23 = ssub.f32 %s3109_s25, %s3112_s7  ;;  %v2815_v42 = vsub.f32 %v5743_v14, %v6133_v47  ;;  %s3850_s25 = smov [#allocation4]  }
 0x480   : > { %s3766_s7 = sshll.u32 %s3850_s25, 4  ;;  %s3767_s7 = int_to_ptr.vmem [resolvable:$false] %s3766_s7 }
 0x481   : > { %v6146_v1 = vpop.permute.xlu1 %2697  ;;  %v6148_v31 = vpop.permute.xlu0 %2699  ;;  %v3115_v54 = vstv %s3114_s23  ;;  %v2847_v16 = vmul.f32 %v2815_v42, %v5476_v46  ;;  %v6224_v42 = vadd.f32 %v2843_v0, %v6119_v18  ;;  %s3768_s23 = scalar_lea.vmem %s3767_s7, 8192  ;;  %p3769_p6 = scmp.lt.s32.totalorder %s6630_s20, %s3767_s7 }
 0x482   : > { %v3116_v20 = vmul.f32 %v3749_v12, %v3115_v54  ;;  %v2814_v54 = vsub.f32 %v5745_v27, %v6131_v8  ;;  %v2818_v14 = vsub.f32 %v5797_v59, %v6146_v1  ;;  %v6213_v27 = vadd.f32 %v2844_v40, %v2686_v22  ;;  %p3770_p7 = scmp.lt.s32.totalorder %s3768_s23, %s3762_s28 }
 0x483   : > { %v2849_v40 = vmul.f32 %v2817_v2, %v5476_v46 }
 0x484   : > { %v3118_v37 = vadd.f32 %v3117_v5, %v3116_v20  ;;  %v2819_v20 = vsub.f32 %v5795_v38, %v6148_v31  ;;  %v6205_v5 = vrot.slane %v3749_v12, %v3073_v61  ;;  %v2846_v48 = vmul.f32 %v2814_v54, %v5476_v46  ;;  %p3771_p8 = por %p3770_p7, %p3769_p6 }
 0x485   : > { %v6150_v43 = vpop.permute.xlu1 %2701  ;;  %v6152_v24 = vpop.permute.xlu0 %2703  ;;  %v7011_v12 = vsub.s32 2, %v7010_v32  ;;  %v6227_v54 = vadd.f32 %v2845_v57, %v6125_v36 }
 0x486   : > { %v2820_v45 = vsub.f32 %v5823_v41, %v6150_v43  ;;  %v2821_v56 = vsub.f32 %v5821_v10, %v6152_v24  ;;  %v2848_v10 = vmul.f32 %v2816_v3, %v5476_v46  ;;  %v2851_v32 = vmul.f32 %v2819_v20, %v5476_v46  ;;  %p3772_p10 = pnand %p3771_p8, %p3765_p5 }
 0x487   : > { %v6221_v61 = vrot.slane %v3118_v37, %v7011_v12  ;;  %v6242_v57 = vadd.f32 %v2846_v48, %v6131_v8  ;;  %v6245_v3 = vadd.f32 %v2847_v16, %v6133_v47  ;;  %v6259_v47 = vadd.f32 %v2849_v40, %v6141_v51 }
 0x488   : > { %v2852_v2 = vmul.f32 %v2820_v45, %v5476_v46  ;;  %v2853_v18 = vmul.f32 %v2821_v56, %v5476_v46  ;;  %v6256_v8 = vadd.f32 %v2848_v10, %v6139_v11 }
 0x489   : > { %v6154_v23 = vpop.permute.xlu1 %2705  ;;  %v6156_v53 = vpop.permute.xlu0 %2707 }
 0x48a   : > { %v2822_v59 = vsub.f32 %v5847_v62, %v6154_v23  ;;  %v2823_v13 = vsub.f32 %v5845_v7, %v6156_v53  ;;  %v2850_v7 = vmul.f32 %v2818_v14, %v5476_v46  ;;  %v6278_v51 = vadd.f32 %v2852_v2, %v6150_v43 }
 0x48b   : > { %v6281_v40 = vadd.f32 %v2853_v18, %v6152_v24 }
 0x48c   : > { %v2854_v14 = vmul.f32 %v2822_v59, %v5476_v46  ;;  %v2855_v36 = vmul.f32 %v2823_v13, %v5476_v46  ;;  %v6270_v16 = vadd.f32 %v2850_v7, %v6146_v1  ;;  %v6273_v13 = vadd.f32 %v2851_v32, %v6148_v31 }
 0x48d   : > { %v6158_v19 = vpop.permute.xlu1 %2709  ;;  %v6160_v60 = vpop.permute.xlu0 %2711 }
 0x48e   : > { %v2824_v37 = vsub.f32 %v5871_v34, %v6158_v19  ;;  %v2825_v0 = vsub.f32 %v5869_v9, %v6160_v60  ;;  %v6288_v1 = vadd.f32 %v2854_v14, %v6154_v23  ;;  %v6291_v31 = vadd.f32 %v2855_v36, %v6156_v53 }
 0x490   : > { %v2856_v10 = vmul.f32 %v2824_v37, %v5476_v46  ;;  %v2857_v11 = vmul.f32 %v2825_v0, %v5476_v46 }
 0x491   : > { %v6162_v28 = vpop.permute.xlu1 %2713  ;;  %v6164_v49 = vpop.permute.xlu0 %2715 }
 0x492   : > { %v2826_v20 = vsub.f32 %v5897_v52, %v6162_v28  ;;  %v2827_v12 = vsub.f32 %v5895_v55, %v6164_v49  ;;  %v6302_v14 = vadd.f32 %v2856_v10, %v6158_v19  ;;  %v6305_v53 = vadd.f32 %v2857_v11, %v6160_v60 }
 0x494   : > { %v2858_v32 = vmul.f32 %v2826_v20, %v5476_v46  ;;  %v2859_v43 = vmul.f32 %v2827_v12, %v5476_v46 }
 0x495   : > { %v6166_v30 = vpop.permute.xlu1 %2717  ;;  %v6168_v44 = vpop.permute.xlu0 %2719 }
 0x496   : > { %v2828_v45 = vsub.f32 %v5922_v26, %v6166_v30  ;;  %v2829_v56 = vsub.f32 %v5920_v50, %v6168_v44  ;;  %v6316_v19 = vadd.f32 %v2858_v32, %v6162_v28  ;;  %v6319_v60 = vadd.f32 %v2859_v43, %v6164_v49  ;;  %v7013_v43 = vld [vmem:[#allocation86_spill] sm:$0xff] }
 0x498   : > { %v2860_v37 = vmul.f32 %v2828_v45, %v5476_v46  ;;  %v2861_v24 = vmul.f32 %v2829_v56, %v5476_v46 }
 0x499   : > { %v6178_v35 = vpop.permute.xlu1 %2721  ;;  %v6180_v21 = vpop.permute.xlu0 %2723 }
 0x49a   : > { %v2830_v50 = vsub.f32 %v5946_v39, %v6178_v35  ;;  %v2831_v7 = vsub.f32 %v5944_v63, %v6180_v21 }
 0x49c   : > { %v2862_v12 = vmul.f32 %v2830_v50, %v5476_v46  ;;  %v2863_v45 = vmul.f32 %v2831_v7, %v5476_v46  ;;  %v6324_v50 = vadd.f32 %v2860_v37, %v6166_v30  ;;  %v6327_v7 = vadd.f32 %v2861_v24, %v6168_v44 }
 0x49d   : > { %v6195_v58 = vpop.permute.xlu1 %2725  ;;  %v6197_v4 = vpop.permute.xlu0 %2727 }
 0x49e   : > { %v2832_v0 = vsub.f32 %v5968_v29, %v6195_v58  ;;  %v2833_v2 = vsub.f32 %v5966_v33, %v6197_v4  ;;  %v7012_v33 = vld [vmem:[#allocation30_spill] sm:$0xff]  ;;  %v6336_v30 = vadd.f32 %v2862_v12, %v6178_v35  ;;  %v6339_v44 = vadd.f32 %v2863_v45, %v6180_v21  ;;  %v7015_v21 = vld [vmem:[#allocation45_spill] sm:$0xff] }
 0x4a1   : > { %v6231_v22 = vpop.permute.xlu1 %2729  ;;  %v6233_v62 = vpop.permute.xlu0 %2731 }
 0x4a2   : > { %v2834_v56 = vsub.f32 %v5986_v15, %v6231_v22  ;;  %v2835_v29 = vsub.f32 %v7012_v33, %v6233_v62 }
 0x4a4   : > { %v2866_v37 = vmul.f32 %v2834_v56, %v5476_v46  ;;  %v2867_v24 = vmul.f32 %v2835_v29, %v5476_v46  ;;  %v7016_v29 = vld [vmem:[#allocation96_spill] sm:$0xff] }
 0x4a5   : > { %v6265_v59 = vpop.permute.xlu1 %2733  ;;  %v6267_v48 = vpop.permute.xlu0 %2735 }
 0x4a6   : > { %v2836_v12 = vsub.f32 %v7015_v21, %v6265_v59  ;;  %v2837_v45 = vsub.f32 %v7016_v29, %v6267_v48 }
 0x4a9   : > { %v2748_v18 = vpop.permute.xlu1 %2747  ;;  %v2750_v23 = vpop.permute.xlu0 %2749 }
 0x4aa   : > { %v2907_v36 = vsub.f32 %v2748_v18, %v5691_v17  ;;  %v2908_v20 = vsub.f32 %v2750_v23, %v5693_v6  ;;  %v2864_v18 = vmul.f32 %v2832_v0, %v5476_v46  ;;  %v2865_v23 = vmul.f32 %v2833_v2, %v5476_v46 }
 0x4ac   : > { %v2939_v10 = vmul.f32 %v2907_v36, %v5476_v46  ;;  %v2940_v11 = vmul.f32 %v2908_v20, %v5476_v46  ;;  %v7014_v20 = vld [vmem:[#allocation20_spill] sm:$0xff]  ;;  %v6348_v2 = vadd.f32 %v2864_v18, %v6195_v58  ;;  %v6351_v35 = vadd.f32 %v2865_v23, %v6197_v4  ;;  %v7017_v23 = vld [vmem:[#allocation89_spill] sm:$0xff] }
 0x4ad   : > { %v2752_v33 = vpop.permute.xlu1 %2751  ;;  %v2754_v28 = vpop.permute.xlu0 %2753  ;;  %v6363_v4 = vadd.f32 %v2866_v37, %v6231_v22  ;;  %v6366_v18 = vadd.f32 %v2867_v24, %v6233_v62  ;;  %v6377_v22 = vmul.f32 %v2836_v12, %v5476_v46  ;;  %v6380_v62 = vmul.f32 %v2837_v45, %v5476_v46  ;;  %v7021_v45 = vld [vmem:[#allocation72_spill] sm:$0xff] }
 0x4ae   : > { %v2971_v32 = vadd.f32 %v2939_v10, %v5691_v17  ;;  %v2972_v49 = vadd.f32 %v2940_v11, %v5693_v6  ;;  %v2909_v36 = vsub.f32 %v2752_v33, %v7013_v43  ;;  %v2910_v15 = vsub.f32 %v2754_v28, %v7014_v20 }
 0x4af   : > { %7019 = vst [vmem:[#allocation33_spill] sm:$0xff] %v6380_v62 }
 0x4b0   : > { %v3007_v0 = vmul.f32 %v6203_v25, %v2971_v32  ;;  %v3008_v17 = vmul.f32 %v6203_v25, %v2972_v49  ;;  %v2941_v6 = vmul.f32 %v2909_v36, %v5476_v46  ;;  %v2942_v33 = vmul.f32 %v2910_v15, %v5476_v46  ;;  %v7018_v49 = vld [vmem:[#allocation70_spill] sm:$0xff] }
 0x4b1   : > { %v2756_v56 = vpop.permute.xlu1 %2755  ;;  %v2758_v10 = vpop.permute.xlu0 %2757 }
 0x4b2   : > { %v3039_v11 = vadd.f32 %v3007_v0, %v6224_v42  ;;  %v3040_v15 = vadd.f32 %v3008_v17, %v6213_v27  ;;  %v2973_v28 = vadd.f32 %v2941_v6, %v7013_v43  ;;  %v2974_v58 = vadd.f32 %v2942_v33, %v7014_v20 }
 0x4b3   : > { %v2911_v32 = vsub.f32 %v2756_v56, %v7017_v23  ;;  %v2912_v36 = vsub.f32 %v2758_v10, %v7018_v49 }
 0x4b4   : > { %v3075_v42 = vadd.f32 %v6205_v5, %v3039_v11  ;;  %v3076_v27 = vadd.f32 %v6205_v5, %v3040_v15  ;;  %v3009_v43 = vmul.f32 %v6203_v25, %v2973_v28  ;;  %v3010_v20 = vmul.f32 %v6203_v25, %v2974_v58  ;;  %v7020_v15 = vld [vmem:[#allocation21_spill] sm:$0xff] }
 0x4b5   : > { %v2943_v37 = vmul.f32 %v2911_v32, %v5476_v46  ;;  %v2944_v24 = vmul.f32 %v2912_v36, %v5476_v46  ;;  %v2760_v0 = vpop.permute.xlu1 %2759  ;;  %v2762_v17 = vpop.permute.xlu0 %2761 }
 0x4b6   : > { %v3119_v6 = vmax.f32 %v3075_v42, 0.0  ;;  %v3120_v33 = vmax.f32 %v3076_v27, 0.0  ;;  %v3041_v56 = vadd.f32 %v3009_v43, %v6227_v54  ;;  %v3042_v10 = vadd.f32 %v3010_v20, %v6242_v57 }
 0x4b7   : > { %v2975_v11 = vadd.f32 %v2943_v37, %v7017_v23  ;;  %v2976_v12 = vadd.f32 %v2944_v24, %v7018_v49  ;;  %v2913_v28 = vsub.f32 %v2760_v0, %v7020_v15  ;;  %v2914_v58 = vsub.f32 %v2762_v17, %v7021_v45 }
 0x4b8   : > { %v3155_v32 = vmin.f32 %v3119_v6, %v6221_v61  ;;  %v3156_v36 = vmin.f32 %v3120_v33, %v6221_v61  ;;  %v3077_v62 = vadd.f32 %v6205_v5, %v3041_v56  ;;  %v3078_v42 = vadd.f32 %v6205_v5, %v3042_v10 }
 0x4b9   : > { %v3011_v54 = vmul.f32 %v6203_v25, %v2975_v11  ;;  %v3012_v57 = vmul.f32 %v6203_v25, %v2976_v12  ;;  %v2945_v23 = vmul.f32 %v2913_v28, %v5476_v46  ;;  %v2946_v49 = vmul.f32 %v2914_v58, %v5476_v46  ;;  %v2764_v27 = vpop.permute.xlu1 %2763  ;;  %v2766_v43 = vpop.permute.xlu0 %2765 }
 0x4ba   : > { %3187 = vst [vmem:[%s6398_s18] sm:$0xff] %v3155_v32  ;;  %3188 = vst [vmem:[%s6398_s18 + $0x8] sm:$0xff] %v3156_v36  ;;  %v3121_v20 = vmax.f32 %v3077_v62, 0.0  ;;  %v3122_v37 = vmax.f32 %v3078_v42, 0.0  ;;  %v2915_v24 = vsub.f32 %v2764_v27, %v5795_v38  ;;  %v2916_v0 = vsub.f32 %v2766_v43, %v5823_v41  ;;  %v7022_v42 = vld [vmem:[#allocation28_spill] sm:$0xff] }
 0x4bb   : > { %v3043_v17 = vadd.f32 %v3011_v54, %v6245_v3  ;;  %v3044_v6 = vadd.f32 %v3012_v57, %v6256_v8  ;;  %v2977_v33 = vadd.f32 %v2945_v23, %v7020_v15  ;;  %v2978_v56 = vadd.f32 %v2946_v49, %v7021_v45  ;;  %v7023_v57 = vld [vmem:[#allocation43_spill] sm:$0xff] }
 0x4bc   : > { %v3157_v10 = vmin.f32 %v3121_v20, %v6221_v61  ;;  %v3158_v11 = vmin.f32 %v3122_v37, %v6221_v61  ;;  %v2947_v62 = vmul.f32 %v2915_v24, %v5476_v46  ;;  %v2948_v12 = vmul.f32 %v2916_v0, %v5476_v46 }
 0x4bd   : > { %v3079_v28 = vadd.f32 %v6205_v5, %v3043_v17  ;;  %v3080_v58 = vadd.f32 %v6205_v5, %v3044_v6  ;;  %v3013_v3 = vmul.f32 %v6203_v25, %v2977_v33  ;;  %v3014_v8 = vmul.f32 %v6203_v25, %v2978_v56  ;;  %v2768_v32 = vpop.permute.xlu1 %2767  ;;  %v2770_v15 = vpop.permute.xlu0 %2769 }
 0x4be   : > { %3189 = vst [vmem:[%s6398_s18 + $0x10] sm:$0xff] %v3157_v10  ;;  %3190 = vst [vmem:[%s6398_s18 + $0x18] sm:$0xff] %v3158_v11  ;;  %v2979_v45 = vadd.f32 %v2947_v62, %v5795_v38  ;;  %v2980_v36 = vadd.f32 %v2948_v12, %v5823_v41  ;;  %v2917_v54 = vsub.f32 %v2768_v32, %v7022_v42 }
 0x4bf   : > { %v2918_v23 = vsub.f32 %v2770_v15, %v7023_v57  ;;  %v3123_v49 = vmax.f32 %v3079_v28, 0.0  ;;  %v3124_v27 = vmax.f32 %v3080_v58, 0.0  ;;  %v3045_v43 = vadd.f32 %v3013_v3, %v6259_v47  ;;  %v7024_v58 = vld [vmem:[#allocation29_spill] sm:$0xff] }
 0x4c0   : > { %v3046_v20 = vadd.f32 %v3014_v8, %v6270_v16  ;;  %v3015_v37 = vmul.f32 %v6203_v25, %v2979_v45  ;;  %v3016_v24 = vmul.f32 %v6203_v25, %v2980_v36  ;;  %v2949_v38 = vmul.f32 %v2917_v54, %v5476_v46 }
 0x4c1   : > { %v2950_v41 = vmul.f32 %v2918_v23, %v5476_v46  ;;  %v3159_v0 = vmin.f32 %v3123_v49, %v6221_v61  ;;  %v3160_v17 = vmin.f32 %v3124_v27, %v6221_v61  ;;  %v3081_v6 = vadd.f32 %v6205_v5, %v3045_v43  ;;  %v2772_v33 = vpop.permute.xlu1 %2771  ;;  %v2774_v56 = vpop.permute.xlu0 %2773 }
 0x4c2   : > { %v3082_v47 = vadd.f32 %v6205_v5, %v3046_v20  ;;  %v3047_v16 = vadd.f32 %v3015_v37, %v6273_v13  ;;  %v3048_v10 = vadd.f32 %v3016_v24, %v6278_v51  ;;  %v2981_v11 = vadd.f32 %v2949_v38, %v7022_v42 }
 0x4c3   : > { %v2982_v62 = vadd.f32 %v2950_v41, %v7023_v57  ;;  %3191 = vst [vmem:[%s6398_s18 + $0x20] sm:$0xff] %v3159_v0  ;;  %3192 = vst [vmem:[%s6398_s18 + $0x28] sm:$0xff] %v3160_v17  ;;  %v3125_v12 = vmax.f32 %v3081_v6, 0.0  ;;  %v2919_v3 = vsub.f32 %v2772_v33, %v7024_v58  ;;  %v2920_v8 = vsub.f32 %v2774_v56, %v5871_v34 }
 0x4c4   : > { %v3126_v28 = vmax.f32 %v3082_v47, 0.0  ;;  %v3083_v32 = vadd.f32 %v6205_v5, %v3047_v16  ;;  %v3084_v13 = vadd.f32 %v6205_v5, %v3048_v10  ;;  %v3017_v51 = vmul.f32 %v6203_v25, %v2981_v11 }
 0x4c5   : > { %v3018_v15 = vmul.f32 %v6203_v25, %v2982_v62  ;;  %v3161_v45 = vmin.f32 %v3125_v12, %v6221_v61  ;;  %v2951_v42 = vmul.f32 %v2919_v3, %v5476_v46  ;;  %v2952_v54 = vmul.f32 %v2920_v8, %v5476_v46  ;;  %v2776_v57 = vpop.permute.xlu1 %2775  ;;  %v2778_v23 = vpop.permute.xlu0 %2777 }
 0x4c6   : > { %v3162_v36 = vmin.f32 %v3126_v28, %v6221_v61  ;;  %v3127_v49 = vmax.f32 %v3083_v32, 0.0  ;;  %v3128_v27 = vmax.f32 %v3084_v13, 0.0  ;;  %v3049_v43 = vadd.f32 %v3017_v51, %v6281_v40 }
 0x4c7   : > { %v3050_v20 = vadd.f32 %v3018_v15, %v6288_v1  ;;  %3193 = vst [vmem:[%s6398_s18 + $0x30] sm:$0xff] %v3161_v45  ;;  %v2983_v37 = vadd.f32 %v2951_v42, %v7024_v58  ;;  %v2984_v24 = vadd.f32 %v2952_v54, %v5871_v34  ;;  %v2921_v38 = vsub.f32 %v2776_v57, %v5869_v9  ;;  %v7025_v57 = vld [vmem:[#allocation44_spill] sm:$0xff] }
 0x4c8   : > { %3194 = vst [vmem:[%s6398_s18 + $0x38] sm:$0xff] %v3162_v36  ;;  %v2922_v41 = vsub.f32 %v2778_v23, %v5897_v52  ;;  %v3163_v0 = vmin.f32 %v3127_v49, %v6221_v61  ;;  %v3164_v17 = vmin.f32 %v3128_v27, %v6221_v61  ;;  %v3085_v40 = vadd.f32 %v6205_v5, %v3049_v43 }
 0x4c9   : > { %v3086_v1 = vadd.f32 %v6205_v5, %v3050_v20  ;;  %v3019_v6 = vmul.f32 %v6203_v25, %v2983_v37  ;;  %v3020_v47 = vmul.f32 %v6203_v25, %v2984_v24  ;;  %v2953_v33 = vmul.f32 %v2921_v38, %v5476_v46  ;;  %v2780_v56 = vpop.permute.xlu1 %2779  ;;  %v2782_v16 = vpop.permute.xlu0 %2781 }
 0x4ca   : > { %v2954_v34 = vmul.f32 %v2922_v41, %v5476_v46  ;;  %3195 = vst [vmem:[%s6398_s18 + $0x40] sm:$0xff] %v3163_v0  ;;  %3196 = vst [vmem:[%s6398_s18 + $0x48] sm:$0xff] %v3164_v17  ;;  %v3129_v10 = vmax.f32 %v3085_v40, 0.0  ;;  %v2923_v62 = vsub.f32 %v2780_v56, %v5895_v55  ;;  %v2924_v12 = vsub.f32 %v2782_v16, %v5922_v26 }
 0x4cb   : > { %v3130_v11 = vmax.f32 %v3086_v1, 0.0  ;;  %v3051_v28 = vadd.f32 %v3019_v6, %v6291_v31  ;;  %v3052_v58 = vadd.f32 %v3020_v47, %v6302_v14  ;;  %v2985_v3 = vadd.f32 %v2953_v33, %v5869_v9 }
 0x4cc   : > { %v2986_v8 = vadd.f32 %v2954_v34, %v5897_v52  ;;  %v3165_v32 = vmin.f32 %v3129_v10, %v6221_v61  ;;  %v2955_v51 = vmul.f32 %v2923_v62, %v5476_v46  ;;  %v2956_v15 = vmul.f32 %v2924_v12, %v5476_v46  ;;  %v7026_v10 = vld [vmem:[#allocation74_spill] sm:$0xff] }
 0x4cd   : > { %v3166_v13 = vmin.f32 %v3130_v11, %v6221_v61  ;;  %v3087_v45 = vadd.f32 %v6205_v5, %v3051_v28  ;;  %v3088_v36 = vadd.f32 %v6205_v5, %v3052_v58  ;;  %v3021_v31 = vmul.f32 %v6203_v25, %v2985_v3  ;;  %v2784_v42 = vpop.permute.xlu1 %2783  ;;  %v2786_v9 = vpop.permute.xlu0 %2785 }
 0x4ce   : > { %v3022_v14 = vmul.f32 %v6203_v25, %v2986_v8  ;;  %3197 = vst [vmem:[%s6398_s18 + $0x50] sm:$0xff] %v3165_v32  ;;  %v2987_v52 = vadd.f32 %v2955_v51, %v5895_v55  ;;  %v2988_v54 = vadd.f32 %v2956_v15, %v5922_v26  ;;  %v2925_v23 = vsub.f32 %v2784_v42, %v7025_v57 }
 0x4cf   : > { %3198 = vst [vmem:[%s6398_s18 + $0x58] sm:$0xff] %v3166_v13  ;;  %v2926_v49 = vsub.f32 %v2786_v9, %v5946_v39  ;;  %v3131_v27 = vmax.f32 %v3087_v45, 0.0  ;;  %v3132_v43 = vmax.f32 %v3088_v36, 0.0  ;;  %v3053_v20 = vadd.f32 %v3021_v31, %v6305_v53  ;;  %v7028_v9 = vld [vmem:[#allocation31_spill] sm:$0xff] }
 0x4d0   : > { %v3054_v37 = vadd.f32 %v3022_v14, %v6316_v19  ;;  %v3023_v24 = vmul.f32 %v6203_v25, %v2987_v52  ;;  %v3024_v38 = vmul.f32 %v6203_v25, %v2988_v54  ;;  %v2957_v55 = vmul.f32 %v2925_v23, %v5476_v46  ;;  %v7027_v14 = vld [vmem:[#allocation71_spill] sm:$0xff] }
 0x4d1   : > { %v2958_v26 = vmul.f32 %v2926_v49, %v5476_v46  ;;  %v3167_v41 = vmin.f32 %v3131_v27, %v6221_v61  ;;  %v3168_v0 = vmin.f32 %v3132_v43, %v6221_v61  ;;  %v3089_v17 = vadd.f32 %v6205_v5, %v3053_v20  ;;  %v2788_v40 = vpop.permute.xlu1 %2787  ;;  %v2790_v1 = vpop.permute.xlu0 %2789 }
 0x4d2   : > { %v3090_v53 = vadd.f32 %v6205_v5, %v3054_v37  ;;  %v3055_v19 = vadd.f32 %v3023_v24, %v6319_v60  ;;  %v3056_v6 = vadd.f32 %v3024_v38, %v6324_v50  ;;  %v2989_v47 = vadd.f32 %v2957_v55, %v7025_v57  ;;  %v7029_v38 = vld [vmem:[#allocation30_spill] sm:$0xff] }
 0x4d3   : > { %v2990_v33 = vadd.f32 %v2958_v26, %v5946_v39  ;;  %3199 = vst [vmem:[%s6398_s18 + $0x60] sm:$0xff] %v3167_v41  ;;  %3200 = vst [vmem:[%s6398_s18 + $0x68] sm:$0xff] %v3168_v0  ;;  %v3133_v34 = vmax.f32 %v3089_v17, 0.0  ;;  %v2927_v16 = vsub.f32 %v2788_v40, %v5944_v63  ;;  %v2928_v11 = vsub.f32 %v2790_v1, %v7026_v10 }
 0x4d4   : > { %v3134_v56 = vmax.f32 %v3090_v53, 0.0  ;;  %v3091_v62 = vadd.f32 %v6205_v5, %v3055_v19  ;;  %v3092_v60 = vadd.f32 %v6205_v5, %v3056_v6  ;;  %v3025_v50 = vmul.f32 %v6203_v25, %v2989_v47 }
 0x4d5   : > { %v3026_v12 = vmul.f32 %v6203_v25, %v2990_v33  ;;  %v3169_v39 = vmin.f32 %v3133_v34, %v6221_v61  ;;  %v2959_v58 = vmul.f32 %v2927_v16, %v5476_v46  ;;  %v2960_v3 = vmul.f32 %v2928_v11, %v5476_v46  ;;  %v2792_v8 = vpop.permute.xlu1 %2791  ;;  %v2794_v32 = vpop.permute.xlu0 %2793 }
 0x4d6   : > { %v3170_v28 = vmin.f32 %v3134_v56, %v6221_v61  ;;  %v3135_v13 = vmax.f32 %v3091_v62, 0.0  ;;  %v3136_v51 = vmax.f32 %v3092_v60, 0.0  ;;  %v3057_v15 = vadd.f32 %v3025_v50, %v6327_v7 }
 0x4d7   : > { %v3058_v45 = vadd.f32 %v3026_v12, %v6336_v30  ;;  %3201 = vst [vmem:[%s6398_s18 + $0x70] sm:$0xff] %v3169_v39  ;;  %v2991_v36 = vadd.f32 %v2959_v58, %v5944_v63  ;;  %v2992_v31 = vadd.f32 %v2960_v3, %v7026_v10  ;;  %v2929_v42 = vsub.f32 %v2792_v8, %v7027_v14  ;;  %v7030_v58 = vld [vmem:[#allocation73_spill] sm:$0xff] }
 0x4d8   : > { %3202 = vst [vmem:[%s6398_s18 + $0x78] sm:$0xff] %v3170_v28  ;;  %v2930_v52 = vsub.f32 %v2794_v32, %v7028_v9  ;;  %v3171_v54 = vmin.f32 %v3135_v13, %v6221_v61  ;;  %v3172_v57 = vmin.f32 %v3136_v51, %v6221_v61  ;;  %v3093_v7 = vadd.f32 %v6205_v5, %v3057_v15 }
 0x4d9   : > { %v3094_v30 = vadd.f32 %v6205_v5, %v3058_v45  ;;  %v3027_v23 = vmul.f32 %v6203_v25, %v2991_v36  ;;  %v3028_v49 = vmul.f32 %v6203_v25, %v2992_v31  ;;  %v2961_v63 = vmul.f32 %v2929_v42, %v5476_v46  ;;  %v2796_v43 = vpop.permute.xlu1 %2795  ;;  %v2798_v20 = vpop.permute.xlu0 %2797  ;;  %v7031_v36 = vld [vmem:[#allocation33_spill] sm:$0xff] }
 0x4da   : > { %v2962_v27 = vmul.f32 %v2930_v52, %v5476_v46  ;;  %3203 = vst [vmem:[%s6398_s18 + $0x80] sm:$0xff] %v3171_v54  ;;  %3204 = vst [vmem:[%s6398_s18 + $0x88] sm:$0xff] %v3172_v57  ;;  %v3137_v37 = vmax.f32 %v3093_v7, 0.0  ;;  %v2931_v55 = vsub.f32 %v2796_v43, %v7029_v38  ;;  %v2932_v26 = vsub.f32 %v2798_v20, %v7015_v21 }
 0x4db   : > { %v3138_v24 = vmax.f32 %v3094_v30, 0.0  ;;  %v3059_v41 = vadd.f32 %v3027_v23, %v6339_v44  ;;  %v3060_v0 = vadd.f32 %v3028_v49, %v6348_v2  ;;  %v2993_v17 = vadd.f32 %v2961_v63, %v7027_v14  ;;  %v7033_v23 = vld [vmem:[#allocation46_spill] sm:$0xff] }
 0x4dc   : > { %v2994_v53 = vadd.f32 %v2962_v27, %v7028_v9  ;;  %v3173_v40 = vmin.f32 %v3137_v37, %v6221_v61  ;;  %v2963_v19 = vmul.f32 %v2931_v55, %v5476_v46  ;;  %v2964_v6 = vmul.f32 %v2932_v26, %v5476_v46  ;;  %v7032_v9 = vld [vmem:[#allocation76_spill] sm:$0xff] }
 0x4dd   : > { %v3174_v1 = vmin.f32 %v3138_v24, %v6221_v61  ;;  %v3095_v47 = vadd.f32 %v6205_v5, %v3059_v41  ;;  %v3096_v33 = vadd.f32 %v6205_v5, %v3060_v0  ;;  %v3029_v44 = vmul.f32 %v6203_v25, %v2993_v17  ;;  %v2800_v34 = vpop.permute.xlu1 %2799  ;;  %v2802_v56 = vpop.permute.xlu0 %2801  ;;  %v7034_v24 = vld [vmem:[#allocation32_spill] sm:$0xff] }
 0x4de   : > { %v3030_v2 = vmul.f32 %v6203_v25, %v2994_v53  ;;  %v2900_v16 = vadd.f32 %v6377_v22, %v6265_v59  ;;  %3205 = vst [vmem:[%s6398_s18 + $0x90] sm:$0xff] %v3173_v40  ;;  %v2995_v10 = vadd.f32 %v2963_v19, %v7029_v38  ;;  %v2996_v11 = vadd.f32 %v2964_v6, %v7015_v21 }
 0x4df   : > { %3206 = vst [vmem:[%s6398_s18 + $0x98] sm:$0xff] %v3174_v1  ;;  %v2933_v62 = vsub.f32 %v2800_v34, %v7016_v29  ;;  %v3139_v60 = vmax.f32 %v3095_v47, 0.0  ;;  %v3140_v50 = vmax.f32 %v3096_v33, 0.0  ;;  %v3061_v12 = vadd.f32 %v3029_v44, %v6351_v35  ;;  %v7035_v44 = vld [vmem:[#allocation26_spill] sm:$0xff] }
 0x4e0   : > { %v3062_v39 = vadd.f32 %v3030_v2, %v6363_v4  ;;  %v3031_v28 = vmul.f32 %v6203_v25, %v2995_v10  ;;  %v3032_v59 = vmul.f32 %v6203_v25, %v2996_v11  ;;  %v2934_v3 = vsub.f32 %v2802_v56, %v7030_v58 }
 0x4e1   : > { %v2965_v22 = vmul.f32 %v2933_v62, %v5476_v46  ;;  %v3175_v21 = vmin.f32 %v3139_v60, %v6221_v61  ;;  %v3176_v8 = vmin.f32 %v3140_v50, %v6221_v61  ;;  %v3097_v32 = vadd.f32 %v6205_v5, %v3061_v12  ;;  %v2804_v13 = vpop.permute.xlu1 %2803  ;;  %v2806_v51 = vpop.permute.xlu0 %2805 }
 0x4e2   : > { %v3098_v35 = vadd.f32 %v6205_v5, %v3062_v39  ;;  %v3063_v4 = vadd.f32 %v3031_v28, %v6366_v18  ;;  %v3064_v15 = vadd.f32 %v3032_v59, %v2900_v16  ;;  %v2901_v31 = vadd.f32 %v7031_v36, %v6267_v48 }
 0x4e3   : > { %v2997_v45 = vadd.f32 %v2965_v22, %v7016_v29  ;;  %3207 = vst [vmem:[%s6398_s18 + $0xa0] sm:$0xff] %v3175_v21  ;;  %3208 = vst [vmem:[%s6398_s18 + $0xa8] sm:$0xff] %v3176_v8  ;;  %v3141_v14 = vmax.f32 %v3097_v32, 0.0  ;;  %v2935_v52 = vsub.f32 %v2804_v13, %v7032_v9  ;;  %v2966_v7 = vmul.f32 %v2934_v3, %v5476_v46 }
 0x4e4   : > { %v3142_v42 = vmax.f32 %v3098_v35, 0.0  ;;  %v3099_v54 = vadd.f32 %v6205_v5, %v3063_v4  ;;  %v3100_v57 = vadd.f32 %v6205_v5, %v3064_v15  ;;  %v2936_v49 = vsub.f32 %v2806_v51, %v7033_v23 }
 0x4e5   : > { %v3033_v18 = vmul.f32 %v6203_v25, %v2997_v45  ;;  %v3177_v29 = vmin.f32 %v3141_v14, %v6221_v61  ;;  %v2967_v30 = vmul.f32 %v2935_v52, %v5476_v46  ;;  %v2808_v63 = vpop.permute.xlu1 %2807  ;;  %v2810_v27 = vpop.permute.xlu0 %2809  ;;  %v2998_v0 = vadd.f32 %v2966_v7, %v7030_v58 }
 0x4e6   : > { %v3178_v48 = vmin.f32 %v3142_v42, %v6221_v61  ;;  %v3143_v43 = vmax.f32 %v3099_v54, 0.0  ;;  %v3144_v20 = vmax.f32 %v3100_v57, 0.0  ;;  %v2937_v38 = vsub.f32 %v2808_v63, %v7034_v24 }
 0x4e7   : > { %v3065_v37 = vadd.f32 %v3033_v18, %v2901_v31  ;;  %3209 = vst [vmem:[%s6398_s18 + $0xb0] sm:$0xff] %v3177_v29  ;;  %v2999_v17 = vadd.f32 %v2967_v30, %v7032_v9  ;;  %v2968_v53 = vmul.f32 %v2936_v49, %v5476_v46  ;;  %v2938_v2 = vsub.f32 %v2810_v27, %v7035_v44 }
 0x4e8   : > { %3210 = vst [vmem:[%s6398_s18 + $0xb8] sm:$0xff] %v3178_v48  ;;  %v3179_v55 = vmin.f32 %v3143_v43, %v6221_v61  ;;  %v3180_v26 = vmin.f32 %v3144_v20, %v6221_v61  ;;  %v2969_v40 = vmul.f32 %v2937_v38, %v5476_v46  ;;  %v3034_v62 = vmul.f32 %v6203_v25, %v2998_v0 }
 0x4e9   : > { %v3101_v41 = vadd.f32 %v6205_v5, %v3065_v37  ;;  %v2738_v1 = vpop.permute.xlu1 %2737  ;;  %v2740_v19 = vpop.permute.xlu0 %2739  ;;  %v3000_v10 = vadd.f32 %v2968_v53, %v7033_v23  ;;  %v3035_v60 = vmul.f32 %v6203_v25, %v2999_v17 }
 0x4ea   : > { %3211 = vst [vmem:[%s6398_s18 + $0xc0] sm:$0xff] %v3179_v55  ;;  %3212 = vst [vmem:[%s6398_s18 + $0xc8] sm:$0xff] %v3180_v26  ;;  %v2838_v47 = vsub.f32 %v7030_v58, %v2738_v1  ;;  %v2839_v33 = vsub.f32 %v7032_v9, %v2740_v19  ;;  %v3001_v11 = vadd.f32 %v2969_v40, %v7034_v24 }
 0x4eb   : > { %v3145_v6 = vmax.f32 %v3101_v41, 0.0  ;;  %v2970_v58 = vmul.f32 %v2938_v2, %v5476_v46  ;;  %v3036_v35 = vmul.f32 %v6203_v25, %v3000_v10 }
 0x4ec   : > { %v2870_v56 = vmul.f32 %v2838_v47, %v5476_v46  ;;  %v2871_v16 = vmul.f32 %v2839_v33, %v5476_v46  ;;  %v3037_v13 = vmul.f32 %v6203_v25, %v3001_v11 }
 0x4ed   : > { %v3181_v34 = vmin.f32 %v3145_v6, %v6221_v61  ;;  %v2742_v50 = vpop.permute.xlu1 %2741  ;;  %v2744_v12 = vpop.permute.xlu0 %2743  ;;  %v3002_v31 = vadd.f32 %v2970_v58, %v7035_v44 }
 0x4ee   : > { %v2902_v39 = vadd.f32 %v2870_v56, %v2738_v1  ;;  %v2903_v28 = vadd.f32 %v2871_v16, %v2740_v19  ;;  %v2840_v59 = vsub.f32 %v7033_v23, %v2742_v50  ;;  %v2841_v22 = vsub.f32 %v7034_v24, %v2744_v12 }
 0x4ef   : > { %3213 = vst [vmem:[%s6398_s18 + $0xd0] sm:$0xff] %v3181_v34  ;;  %v3038_v23 = vmul.f32 %v6203_v25, %v3002_v31 }
 0x4f0   : > { %v3066_v3 = vadd.f32 %v3034_v62, %v2902_v39  ;;  %v3067_v21 = vadd.f32 %v3035_v60, %v2903_v28  ;;  %v2872_v8 = vmul.f32 %v2840_v59, %v5476_v46  ;;  %v2873_v32 = vmul.f32 %v2841_v22, %v5476_v46 }
 0x4f1   : > { %v2746_v51 = vpop.permute.xlu1 %2745 }
 0x4f2   : > { %v3102_v4 = vadd.f32 %v6205_v5, %v3066_v3  ;;  %v3103_v15 = vadd.f32 %v6205_v5, %v3067_v21  ;;  %v2904_v45 = vadd.f32 %v2872_v8, %v2742_v50  ;;  %v2905_v36 = vadd.f32 %v2873_v32, %v2744_v12 }
 0x4f3   : > { %v2842_v14 = vsub.f32 %v7035_v44, %v2746_v51 }
 0x4f4   : > { %v3146_v42 = vmax.f32 %v3102_v4, 0.0  ;;  %v3147_v9 = vmax.f32 %v3103_v15, 0.0  ;;  %v3068_v52 = vadd.f32 %v3036_v35, %v2904_v45  ;;  %v3069_v54 = vadd.f32 %v3037_v13, %v2905_v36 }
 0x4f5   : > { %v2874_v57 = vmul.f32 %v2842_v14, %v5476_v46 }
 0x4f6   : > { %v3182_v18 = vmin.f32 %v3146_v42, %v6221_v61  ;;  %v3183_v7 = vmin.f32 %v3147_v9, %v6221_v61  ;;  %v3104_v29 = vadd.f32 %v6205_v5, %v3068_v52  ;;  %v3105_v48 = vadd.f32 %v6205_v5, %v3069_v54 }
 0x4f7   : > { %v2906_v30 = vadd.f32 %v2874_v57, %v2746_v51 }
 0x4f8   : > { %3214 = vst [vmem:[%s6398_s18 + $0xd8] sm:$0xff] %v3182_v18  ;;  %3215 = vst [vmem:[%s6398_s18 + $0xe0] sm:$0xff] %v3183_v7  ;;  %v3148_v49 = vmax.f32 %v3104_v29, 0.0  ;;  %v3149_v46 = vmax.f32 %v3105_v48, 0.0 }
 0x4f9   : > { %v3070_v63 = vadd.f32 %v3038_v23, %v2906_v30 }
 0x4fa   : > { %v3184_v27 = vmin.f32 %v3148_v49, %v6221_v61  ;;  %v3185_v43 = vmin.f32 %v3149_v46, %v6221_v61 }
 0x4fb   : > { %v3106_v20 = vadd.f32 %v6205_v5, %v3070_v63 }
 0x4fc   : > { %3216 = vst [vmem:[%s6398_s18 + $0xe8] sm:$0xff] %v3184_v27  ;;  %3217 = vst [vmem:[%s6398_s18 + $0xf0] sm:$0xff] %v3185_v43 }
 0x4fd   : > { %v3150_v37 = vmax.f32 %v3106_v20, 0.0 }
 0x4ff   : > { %v3186_v25 = vmin.f32 %v3150_v37, %v6221_v61 }
 0x501   : > { %3218 = vst [vmem:[%s6398_s18 + $0xf8] sm:$0xff] %v3186_v25 }
 0x502   : > { %3775 = shalt.err (!%p3772_p10)
}
 0x503   : > { %s3776_s8 = scalar_lea.hbm %s6628_s22, 4096  ;;  %s3780_s15 = scalar_lea.hbm %s6687_s6, 8192 }
 0x504   : > { %p3777_p11 = scmp.ne.s32.totalorder %s6628_s22, %s3776_s8  ;;  %p3781_p1 = scmp.lt.s32.totalorder %s6628_s22, %s6687_s6 }
 0x505   : > { %p3782_p2 = scmp.lt.s32.totalorder %s3780_s15, %s3776_s8 }
 0x506   : > { %p3778_p12 = pnand %p3777_p11, %p3931_p9 }
 0x507   : > { %p3783_p3 = por %p3782_p2, %p3781_p1 }
 0x508   : > { %p3779_p0 = pneg %p3778_p12 }
 0x50a   : > { %p3784_p4 = pnand %p3783_p3, %p3779_p0 }
 0x50c   : > { %3787 = shalt.err (!%p3784_p4)
}
 0x50d   : > { %s3851_s19 = smov 128   ;;  %s3852_s16 = smov 8  }
 0x50e   : > { %3452 = dma.vmem_to_hbm [thread:$0]  (%p3931_p9), %s6630_s20, 4096, %s6628_s22, %s6636_s24, %s3851_s19, %s3851_s19, %s3852_s16  }
 0x50f PF: > { %p3458_p5 = scmp.ge.s32.totalorder %s3840_s30, 2  ;;  %s3269_s21 = sand.u32 1, %s3820_s26  }
 0x510   : > { %s3270_s28 = scalar_lea.sflag [#allocation5], %s3269_s21 }
 0x511   : > { %p3455_p6 = pnand %p3458_p5, %p3938_p13 }
 0x513   : > { %p3456_p7 = pneg %p3455_p6 }
 0x515   : > { %3815 = dma.done.wait (%p3456_p7), %s3270_s28, 4096  }
 0x516   : > { %3817 = vsyncadd (%p3456_p7), %s3270_s28, 4294963200  ;;  %s26_s30 = sadd.s32 1, %s3840_s30   ;;  %s7036_s26 = smov %s3824_s27 }
 0x517   : > { %p23_p8 = scmp.ge.s32.totalorder %s26_s30, 4   ;;  %s7037_s27 = smov %s3828_s0 }
 0x518   : > { %s7038_s0 = smov %s3944_s14  ;;  %s7039_s28 = smov %s3836_s29 }
 0x519   : > { %s7040_s29 = smov %s7042_s9  ;;  %25 = sbr.rel (!%p23_p8) target bundleno = 19 (0x13), region = 89 }
 0x51e   :  { %3275 = vsyncpa [#allocation5], 1 }
 0x51f   :  { %3277 = vsyncpa [#allocation5 + $0x1], 1 }

</bundles_post_ra>
